<compile_context>
chip_gen: v7x
topology: tpu7x:2x2x1
jax: 0.10.0
libtpu: 0.0.40
codegen_flags: <defaults>
</compile_context>

<pallas_src>
import math
import functools

import jax
import jax.numpy as jnp
from jax import lax
from jax.experimental import pallas as pl
from jax.experimental.pallas import tpu as pltpu


# ----------------------------- Pallas kernel --------------------------------

def _make_conv_kernel(C_in, Fh, Fw, Sh, Sw, Ho, Wo):
    """Kernel: one grid step = one padded image -> one (C_out, Ho*Wo) output slab."""
    taps = [(i, j) for i in range(Fh) for j in range(Fw)]

    def kernel(x_ref, w_ref, b_ref, o_ref, patches_ref):
        # x_ref:       (1, C_in, Hp, Wp)   padded input image (VMEM)
        # w_ref:       (C_out, K)          resident weight, K ordered (i, j, ci)
        # b_ref:       (C_out, 1)          resident (already scaled) bias
        # o_ref:       (1, C_out, Ho*Wo)   lane-dense output block
        # patches_ref: (K, Ho*Wo)          f32 VMEM scratch (im2col built in-kernel)

        # ---- fused im2col: static strip copies, all data stays in VMEM ----
        for ho in range(Ho):
            lane0 = ho * Wo
            for i in range(Fh):
                h = ho * Sh + i
                if Sw == 1:
                    row = x_ref[0, :, h, :]                       # (C_in, Wp)
                    for j in range(Fw):
                        t = i * Fw + j
                        patches_ref[t * C_in:(t + 1) * C_in,
                                    lane0:lane0 + Wo] = (
                            row[:, j:j + Wo].astype(patches_ref.dtype))
                else:
                    for j in range(Fw):
                        t = i * Fw + j
                        strip = x_ref[0, :, h, pl.ds(j, Wo, stride=Sw)]  # (C_in, Wo)
                        patches_ref[t * C_in:(t + 1) * C_in,
                                    lane0:lane0 + Wo] = strip.astype(patches_ref.dtype)

        # ---- single MXU matmul + bias epilogue, cast to output dtype ----
        lhs = w_ref[...]                          # (C_out, K)
        rhs = patches_ref[...]                    # (K, Ho*Wo)
        if rhs.dtype != lhs.dtype:
            rhs = rhs.astype(lhs.dtype)           # bf16 MXU path (f32 accumulation)
        acc = jnp.dot(lhs, rhs, preferred_element_type=jnp.float32)  # (C_out, Ho*Wo)
        o_ref[0] = (acc + b_ref[...].astype(jnp.float32)).astype(o_ref.dtype)

    return kernel


@functools.partial(
    jax.jit,
    static_argnames=("Fh", "Fw", "Sh", "Sw", "Ph", "Pw", "compute_dtype_name"))
def _llconv2d_forward(x_nchw, w_mat, bias_col, *, Fh, Fw, Sh, Sw, Ph, Pw,
                      compute_dtype_name):
    """conv_nobias(x) + scaled_bias, NCHW in / NCHW out, hot path in Pallas."""
    N, C_in, H, W = x_nchw.shape
    C_out, K = w_mat.shape
    assert K == Fh * Fw * C_in, (K, Fh, Fw, C_in)

    Ho = (H - Fh + 2 * Ph) // Sh + 1
    Wo = (W - Fw + 2 * Pw) // Sw + 1
    M2 = Ho * Wo
    Hp, Wp = H + 2 * Ph, W + 2 * Pw

    xp = x_nchw if (Ph == 0 and Pw == 0) else jnp.pad(
        x_nchw, ((0, 0), (0, 0), (Ph, Ph), (Pw, Pw)))

    kernel = _make_conv_kernel(C_in, Fh, Fw, Sh, Sw, Ho, Wo)

    in_b = jnp.dtype(x_nchw.dtype).itemsize
    w_b = jnp.dtype(w_mat.dtype).itemsize
    out_b = in_b
    # x block + out block are double-buffered by the pipeline; weight/bias/scratch single.
    vmem_need = (2 * C_in * Hp * Wp * in_b
                 + C_out * K * w_b + C_out * 4
                 + 2 * C_out * M2 * out_b
                 + K * M2 * 4)
    vmem_limit = int(min(112 << 20, max(32 << 20, 2 * vmem_need + (4 << 20))))

    cost = pl.CostEstimate(
        flops=2 * N * M2 * K * C_out,
        transcendentals=0,
        bytes_accessed=(N * C_in * Hp * Wp * in_b
                        + C_out * K * w_b
                        + N * C_out * M2 * out_b))

    out2d = pl.pallas_call(
        kernel,
        out_shape=jax.ShapeDtypeStruct((N, C_out, M2), x_nchw.dtype),
        grid_spec=pltpu.PrefetchScalarGridSpec(
            num_scalar_prefetch=0,
            grid=(N,),
            in_specs=[
                pl.BlockSpec((1, C_in, Hp, Wp), lambda n: (n, 0, 0, 0)),
                pl.BlockSpec((C_out, K), lambda n: (0, 0)),   # resident (constant idx)
                pl.BlockSpec((C_out, 1), lambda n: (0, 0)),   # resident (constant idx)
            ],
            out_specs=pl.BlockSpec((1, C_out, M2), lambda n: (n, 0, 0)),
            scratch_shapes=[pltpu.VMEM((K, M2), jnp.float32)],
        ),
        compiler_params=pltpu.CompilerParams(
            dimension_semantics=("parallel",),
            vmem_limit_bytes=vmem_limit),
        cost_estimate=cost,
    )(xp, w_mat, bias_col)

    return out2d.reshape(N, C_out, Ho, Wo)


# --------------------------- LLConv2d wrapper --------------------------------

class LLConv2dPallas:
    """Mirrors LLConv2d's stateful forward; the conv hot path runs in Pallas."""

    def __init__(self, weight_oihw, bias, stride, padding, *,
                 neuron_type, level, compute_dtype=jnp.float32):
        weight_oihw = jnp.asarray(weight_oihw)
        self.bias = None if bias is None else jnp.asarray(bias, jnp.float32)
        self.stride = tuple(stride)
        self.padding = tuple(padding)
        self.neuron_type = neuron_type
        self.level = level
        self.steps = level
        self.realize_time = self.steps
        self.is_work = False
        self.first = True
        self.zero_output = None

        C_out, C_in, F_h, F_w = weight_oihw.shape
        self.C_out, self.C_in, self.Fh, self.Fw = C_out, C_in, F_h, F_w
        self.compute_dtype = jnp.dtype(compute_dtype)
        # (C_out, C_in, Fh, Fw) -> (C_out, Fh, Fw, C_in) -> (C_out, K); K order (i, j, ci)
        self.w_mat = jnp.transpose(weight_oihw, (0, 2, 3, 1)).reshape(
            C_out, F_h * F_w * C_in).astype(self.compute_dtype)

    def reset(self):
        self.is_work = False
        self.first = True
        self.zero_output = None
        self.realize_time = self.steps

    def forward(self, x_nchw):
        N, _, H, W = x_nchw.shape
        S_h, S_w = self.stride
        P_h, P_w = self.padding
        Ho = math.floor((H - self.Fh + 2 * P_h) / S_h) + 1
        Wo = math.floor((W - self.Fw + 2 * P_w) / S_w) + 1

        out_shape = (N, self.C_out, Ho, Wo)
        if (self.zero_output is None or self.zero_output.shape != out_shape
                or self.zero_output.dtype != x_nchw.dtype):
            self.zero_output = jnp.zeros(out_shape, x_nchw.dtype)

        # Device->host sync only where the output actually depends on the all-zero
        # branch (IF neurons with a bias term). For every other configuration the
        # all-zero branch is output-equivalent to the fused conv path below, so we
        # keep dispatch fully asynchronous.
        if self.neuron_type == 'IF' and self.bias is not None:
            if bool(jnp.all(x_nchw == 0.0)):
                self.is_work = False
                if self.realize_time > 0:
                    out = self.zero_output + (
                        self.bias / self.steps).astype(x_nchw.dtype)[None, :, None, None]
                    self.realize_time -= 1
                    self.is_work = True
                    return out
                return self.zero_output
        # TODO(synk): on all-zero non-IF steps the torch module's is_work/first flags
        # (and realize_time when bias is None) are updated slightly differently; the
        # returned values are identical, so the host-blocking check is skipped here.

        # bias scaling reproducing the torch branches
        if self.neuron_type == 'IF':
            scale = 1.0 if self.bias is not None else 0.0
        elif self.bias is None:
            scale = 0.0
        else:
            if self.realize_time > 0:
                scale = 1.0 / self.steps
                self.realize_time -= 1
            else:
                scale = 0.0

        if self.bias is not None:
            bias_col = (self.bias * scale).reshape(self.C_out, 1)
        else:
            bias_col = jnp.zeros((self.C_out, 1), jnp.float32)

        out = _llconv2d_forward(
            x_nchw, self.w_mat, bias_col,
            Fh=self.Fh, Fw=self.Fw, Sh=S_h, Sw=S_w, Ph=P_h, Pw=P_w,
            compute_dtype_name=self.compute_dtype.name)

        self.is_work = True
        self.first = False
        return out


# --------------------------------- main --------------------------------------

if __name__ == "__main__":
    key = jax.random.PRNGKey(0)
    k_x, k_w, k_b = jax.random.split(key, 3)

    # small config consistent with the module: batch=2, C_in=4, 16x16, C_out=8,
    # 3x3 conv, stride 1, padding 1, level=4, neuron_type='LIF'
    N, C_in, H, W = 2, 4, 16, 16
    C_out, F_h, F_w = 8, 3, 3
    stride, padding = (1, 1), (1, 1)
    level = 4

    x = jax.random.normal(k_x, (N, C_in, H, W), dtype=jnp.float32)
    weight = (jax.random.normal(k_w, (C_out, C_in, F_h, F_w), dtype=jnp.float32)
              * (1.0 / math.sqrt(C_in * F_h * F_w)))
    bias = jax.random.normal(k_b, (C_out,), dtype=jnp.float32) * 0.1

    layer = LLConv2dPallas(weight, bias, stride, padding,
                           neuron_type='LIF', level=level)
    out = jax.block_until_ready(layer.forward(x))

    # Reference: conv without bias + bias/steps (realize_time was > 0)
    ref = lax.conv_general_dilated(
        x, weight, window_strides=stride,
        padding=((padding[0], padding[0]), (padding[1], padding[1])),
        dimension_numbers=('NCHW', 'OIHW', 'NCHW'))
    ref = ref + (bias / level)[None, :, None, None]

    assert out.shape == ref.shape, (out.shape, ref.shape)
    max_err = float(jnp.max(jnp.abs(out - ref)))
    assert jnp.allclose(out, ref, atol=1e-4, rtol=1e-4), max_err

    # All-zero input step (realize_time now 3) -> bias/steps broadcast.
    out_zero = jax.block_until_ready(layer.forward(jnp.zeros_like(x)))
    exp_zero = jnp.broadcast_to((bias / level)[None, :, None, None], out_zero.shape)
    assert jnp.allclose(out_zero, exp_zero, atol=1e-6), "zero-input branch mismatch"

    # bf16 MXU-operand path (f32 accumulation) -- looser tolerance.
    layer_bf16 = LLConv2dPallas(weight, bias, stride, padding,
                                neuron_type='LIF', level=level,
                                compute_dtype=jnp.bfloat16)
    out_bf16 = jax.block_until_ready(layer_bf16.forward(x))
    assert jnp.allclose(out_bf16, ref, atol=1e-1, rtol=1e-1), float(
        jnp.max(jnp.abs(out_bf16 - ref)))

    print("KERNEL_OK")
</pallas_src>

<mosaic_0001>
module attributes {stable_mosaic.version = 11 : i64} {
  func.func @kernel(%arg0: i32, %arg1: memref<1x4x18x18xf32, #tpu.memory_space<vmem>>, %arg2: memref<8x36xf32, #tpu.memory_space<vmem>>, %arg3: memref<8x1xf32, #tpu.memory_space<vmem>>, %arg4: memref<1x8x256xf32, #tpu.memory_space<vmem>>, %arg5: memref<36x256xf32, #tpu.memory_space<vmem>>) attributes {dimension_semantics = [#tpu.dimension_semantics<parallel>], iteration_bounds = array<i64: 2>, scalar_prefetch = 0 : i64, scratch_operands = 1 : i64, tpu.core_type = #tpu.core_type<tc>, window_params = [{transform_indices = @transform_0, window_bounds = array<i64: 1, 4, 18, 18>}, {pipeline_mode = #tpu.pipeline_mode<synchronous>, transform_indices = @transform_1, window_bounds = array<i64: 8, 36>}, {pipeline_mode = #tpu.pipeline_mode<synchronous>, transform_indices = @transform_2, window_bounds = array<i64: 8, 1>}, {transform_indices = @transform_3, window_bounds = array<i64: 1, 8, 256>}]} {
    %c0 = arith.constant 0 : index
    %c0_0 = arith.constant 0 : index
    %c0_1 = arith.constant 0 : index
    %c0_2 = arith.constant 0 : index
    %0 = vector.load %arg1[%c0, %c0_0, %c0_1, %c0_2] : memref<1x4x18x18xf32, #tpu.memory_space<vmem>>, vector<1x4x1x18xf32>
    %1 = vector.shape_cast %0 : vector<1x4x1x18xf32> to vector<4x18xf32>
    %2 = vector.extract_strided_slice %1 {offsets = [0, 0], sizes = [4, 16], strides = [1, 1]} : vector<4x18xf32> to vector<4x16xf32>
    %c0_3 = arith.constant 0 : index
    %c0_4 = arith.constant 0 : index
    %3 = vector.load %arg5[%c0_3, %c0_4] : memref<36x256xf32, #tpu.memory_space<vmem>>, vector<4x16xf32>
    tpu.vector_store %arg5[%c0_3, %c0_4], %2 {strides = array<i32>} : memref<36x256xf32, #tpu.memory_space<vmem>>, vector<4x16xf32>,
    %4 = vector.extract_strided_slice %1 {offsets = [0, 1], sizes = [4, 16], strides = [1, 1]} : vector<4x18xf32> to vector<4x16xf32>
    %c4 = arith.constant 4 : index
    %c0_5 = arith.constant 0 : index
    %5 = vector.load %arg5[%c4, %c0_5] : memref<36x256xf32, #tpu.memory_space<vmem>>, vector<4x16xf32>
    tpu.vector_store %arg5[%c4, %c0_5], %4 {strides = array<i32>} : memref<36x256xf32, #tpu.memory_space<vmem>>, vector<4x16xf32>,
    %6 = vector.extract_strided_slice %1 {offsets = [0, 2], sizes = [4, 16], strides = [1, 1]} : vector<4x18xf32> to vector<4x16xf32>
    %c8 = arith.constant 8 : index
    %c0_6 = arith.constant 0 : index
    %7 = vector.load %arg5[%c8, %c0_6] : memref<36x256xf32, #tpu.memory_space<vmem>>, vector<4x16xf32>
    tpu.vector_store %arg5[%c8, %c0_6], %6 {strides = array<i32>} : memref<36x256xf32, #tpu.memory_space<vmem>>, vector<4x16xf32>,
    %c0_7 = arith.constant 0 : index
    %c0_8 = arith.constant 0 : index
    %c1 = arith.constant 1 : index
    %c0_9 = arith.constant 0 : index
    %8 = vector.load %arg1[%c0_7, %c0_8, %c1, %c0_9] : memref<1x4x18x18xf32, #tpu.memory_space<vmem>>, vector<1x4x1x18xf32>
    %9 = vector.shape_cast %8 : vector<1x4x1x18xf32> to vector<4x18xf32>
    %10 = vector.extract_strided_slice %9 {offsets = [0, 0], sizes = [4, 16], strides = [1, 1]} : vector<4x18xf32> to vector<4x16xf32>
    %c12 = arith.constant 12 : index
    %c0_10 = arith.constant 0 : index
    %11 = vector.load %arg5[%c12, %c0_10] : memref<36x256xf32, #tpu.memory_space<vmem>>, vector<4x16xf32>
    tpu.vector_store %arg5[%c12, %c0_10], %10 {strides = array<i32>} : memref<36x256xf32, #tpu.memory_space<vmem>>, vector<4x16xf32>,
    %12 = vector.extract_strided_slice %9 {offsets = [0, 1], sizes = [4, 16], strides = [1, 1]} : vector<4x18xf32> to vector<4x16xf32>
    %c16 = arith.constant 16 : index
    %c0_11 = arith.constant 0 : index
    %13 = vector.load %arg5[%c16, %c0_11] : memref<36x256xf32, #tpu.memory_space<vmem>>, vector<4x16xf32>
    tpu.vector_store %arg5[%c16, %c0_11], %12 {strides = array<i32>} : memref<36x256xf32, #tpu.memory_space<vmem>>, vector<4x16xf32>,
    %14 = vector.extract_strided_slice %9 {offsets = [0, 2], sizes = [4, 16], strides = [1, 1]} : vector<4x18xf32> to vector<4x16xf32>
    %c20 = arith.constant 20 : index
    %c0_12 = arith.constant 0 : index
    %15 = vector.load %arg5[%c20, %c0_12] : memref<36x256xf32, #tpu.memory_space<vmem>>, vector<4x16xf32>
    tpu.vector_store %arg5[%c20, %c0_12], %14 {strides = array<i32>} : memref<36x256xf32, #tpu.memory_space<vmem>>, vector<4x16xf32>,
    %c0_13 = arith.constant 0 : index
    %c0_14 = arith.constant 0 : index
    %c2 = arith.constant 2 : index
    %c0_15 = arith.constant 0 : index
    %16 = vector.load %arg1[%c0_13, %c0_14, %c2, %c0_15] : memref<1x4x18x18xf32, #tpu.memory_space<vmem>>, vector<1x4x1x18xf32>
    %17 = vector.shape_cast %16 : vector<1x4x1x18xf32> to vector<4x18xf32>
    %18 = vector.extract_strided_slice %17 {offsets = [0, 0], sizes = [4, 16], strides = [1, 1]} : vector<4x18xf32> to vector<4x16xf32>
    %c24 = arith.constant 24 : index
    %c0_16 = arith.constant 0 : index
    %19 = vector.load %arg5[%c24, %c0_16] : memref<36x256xf32, #tpu.memory_space<vmem>>, vector<4x16xf32>
    tpu.vector_store %arg5[%c24, %c0_16], %18 {strides = array<i32>} : memref<36x256xf32, #tpu.memory_space<vmem>>, vector<4x16xf32>,
    %20 = vector.extract_strided_slice %17 {offsets = [0, 1], sizes = [4, 16], strides = [1, 1]} : vector<4x18xf32> to vector<4x16xf32>
    %c28 = arith.constant 28 : index
    %c0_17 = arith.constant 0 : index
    %21 = vector.load %arg5[%c28, %c0_17] : memref<36x256xf32, #tpu.memory_space<vmem>>, vector<4x16xf32>
    tpu.vector_store %arg5[%c28, %c0_17], %20 {strides = array<i32>} : memref<36x256xf32, #tpu.memory_space<vmem>>, vector<4x16xf32>,
    %22 = vector.extract_strided_slice %17 {offsets = [0, 2], sizes = [4, 16], strides = [1, 1]} : vector<4x18xf32> to vector<4x16xf32>
    %c32 = arith.constant 32 : index
    %c0_18 = arith.constant 0 : index
    %23 = vector.load %arg5[%c32, %c0_18] : memref<36x256xf32, #tpu.memory_space<vmem>>, vector<4x16xf32>
    tpu.vector_store %arg5[%c32, %c0_18], %22 {strides = array<i32>} : memref<36x256xf32, #tpu.memory_space<vmem>>, vector<4x16xf32>,
    %c0_19 = arith.constant 0 : index
    %c0_20 = arith.constant 0 : index
    %c1_21 = arith.constant 1 : index
    %c0_22 = arith.constant 0 : index
    %24 = vector.load %arg1[%c0_19, %c0_20, %c1_21, %c0_22] : memref<1x4x18x18xf32, #tpu.memory_space<vmem>>, vector<1x4x1x18xf32>
    %25 = vector.shape_cast %24 : vector<1x4x1x18xf32> to vector<4x18xf32>
    %26 = vector.extract_strided_slice %25 {offsets = [0, 0], sizes = [4, 16], strides = [1, 1]} : vector<4x18xf32> to vector<4x16xf32>
    %c0_23 = arith.constant 0 : index
    %c16_24 = arith.constant 16 : index
    %27 = vector.load %arg5[%c0_23, %c16_24] : memref<36x256xf32, #tpu.memory_space<vmem>>, vector<4x16xf32>
    tpu.vector_store %arg5[%c0_23, %c16_24], %26 {strides = array<i32>} : memref<36x256xf32, #tpu.memory_space<vmem>>, vector<4x16xf32>,
    %28 = vector.extract_strided_slice %25 {offsets = [0, 1], sizes = [4, 16], strides = [1, 1]} : vector<4x18xf32> to vector<4x16xf32>
    %c4_25 = arith.constant 4 : index
    %c16_26 = arith.constant 16 : index
    %29 = vector.load %arg5[%c4_25, %c16_26] : memref<36x256xf32, #tpu.memory_space<vmem>>, vector<4x16xf32>
    tpu.vector_store %arg5[%c4_25, %c16_26], %28 {strides = array<i32>} : memref<36x256xf32, #tpu.memory_space<vmem>>, vector<4x16xf32>,
    %30 = vector.extract_strided_slice %25 {offsets = [0, 2], sizes = [4, 16], strides = [1, 1]} : vector<4x18xf32> to vector<4x16xf32>
    %c8_27 = arith.constant 8 : index
    %c16_28 = arith.constant 16 : index
    %31 = vector.load %arg5[%c8_27, %c16_28] : memref<36x256xf32, #tpu.memory_space<vmem>>, vector<4x16xf32>
    tpu.vector_store %arg5[%c8_27, %c16_28], %30 {strides = array<i32>} : memref<36x256xf32, #tpu.memory_space<vmem>>, vector<4x16xf32>,
    %c0_29 = arith.constant 0 : index
    %c0_30 = arith.constant 0 : index
    %c2_31 = arith.constant 2 : index
    %c0_32 = arith.constant 0 : index
    %32 = vector.load %arg1[%c0_29, %c0_30, %c2_31, %c0_32] : memref<1x4x18x18xf32, #tpu.memory_space<vmem>>, vector<1x4x1x18xf32>
    %33 = vector.shape_cast %32 : vector<1x4x1x18xf32> to vector<4x18xf32>
    %34 = vector.extract_strided_slice %33 {offsets = [0, 0], sizes = [4, 16], strides = [1, 1]} : vector<4x18xf32> to vector<4x16xf32>
    %c12_33 = arith.constant 12 : index
    %c16_34 = arith.constant 16 : index
    %35 = vector.load %arg5[%c12_33, %c16_34] : memref<36x256xf32, #tpu.memory_space<vmem>>, vector<4x16xf32>
    tpu.vector_store %arg5[%c12_33, %c16_34], %34 {strides = array<i32>} : memref<36x256xf32, #tpu.memory_space<vmem>>, vector<4x16xf32>,
    %36 = vector.extract_strided_slice %33 {offsets = [0, 1], sizes = [4, 16], strides = [1, 1]} : vector<4x18xf32> to vector<4x16xf32>
    %c16_35 = arith.constant 16 : index
    %c16_36 = arith.constant 16 : index
    %37 = vector.load %arg5[%c16_35, %c16_36] : memref<36x256xf32, #tpu.memory_space<vmem>>, vector<4x16xf32>
    tpu.vector_store %arg5[%c16_35, %c16_36], %36 {strides = array<i32>} : memref<36x256xf32, #tpu.memory_space<vmem>>, vector<4x16xf32>,
    %38 = vector.extract_strided_slice %33 {offsets = [0, 2], sizes = [4, 16], strides = [1, 1]} : vector<4x18xf32> to vector<4x16xf32>
    %c20_37 = arith.constant 20 : index
    %c16_38 = arith.constant 16 : index
    %39 = vector.load %arg5[%c20_37, %c16_38] : memref<36x256xf32, #tpu.memory_space<vmem>>, vector<4x16xf32>
    tpu.vector_store %arg5[%c20_37, %c16_38], %38 {strides = array<i32>} : memref<36x256xf32, #tpu.memory_space<vmem>>, vector<4x16xf32>,
    %c0_39 = arith.constant 0 : index
    %c0_40 = arith.constant 0 : index
    %c3 = arith.constant 3 : index
    %c0_41 = arith.constant 0 : index
    %40 = vector.load %arg1[%c0_39, %c0_40, %c3, %c0_41] : memref<1x4x18x18xf32, #tpu.memory_space<vmem>>, vector<1x4x1x18xf32>
    %41 = vector.shape_cast %40 : vector<1x4x1x18xf32> to vector<4x18xf32>
    %42 = vector.extract_strided_slice %41 {offsets = [0, 0], sizes = [4, 16], strides = [1, 1]} : vector<4x18xf32> to vector<4x16xf32>
    %c24_42 = arith.constant 24 : index
    %c16_43 = arith.constant 16 : index
    %43 = vector.load %arg5[%c24_42, %c16_43] : memref<36x256xf32, #tpu.memory_space<vmem>>, vector<4x16xf32>
    tpu.vector_store %arg5[%c24_42, %c16_43], %42 {strides = array<i32>} : memref<36x256xf32, #tpu.memory_space<vmem>>, vector<4x16xf32>,
    %44 = vector.extract_strided_slice %41 {offsets = [0, 1], sizes = [4, 16], strides = [1, 1]} : vector<4x18xf32> to vector<4x16xf32>
    %c28_44 = arith.constant 28 : index
    %c16_45 = arith.constant 16 : index
    %45 = vector.load %arg5[%c28_44, %c16_45] : memref<36x256xf32, #tpu.memory_space<vmem>>, vector<4x16xf32>
    tpu.vector_store %arg5[%c28_44, %c16_45], %44 {strides = array<i32>} : memref<36x256xf32, #tpu.memory_space<vmem>>, vector<4x16xf32>,
    %46 = vector.extract_strided_slice %41 {offsets = [0, 2], sizes = [4, 16], strides = [1, 1]} : vector<4x18xf32> to vector<4x16xf32>
    %c32_46 = arith.constant 32 : index
    %c16_47 = arith.constant 16 : index
    %47 = vector.load %arg5[%c32_46, %c16_47] : memref<36x256xf32, #tpu.memory_space<vmem>>, vector<4x16xf32>
    tpu.vector_store %arg5[%c32_46, %c16_47], %46 {strides = array<i32>} : memref<36x256xf32, #tpu.memory_space<vmem>>, vector<4x16xf32>,
    %c0_48 = arith.constant 0 : index
    %c0_49 = arith.constant 0 : index
    %c2_50 = arith.constant 2 : index
    %c0_51 = arith.constant 0 : index
    %48 = vector.load %arg1[%c0_48, %c0_49, %c2_50, %c0_51] : memref<1x4x18x18xf32, #tpu.memory_space<vmem>>, vector<1x4x1x18xf32>
    %49 = vector.shape_cast %48 : vector<1x4x1x18xf32> to vector<4x18xf32>
    %50 = vector.extract_strided_slice %49 {offsets = [0, 0], sizes = [4, 16], strides = [1, 1]} : vector<4x18xf32> to vector<4x16xf32>
    %c0_52 = arith.constant 0 : index
    %c32_53 = arith.constant 32 : index
    %51 = vector.load %arg5[%c0_52, %c32_53] : memref<36x256xf32, #tpu.memory_space<vmem>>, vector<4x16xf32>
    tpu.vector_store %arg5[%c0_52, %c32_53], %50 {strides = array<i32>} : memref<36x256xf32, #tpu.memory_space<vmem>>, vector<4x16xf32>,
    %52 = vector.extract_strided_slice %49 {offsets = [0, 1], sizes = [4, 16], strides = [1, 1]} : vector<4x18xf32> to vector<4x16xf32>
    %c4_54 = arith.constant 4 : index
    %c32_55 = arith.constant 32 : index
    %53 = vector.load %arg5[%c4_54, %c32_55] : memref<36x256xf32, #tpu.memory_space<vmem>>, vector<4x16xf32>
    tpu.vector_store %arg5[%c4_54, %c32_55], %52 {strides = array<i32>} : memref<36x256xf32, #tpu.memory_space<vmem>>, vector<4x16xf32>,
    %54 = vector.extract_strided_slice %49 {offsets = [0, 2], sizes = [4, 16], strides = [1, 1]} : vector<4x18xf32> to vector<4x16xf32>
    %c8_56 = arith.constant 8 : index
    %c32_57 = arith.constant 32 : index
    %55 = vector.load %arg5[%c8_56, %c32_57] : memref<36x256xf32, #tpu.memory_space<vmem>>, vector<4x16xf32>
    tpu.vector_store %arg5[%c8_56, %c32_57], %54 {strides = array<i32>} : memref<36x256xf32, #tpu.memory_space<vmem>>, vector<4x16xf32>,
    %c0_58 = arith.constant 0 : index
    %c0_59 = arith.constant 0 : index
    %c3_60 = arith.constant 3 : index
    %c0_61 = arith.constant 0 : index
    %56 = vector.load %arg1[%c0_58, %c0_59, %c3_60, %c0_61] : memref<1x4x18x18xf32, #tpu.memory_space<vmem>>, vector<1x4x1x18xf32>
    %57 = vector.shape_cast %56 : vector<1x4x1x18xf32> to vector<4x18xf32>
    %58 = vector.extract_strided_slice %57 {offsets = [0, 0], sizes = [4, 16], strides = [1, 1]} : vector<4x18xf32> to vector<4x16xf32>
    %c12_62 = arith.constant 12 : index
    %c32_63 = arith.constant 32 : index
    %59 = vector.load %arg5[%c12_62, %c32_63] : memref<36x256xf32, #tpu.memory_space<vmem>>, vector<4x16xf32>
    tpu.vector_store %arg5[%c12_62, %c32_63], %58 {strides = array<i32>} : memref<36x256xf32, #tpu.memory_space<vmem>>, vector<4x16xf32>,
    %60 = vector.extract_strided_slice %57 {offsets = [0, 1], sizes = [4, 16], strides = [1, 1]} : vector<4x18xf32> to vector<4x16xf32>
    %c16_64 = arith.constant 16 : index
    %c32_65 = arith.constant 32 : index
    %61 = vector.load %arg5[%c16_64, %c32_65] : memref<36x256xf32, #tpu.memory_space<vmem>>, vector<4x16xf32>
    tpu.vector_store %arg5[%c16_64, %c32_65], %60 {strides = array<i32>} : memref<36x256xf32, #tpu.memory_space<vmem>>, vector<4x16xf32>,
    %62 = vector.extract_strided_slice %57 {offsets = [0, 2], sizes = [4, 16], strides = [1, 1]} : vector<4x18xf32> to vector<4x16xf32>
    %c20_66 = arith.constant 20 : index
    %c32_67 = arith.constant 32 : index
    %63 = vector.load %arg5[%c20_66, %c32_67] : memref<36x256xf32, #tpu.memory_space<vmem>>, vector<4x16xf32>
    tpu.vector_store %arg5[%c20_66, %c32_67], %62 {strides = array<i32>} : memref<36x256xf32, #tpu.memory_space<vmem>>, vector<4x16xf32>,
    %c0_68 = arith.constant 0 : index
    %c0_69 = arith.constant 0 : index
    %c4_70 = arith.constant 4 : index
    %c0_71 = arith.constant 0 : index
    %64 = vector.load %arg1[%c0_68, %c0_69, %c4_70, %c0_71] : memref<1x4x18x18xf32, #tpu.memory_space<vmem>>, vector<1x4x1x18xf32>
    %65 = vector.shape_cast %64 : vector<1x4x1x18xf32> to vector<4x18xf32>
    %66 = vector.extract_strided_slice %65 {offsets = [0, 0], sizes = [4, 16], strides = [1, 1]} : vector<4x18xf32> to vector<4x16xf32>
    %c24_72 = arith.constant 24 : index
    %c32_73 = arith.constant 32 : index
    %67 = vector.load %arg5[%c24_72, %c32_73] : memref<36x256xf32, #tpu.memory_space<vmem>>, vector<4x16xf32>
    tpu.vector_store %arg5[%c24_72, %c32_73], %66 {strides = array<i32>} : memref<36x256xf32, #tpu.memory_space<vmem>>, vector<4x16xf32>,
    %68 = vector.extract_strided_slice %65 {offsets = [0, 1], sizes = [4, 16], strides = [1, 1]} : vector<4x18xf32> to vector<4x16xf32>
    %c28_74 = arith.constant 28 : index
    %c32_75 = arith.constant 32 : index
    %69 = vector.load %arg5[%c28_74, %c32_75] : memref<36x256xf32, #tpu.memory_space<vmem>>, vector<4x16xf32>
    tpu.vector_store %arg5[%c28_74, %c32_75], %68 {strides = array<i32>} : memref<36x256xf32, #tpu.memory_space<vmem>>, vector<4x16xf32>,
    %70 = vector.extract_strided_slice %65 {offsets = [0, 2], sizes = [4, 16], strides = [1, 1]} : vector<4x18xf32> to vector<4x16xf32>
    %c32_76 = arith.constant 32 : index
    %c32_77 = arith.constant 32 : index
    %71 = vector.load %arg5[%c32_76, %c32_77] : memref<36x256xf32, #tpu.memory_space<vmem>>, vector<4x16xf32>
    tpu.vector_store %arg5[%c32_76, %c32_77], %70 {strides = array<i32>} : memref<36x256xf32, #tpu.memory_space<vmem>>, vector<4x16xf32>,
    %c0_78 = arith.constant 0 : index
    %c0_79 = arith.constant 0 : index
    %c3_80 = arith.constant 3 : index
    %c0_81 = arith.constant 0 : index
    %72 = vector.load %arg1[%c0_78, %c0_79, %c3_80, %c0_81] : memref<1x4x18x18xf32, #tpu.memory_space<vmem>>, vector<1x4x1x18xf32>
    %73 = vector.shape_cast %72 : vector<1x4x1x18xf32> to vector<4x18xf32>
    %74 = vector.extract_strided_slice %73 {offsets = [0, 0], sizes = [4, 16], strides = [1, 1]} : vector<4x18xf32> to vector<4x16xf32>
    %c0_82 = arith.constant 0 : index
    %c48 = arith.constant 48 : index
    %75 = vector.load %arg5[%c0_82, %c48] : memref<36x256xf32, #tpu.memory_space<vmem>>, vector<4x16xf32>
    tpu.vector_store %arg5[%c0_82, %c48], %74 {strides = array<i32>} : memref<36x256xf32, #tpu.memory_space<vmem>>, vector<4x16xf32>,
    %76 = vector.extract_strided_slice %73 {offsets = [0, 1], sizes = [4, 16], strides = [1, 1]} : vector<4x18xf32> to vector<4x16xf32>
    %c4_83 = arith.constant 4 : index
    %c48_84 = arith.constant 48 : index
    %77 = vector.load %arg5[%c4_83, %c48_84] : memref<36x256xf32, #tpu.memory_space<vmem>>, vector<4x16xf32>
    tpu.vector_store %arg5[%c4_83, %c48_84], %76 {strides = array<i32>} : memref<36x256xf32, #tpu.memory_space<vmem>>, vector<4x16xf32>,
    %78 = vector.extract_strided_slice %73 {offsets = [0, 2], sizes = [4, 16], strides = [1, 1]} : vector<4x18xf32> to vector<4x16xf32>
    %c8_85 = arith.constant 8 : index
    %c48_86 = arith.constant 48 : index
    %79 = vector.load %arg5[%c8_85, %c48_86] : memref<36x256xf32, #tpu.memory_space<vmem>>, vector<4x16xf32>
    tpu.vector_store %arg5[%c8_85, %c48_86], %78 {strides = array<i32>} : memref<36x256xf32, #tpu.memory_space<vmem>>, vector<4x16xf32>,
    %c0_87 = arith.constant 0 : index
    %c0_88 = arith.constant 0 : index
    %c4_89 = arith.constant 4 : index
    %c0_90 = arith.constant 0 : index
    %80 = vector.load %arg1[%c0_87, %c0_88, %c4_89, %c0_90] : memref<1x4x18x18xf32, #tpu.memory_space<vmem>>, vector<1x4x1x18xf32>
    %81 = vector.shape_cast %80 : vector<1x4x1x18xf32> to vector<4x18xf32>
    %82 = vector.extract_strided_slice %81 {offsets = [0, 0], sizes = [4, 16], strides = [1, 1]} : vector<4x18xf32> to vector<4x16xf32>
    %c12_91 = arith.constant 12 : index
    %c48_92 = arith.constant 48 : index
    %83 = vector.load %arg5[%c12_91, %c48_92] : memref<36x256xf32, #tpu.memory_space<vmem>>, vector<4x16xf32>
    tpu.vector_store %arg5[%c12_91, %c48_92], %82 {strides = array<i32>} : memref<36x256xf32, #tpu.memory_space<vmem>>, vector<4x16xf32>,
    %84 = vector.extract_strided_slice %81 {offsets = [0, 1], sizes = [4, 16], strides = [1, 1]} : vector<4x18xf32> to vector<4x16xf32>
    %c16_93 = arith.constant 16 : index
    %c48_94 = arith.constant 48 : index
    %85 = vector.load %arg5[%c16_93, %c48_94] : memref<36x256xf32, #tpu.memory_space<vmem>>, vector<4x16xf32>
    tpu.vector_store %arg5[%c16_93, %c48_94], %84 {strides = array<i32>} : memref<36x256xf32, #tpu.memory_space<vmem>>, vector<4x16xf32>,
    %86 = vector.extract_strided_slice %81 {offsets = [0, 2], sizes = [4, 16], strides = [1, 1]} : vector<4x18xf32> to vector<4x16xf32>
    %c20_95 = arith.constant 20 : index
    %c48_96 = arith.constant 48 : index
    %87 = vector.load %arg5[%c20_95, %c48_96] : memref<36x256xf32, #tpu.memory_space<vmem>>, vector<4x16xf32>
    tpu.vector_store %arg5[%c20_95, %c48_96], %86 {strides = array<i32>} : memref<36x256xf32, #tpu.memory_space<vmem>>, vector<4x16xf32>,
    %c0_97 = arith.constant 0 : index
    %c0_98 = arith.constant 0 : index
    %c5 = arith.constant 5 : index
    %c0_99 = arith.constant 0 : index
    %88 = vector.load %arg1[%c0_97, %c0_98, %c5, %c0_99] : memref<1x4x18x18xf32, #tpu.memory_space<vmem>>, vector<1x4x1x18xf32>
    %89 = vector.shape_cast %88 : vector<1x4x1x18xf32> to vector<4x18xf32>
    %90 = vector.extract_strided_slice %89 {offsets = [0, 0], sizes = [4, 16], strides = [1, 1]} : vector<4x18xf32> to vector<4x16xf32>
    %c24_100 = arith.constant 24 : index
    %c48_101 = arith.constant 48 : index
    %91 = vector.load %arg5[%c24_100, %c48_101] : memref<36x256xf32, #tpu.memory_space<vmem>>, vector<4x16xf32>
    tpu.vector_store %arg5[%c24_100, %c48_101], %90 {strides = array<i32>} : memref<36x256xf32, #tpu.memory_space<vmem>>, vector<4x16xf32>,
    %92 = vector.extract_strided_slice %89 {offsets = [0, 1], sizes = [4, 16], strides = [1, 1]} : vector<4x18xf32> to vector<4x16xf32>
    %c28_102 = arith.constant 28 : index
    %c48_103 = arith.constant 48 : index
    %93 = vector.load %arg5[%c28_102, %c48_103] : memref<36x256xf32, #tpu.memory_space<vmem>>, vector<4x16xf32>
    tpu.vector_store %arg5[%c28_102, %c48_103], %92 {strides = array<i32>} : memref<36x256xf32, #tpu.memory_space<vmem>>, vector<4x16xf32>,
    %94 = vector.extract_strided_slice %89 {offsets = [0, 2], sizes = [4, 16], strides = [1, 1]} : vector<4x18xf32> to vector<4x16xf32>
    %c32_104 = arith.constant 32 : index
    %c48_105 = arith.constant 48 : index
    %95 = vector.load %arg5[%c32_104, %c48_105] : memref<36x256xf32, #tpu.memory_space<vmem>>, vector<4x16xf32>
    tpu.vector_store %arg5[%c32_104, %c48_105], %94 {strides = array<i32>} : memref<36x256xf32, #tpu.memory_space<vmem>>, vector<4x16xf32>,
    %c0_106 = arith.constant 0 : index
    %c0_107 = arith.constant 0 : index
    %c4_108 = arith.constant 4 : index
    %c0_109 = arith.constant 0 : index
    %96 = vector.load %arg1[%c0_106, %c0_107, %c4_108, %c0_109] : memref<1x4x18x18xf32, #tpu.memory_space<vmem>>, vector<1x4x1x18xf32>
    %97 = vector.shape_cast %96 : vector<1x4x1x18xf32> to vector<4x18xf32>
    %98 = vector.extract_strided_slice %97 {offsets = [0, 0], sizes = [4, 16], strides = [1, 1]} : vector<4x18xf32> to vector<4x16xf32>
    %c0_110 = arith.constant 0 : index
    %c64 = arith.constant 64 : index
    %99 = vector.load %arg5[%c0_110, %c64] : memref<36x256xf32, #tpu.memory_space<vmem>>, vector<4x16xf32>
    tpu.vector_store %arg5[%c0_110, %c64], %98 {strides = array<i32>} : memref<36x256xf32, #tpu.memory_space<vmem>>, vector<4x16xf32>,
    %100 = vector.extract_strided_slice %97 {offsets = [0, 1], sizes = [4, 16], strides = [1, 1]} : vector<4x18xf32> to vector<4x16xf32>
    %c4_111 = arith.constant 4 : index
    %c64_112 = arith.constant 64 : index
    %101 = vector.load %arg5[%c4_111, %c64_112] : memref<36x256xf32, #tpu.memory_space<vmem>>, vector<4x16xf32>
    tpu.vector_store %arg5[%c4_111, %c64_112], %100 {strides = array<i32>} : memref<36x256xf32, #tpu.memory_space<vmem>>, vector<4x16xf32>,
    %102 = vector.extract_strided_slice %97 {offsets = [0, 2], sizes = [4, 16], strides = [1, 1]} : vector<4x18xf32> to vector<4x16xf32>
    %c8_113 = arith.constant 8 : index
    %c64_114 = arith.constant 64 : index
    %103 = vector.load %arg5[%c8_113, %c64_114] : memref<36x256xf32, #tpu.memory_space<vmem>>, vector<4x16xf32>
    tpu.vector_store %arg5[%c8_113, %c64_114], %102 {strides = array<i32>} : memref<36x256xf32, #tpu.memory_space<vmem>>, vector<4x16xf32>,
    %c0_115 = arith.constant 0 : index
    %c0_116 = arith.constant 0 : index
    %c5_117 = arith.constant 5 : index
    %c0_118 = arith.constant 0 : index
    %104 = vector.load %arg1[%c0_115, %c0_116, %c5_117, %c0_118] : memref<1x4x18x18xf32, #tpu.memory_space<vmem>>, vector<1x4x1x18xf32>
    %105 = vector.shape_cast %104 : vector<1x4x1x18xf32> to vector<4x18xf32>
    %106 = vector.extract_strided_slice %105 {offsets = [0, 0], sizes = [4, 16], strides = [1, 1]} : vector<4x18xf32> to vector<4x16xf32>
    %c12_119 = arith.constant 12 : index
    %c64_120 = arith.constant 64 : index
    %107 = vector.load %arg5[%c12_119, %c64_120] : memref<36x256xf32, #tpu.memory_space<vmem>>, vector<4x16xf32>
    tpu.vector_store %arg5[%c12_119, %c64_120], %106 {strides = array<i32>} : memref<36x256xf32, #tpu.memory_space<vmem>>, vector<4x16xf32>,
    %108 = vector.extract_strided_slice %105 {offsets = [0, 1], sizes = [4, 16], strides = [1, 1]} : vector<4x18xf32> to vector<4x16xf32>
    %c16_121 = arith.constant 16 : index
    %c64_122 = arith.constant 64 : index
    %109 = vector.load %arg5[%c16_121, %c64_122] : memref<36x256xf32, #tpu.memory_space<vmem>>, vector<4x16xf32>
    tpu.vector_store %arg5[%c16_121, %c64_122], %108 {strides = array<i32>} : memref<36x256xf32, #tpu.memory_space<vmem>>, vector<4x16xf32>,
    %110 = vector.extract_strided_slice %105 {offsets = [0, 2], sizes = [4, 16], strides = [1, 1]} : vector<4x18xf32> to vector<4x16xf32>
    %c20_123 = arith.constant 20 : index
    %c64_124 = arith.constant 64 : index
    %111 = vector.load %arg5[%c20_123, %c64_124] : memref<36x256xf32, #tpu.memory_space<vmem>>, vector<4x16xf32>
    tpu.vector_store %arg5[%c20_123, %c64_124], %110 {strides = array<i32>} : memref<36x256xf32, #tpu.memory_space<vmem>>, vector<4x16xf32>,
    %c0_125 = arith.constant 0 : index
    %c0_126 = arith.constant 0 : index
    %c6 = arith.constant 6 : index
    %c0_127 = arith.constant 0 : index
    %112 = vector.load %arg1[%c0_125, %c0_126, %c6, %c0_127] : memref<1x4x18x18xf32, #tpu.memory_space<vmem>>, vector<1x4x1x18xf32>
    %113 = vector.shape_cast %112 : vector<1x4x1x18xf32> to vector<4x18xf32>
    %114 = vector.extract_strided_slice %113 {offsets = [0, 0], sizes = [4, 16], strides = [1, 1]} : vector<4x18xf32> to vector<4x16xf32>
    %c24_128 = arith.constant 24 : index
    %c64_129 = arith.constant 64 : index
    %115 = vector.load %arg5[%c24_128, %c64_129] : memref<36x256xf32, #tpu.memory_space<vmem>>, vector<4x16xf32>
    tpu.vector_store %arg5[%c24_128, %c64_129], %114 {strides = array<i32>} : memref<36x256xf32, #tpu.memory_space<vmem>>, vector<4x16xf32>,
    %116 = vector.extract_strided_slice %113 {offsets = [0, 1], sizes = [4, 16], strides = [1, 1]} : vector<4x18xf32> to vector<4x16xf32>
    %c28_130 = arith.constant 28 : index
    %c64_131 = arith.constant 64 : index
    %117 = vector.load %arg5[%c28_130, %c64_131] : memref<36x256xf32, #tpu.memory_space<vmem>>, vector<4x16xf32>
    tpu.vector_store %arg5[%c28_130, %c64_131], %116 {strides = array<i32>} : memref<36x256xf32, #tpu.memory_space<vmem>>, vector<4x16xf32>,
    %118 = vector.extract_strided_slice %113 {offsets = [0, 2], sizes = [4, 16], strides = [1, 1]} : vector<4x18xf32> to vector<4x16xf32>
    %c32_132 = arith.constant 32 : index
    %c64_133 = arith.constant 64 : index
    %119 = vector.load %arg5[%c32_132, %c64_133] : memref<36x256xf32, #tpu.memory_space<vmem>>, vector<4x16xf32>
    tpu.vector_store %arg5[%c32_132, %c64_133], %118 {strides = array<i32>} : memref<36x256xf32, #tpu.memory_space<vmem>>, vector<4x16xf32>,
    %c0_134 = arith.constant 0 : index
    %c0_135 = arith.constant 0 : index
    %c5_136 = arith.constant 5 : index
    %c0_137 = arith.constant 0 : index
    %120 = vector.load %arg1[%c0_134, %c0_135, %c5_136, %c0_137] : memref<1x4x18x18xf32, #tpu.memory_space<vmem>>, vector<1x4x1x18xf32>
    %121 = vector.shape_cast %120 : vector<1x4x1x18xf32> to vector<4x18xf32>
    %122 = vector.extract_strided_slice %121 {offsets = [0, 0], sizes = [4, 16], strides = [1, 1]} : vector<4x18xf32> to vector<4x16xf32>
    %c0_138 = arith.constant 0 : index
    %c80 = arith.constant 80 : index
    %123 = vector.load %arg5[%c0_138, %c80] : memref<36x256xf32, #tpu.memory_space<vmem>>, vector<4x16xf32>
    tpu.vector_store %arg5[%c0_138, %c80], %122 {strides = array<i32>} : memref<36x256xf32, #tpu.memory_space<vmem>>, vector<4x16xf32>,
    %124 = vector.extract_strided_slice %121 {offsets = [0, 1], sizes = [4, 16], strides = [1, 1]} : vector<4x18xf32> to vector<4x16xf32>
    %c4_139 = arith.constant 4 : index
    %c80_140 = arith.constant 80 : index
    %125 = vector.load %arg5[%c4_139, %c80_140] : memref<36x256xf32, #tpu.memory_space<vmem>>, vector<4x16xf32>
    tpu.vector_store %arg5[%c4_139, %c80_140], %124 {strides = array<i32>} : memref<36x256xf32, #tpu.memory_space<vmem>>, vector<4x16xf32>,
    %126 = vector.extract_strided_slice %121 {offsets = [0, 2], sizes = [4, 16], strides = [1, 1]} : vector<4x18xf32> to vector<4x16xf32>
    %c8_141 = arith.constant 8 : index
    %c80_142 = arith.constant 80 : index
    %127 = vector.load %arg5[%c8_141, %c80_142] : memref<36x256xf32, #tpu.memory_space<vmem>>, vector<4x16xf32>
    tpu.vector_store %arg5[%c8_141, %c80_142], %126 {strides = array<i32>} : memref<36x256xf32, #tpu.memory_space<vmem>>, vector<4x16xf32>,
    %c0_143 = arith.constant 0 : index
    %c0_144 = arith.constant 0 : index
    %c6_145 = arith.constant 6 : index
    %c0_146 = arith.constant 0 : index
    %128 = vector.load %arg1[%c0_143, %c0_144, %c6_145, %c0_146] : memref<1x4x18x18xf32, #tpu.memory_space<vmem>>, vector<1x4x1x18xf32>
    %129 = vector.shape_cast %128 : vector<1x4x1x18xf32> to vector<4x18xf32>
    %130 = vector.extract_strided_slice %129 {offsets = [0, 0], sizes = [4, 16], strides = [1, 1]} : vector<4x18xf32> to vector<4x16xf32>
    %c12_147 = arith.constant 12 : index
    %c80_148 = arith.constant 80 : index
    %131 = vector.load %arg5[%c12_147, %c80_148] : memref<36x256xf32, #tpu.memory_space<vmem>>, vector<4x16xf32>
    tpu.vector_store %arg5[%c12_147, %c80_148], %130 {strides = array<i32>} : memref<36x256xf32, #tpu.memory_space<vmem>>, vector<4x16xf32>,
    %132 = vector.extract_strided_slice %129 {offsets = [0, 1], sizes = [4, 16], strides = [1, 1]} : vector<4x18xf32> to vector<4x16xf32>
    %c16_149 = arith.constant 16 : index
    %c80_150 = arith.constant 80 : index
    %133 = vector.load %arg5[%c16_149, %c80_150] : memref<36x256xf32, #tpu.memory_space<vmem>>, vector<4x16xf32>
    tpu.vector_store %arg5[%c16_149, %c80_150], %132 {strides = array<i32>} : memref<36x256xf32, #tpu.memory_space<vmem>>, vector<4x16xf32>,
    %134 = vector.extract_strided_slice %129 {offsets = [0, 2], sizes = [4, 16], strides = [1, 1]} : vector<4x18xf32> to vector<4x16xf32>
    %c20_151 = arith.constant 20 : index
    %c80_152 = arith.constant 80 : index
    %135 = vector.load %arg5[%c20_151, %c80_152] : memref<36x256xf32, #tpu.memory_space<vmem>>, vector<4x16xf32>
    tpu.vector_store %arg5[%c20_151, %c80_152], %134 {strides = array<i32>} : memref<36x256xf32, #tpu.memory_space<vmem>>, vector<4x16xf32>,
    %c0_153 = arith.constant 0 : index
    %c0_154 = arith.constant 0 : index
    %c7 = arith.constant 7 : index
    %c0_155 = arith.constant 0 : index
    %136 = vector.load %arg1[%c0_153, %c0_154, %c7, %c0_155] : memref<1x4x18x18xf32, #tpu.memory_space<vmem>>, vector<1x4x1x18xf32>
    %137 = vector.shape_cast %136 : vector<1x4x1x18xf32> to vector<4x18xf32>
    %138 = vector.extract_strided_slice %137 {offsets = [0, 0], sizes = [4, 16], strides = [1, 1]} : vector<4x18xf32> to vector<4x16xf32>
    %c24_156 = arith.constant 24 : index
    %c80_157 = arith.constant 80 : index
    %139 = vector.load %arg5[%c24_156, %c80_157] : memref<36x256xf32, #tpu.memory_space<vmem>>, vector<4x16xf32>
    tpu.vector_store %arg5[%c24_156, %c80_157], %138 {strides = array<i32>} : memref<36x256xf32, #tpu.memory_space<vmem>>, vector<4x16xf32>,
    %140 = vector.extract_strided_slice %137 {offsets = [0, 1], sizes = [4, 16], strides = [1, 1]} : vector<4x18xf32> to vector<4x16xf32>
    %c28_158 = arith.constant 28 : index
    %c80_159 = arith.constant 80 : index
    %141 = vector.load %arg5[%c28_158, %c80_159] : memref<36x256xf32, #tpu.memory_space<vmem>>, vector<4x16xf32>
    tpu.vector_store %arg5[%c28_158, %c80_159], %140 {strides = array<i32>} : memref<36x256xf32, #tpu.memory_space<vmem>>, vector<4x16xf32>,
    %142 = vector.extract_strided_slice %137 {offsets = [0, 2], sizes = [4, 16], strides = [1, 1]} : vector<4x18xf32> to vector<4x16xf32>
    %c32_160 = arith.constant 32 : index
    %c80_161 = arith.constant 80 : index
    %143 = vector.load %arg5[%c32_160, %c80_161] : memref<36x256xf32, #tpu.memory_space<vmem>>, vector<4x16xf32>
    tpu.vector_store %arg5[%c32_160, %c80_161], %142 {strides = array<i32>} : memref<36x256xf32, #tpu.memory_space<vmem>>, vector<4x16xf32>,
    %c0_162 = arith.constant 0 : index
    %c0_163 = arith.constant 0 : index
    %c6_164 = arith.constant 6 : index
    %c0_165 = arith.constant 0 : index
    %144 = vector.load %arg1[%c0_162, %c0_163, %c6_164, %c0_165] : memref<1x4x18x18xf32, #tpu.memory_space<vmem>>, vector<1x4x1x18xf32>
    %145 = vector.shape_cast %144 : vector<1x4x1x18xf32> to vector<4x18xf32>
    %146 = vector.extract_strided_slice %145 {offsets = [0, 0], sizes = [4, 16], strides = [1, 1]} : vector<4x18xf32> to vector<4x16xf32>
    %c0_166 = arith.constant 0 : index
    %c96 = arith.constant 96 : index
    %147 = vector.load %arg5[%c0_166, %c96] : memref<36x256xf32, #tpu.memory_space<vmem>>, vector<4x16xf32>
    tpu.vector_store %arg5[%c0_166, %c96], %146 {strides = array<i32>} : memref<36x256xf32, #tpu.memory_space<vmem>>, vector<4x16xf32>,
    %148 = vector.extract_strided_slice %145 {offsets = [0, 1], sizes = [4, 16], strides = [1, 1]} : vector<4x18xf32> to vector<4x16xf32>
    %c4_167 = arith.constant 4 : index
    %c96_168 = arith.constant 96 : index
    %149 = vector.load %arg5[%c4_167, %c96_168] : memref<36x256xf32, #tpu.memory_space<vmem>>, vector<4x16xf32>
    tpu.vector_store %arg5[%c4_167, %c96_168], %148 {strides = array<i32>} : memref<36x256xf32, #tpu.memory_space<vmem>>, vector<4x16xf32>,
    %150 = vector.extract_strided_slice %145 {offsets = [0, 2], sizes = [4, 16], strides = [1, 1]} : vector<4x18xf32> to vector<4x16xf32>
    %c8_169 = arith.constant 8 : index
    %c96_170 = arith.constant 96 : index
    %151 = vector.load %arg5[%c8_169, %c96_170] : memref<36x256xf32, #tpu.memory_space<vmem>>, vector<4x16xf32>
    tpu.vector_store %arg5[%c8_169, %c96_170], %150 {strides = array<i32>} : memref<36x256xf32, #tpu.memory_space<vmem>>, vector<4x16xf32>,
    %c0_171 = arith.constant 0 : index
    %c0_172 = arith.constant 0 : index
    %c7_173 = arith.constant 7 : index
    %c0_174 = arith.constant 0 : index
    %152 = vector.load %arg1[%c0_171, %c0_172, %c7_173, %c0_174] : memref<1x4x18x18xf32, #tpu.memory_space<vmem>>, vector<1x4x1x18xf32>
    %153 = vector.shape_cast %152 : vector<1x4x1x18xf32> to vector<4x18xf32>
    %154 = vector.extract_strided_slice %153 {offsets = [0, 0], sizes = [4, 16], strides = [1, 1]} : vector<4x18xf32> to vector<4x16xf32>
    %c12_175 = arith.constant 12 : index
    %c96_176 = arith.constant 96 : index
    %155 = vector.load %arg5[%c12_175, %c96_176] : memref<36x256xf32, #tpu.memory_space<vmem>>, vector<4x16xf32>
    tpu.vector_store %arg5[%c12_175, %c96_176], %154 {strides = array<i32>} : memref<36x256xf32, #tpu.memory_space<vmem>>, vector<4x16xf32>,
    %156 = vector.extract_strided_slice %153 {offsets = [0, 1], sizes = [4, 16], strides = [1, 1]} : vector<4x18xf32> to vector<4x16xf32>
    %c16_177 = arith.constant 16 : index
    %c96_178 = arith.constant 96 : index
    %157 = vector.load %arg5[%c16_177, %c96_178] : memref<36x256xf32, #tpu.memory_space<vmem>>, vector<4x16xf32>
    tpu.vector_store %arg5[%c16_177, %c96_178], %156 {strides = array<i32>} : memref<36x256xf32, #tpu.memory_space<vmem>>, vector<4x16xf32>,
    %158 = vector.extract_strided_slice %153 {offsets = [0, 2], sizes = [4, 16], strides = [1, 1]} : vector<4x18xf32> to vector<4x16xf32>
    %c20_179 = arith.constant 20 : index
    %c96_180 = arith.constant 96 : index
    %159 = vector.load %arg5[%c20_179, %c96_180] : memref<36x256xf32, #tpu.memory_space<vmem>>, vector<4x16xf32>
    tpu.vector_store %arg5[%c20_179, %c96_180], %158 {strides = array<i32>} : memref<36x256xf32, #tpu.memory_space<vmem>>, vector<4x16xf32>,
    %c0_181 = arith.constant 0 : index
    %c0_182 = arith.constant 0 : index
    %c8_183 = arith.constant 8 : index
    %c0_184 = arith.constant 0 : index
    %160 = vector.load %arg1[%c0_181, %c0_182, %c8_183, %c0_184] : memref<1x4x18x18xf32, #tpu.memory_space<vmem>>, vector<1x4x1x18xf32>
    %161 = vector.shape_cast %160 : vector<1x4x1x18xf32> to vector<4x18xf32>
    %162 = vector.extract_strided_slice %161 {offsets = [0, 0], sizes = [4, 16], strides = [1, 1]} : vector<4x18xf32> to vector<4x16xf32>
    %c24_185 = arith.constant 24 : index
    %c96_186 = arith.constant 96 : index
    %163 = vector.load %arg5[%c24_185, %c96_186] : memref<36x256xf32, #tpu.memory_space<vmem>>, vector<4x16xf32>
    tpu.vector_store %arg5[%c24_185, %c96_186], %162 {strides = array<i32>} : memref<36x256xf32, #tpu.memory_space<vmem>>, vector<4x16xf32>,
    %164 = vector.extract_strided_slice %161 {offsets = [0, 1], sizes = [4, 16], strides = [1, 1]} : vector<4x18xf32> to vector<4x16xf32>
    %c28_187 = arith.constant 28 : index
    %c96_188 = arith.constant 96 : index
    %165 = vector.load %arg5[%c28_187, %c96_188] : memref<36x256xf32, #tpu.memory_space<vmem>>, vector<4x16xf32>
    tpu.vector_store %arg5[%c28_187, %c96_188], %164 {strides = array<i32>} : memref<36x256xf32, #tpu.memory_space<vmem>>, vector<4x16xf32>,
    %166 = vector.extract_strided_slice %161 {offsets = [0, 2], sizes = [4, 16], strides = [1, 1]} : vector<4x18xf32> to vector<4x16xf32>
    %c32_189 = arith.constant 32 : index
    %c96_190 = arith.constant 96 : index
    %167 = vector.load %arg5[%c32_189, %c96_190] : memref<36x256xf32, #tpu.memory_space<vmem>>, vector<4x16xf32>
    tpu.vector_store %arg5[%c32_189, %c96_190], %166 {strides = array<i32>} : memref<36x256xf32, #tpu.memory_space<vmem>>, vector<4x16xf32>,
    %c0_191 = arith.constant 0 : index
    %c0_192 = arith.constant 0 : index
    %c7_193 = arith.constant 7 : index
    %c0_194 = arith.constant 0 : index
    %168 = vector.load %arg1[%c0_191, %c0_192, %c7_193, %c0_194] : memref<1x4x18x18xf32, #tpu.memory_space<vmem>>, vector<1x4x1x18xf32>
    %169 = vector.shape_cast %168 : vector<1x4x1x18xf32> to vector<4x18xf32>
    %170 = vector.extract_strided_slice %169 {offsets = [0, 0], sizes = [4, 16], strides = [1, 1]} : vector<4x18xf32> to vector<4x16xf32>
    %c0_195 = arith.constant 0 : index
    %c112 = arith.constant 112 : index
    %171 = vector.load %arg5[%c0_195, %c112] : memref<36x256xf32, #tpu.memory_space<vmem>>, vector<4x16xf32>
    tpu.vector_store %arg5[%c0_195, %c112], %170 {strides = array<i32>} : memref<36x256xf32, #tpu.memory_space<vmem>>, vector<4x16xf32>,
    %172 = vector.extract_strided_slice %169 {offsets = [0, 1], sizes = [4, 16], strides = [1, 1]} : vector<4x18xf32> to vector<4x16xf32>
    %c4_196 = arith.constant 4 : index
    %c112_197 = arith.constant 112 : index
    %173 = vector.load %arg5[%c4_196, %c112_197] : memref<36x256xf32, #tpu.memory_space<vmem>>, vector<4x16xf32>
    tpu.vector_store %arg5[%c4_196, %c112_197], %172 {strides = array<i32>} : memref<36x256xf32, #tpu.memory_space<vmem>>, vector<4x16xf32>,
    %174 = vector.extract_strided_slice %169 {offsets = [0, 2], sizes = [4, 16], strides = [1, 1]} : vector<4x18xf32> to vector<4x16xf32>
    %c8_198 = arith.constant 8 : index
    %c112_199 = arith.constant 112 : index
    %175 = vector.load %arg5[%c8_198, %c112_199] : memref<36x256xf32, #tpu.memory_space<vmem>>, vector<4x16xf32>
    tpu.vector_store %arg5[%c8_198, %c112_199], %174 {strides = array<i32>} : memref<36x256xf32, #tpu.memory_space<vmem>>, vector<4x16xf32>,
    %c0_200 = arith.constant 0 : index
    %c0_201 = arith.constant 0 : index
    %c8_202 = arith.constant 8 : index
    %c0_203 = arith.constant 0 : index
    %176 = vector.load %arg1[%c0_200, %c0_201, %c8_202, %c0_203] : memref<1x4x18x18xf32, #tpu.memory_space<vmem>>, vector<1x4x1x18xf32>
    %177 = vector.shape_cast %176 : vector<1x4x1x18xf32> to vector<4x18xf32>
    %178 = vector.extract_strided_slice %177 {offsets = [0, 0], sizes = [4, 16], strides = [1, 1]} : vector<4x18xf32> to vector<4x16xf32>
    %c12_204 = arith.constant 12 : index
    %c112_205 = arith.constant 112 : index
    %179 = vector.load %arg5[%c12_204, %c112_205] : memref<36x256xf32, #tpu.memory_space<vmem>>, vector<4x16xf32>
    tpu.vector_store %arg5[%c12_204, %c112_205], %178 {strides = array<i32>} : memref<36x256xf32, #tpu.memory_space<vmem>>, vector<4x16xf32>,
    %180 = vector.extract_strided_slice %177 {offsets = [0, 1], sizes = [4, 16], strides = [1, 1]} : vector<4x18xf32> to vector<4x16xf32>
    %c16_206 = arith.constant 16 : index
    %c112_207 = arith.constant 112 : index
    %181 = vector.load %arg5[%c16_206, %c112_207] : memref<36x256xf32, #tpu.memory_space<vmem>>, vector<4x16xf32>
    tpu.vector_store %arg5[%c16_206, %c112_207], %180 {strides = array<i32>} : memref<36x256xf32, #tpu.memory_space<vmem>>, vector<4x16xf32>,
    %182 = vector.extract_strided_slice %177 {offsets = [0, 2], sizes = [4, 16], strides = [1, 1]} : vector<4x18xf32> to vector<4x16xf32>
    %c20_208 = arith.constant 20 : index
    %c112_209 = arith.constant 112 : index
    %183 = vector.load %arg5[%c20_208, %c112_209] : memref<36x256xf32, #tpu.memory_space<vmem>>, vector<4x16xf32>
    tpu.vector_store %arg5[%c20_208, %c112_209], %182 {strides = array<i32>} : memref<36x256xf32, #tpu.memory_space<vmem>>, vector<4x16xf32>,
    %c0_210 = arith.constant 0 : index
    %c0_211 = arith.constant 0 : index
    %c9 = arith.constant 9 : index
    %c0_212 = arith.constant 0 : index
    %184 = vector.load %arg1[%c0_210, %c0_211, %c9, %c0_212] : memref<1x4x18x18xf32, #tpu.memory_space<vmem>>, vector<1x4x1x18xf32>
    %185 = vector.shape_cast %184 : vector<1x4x1x18xf32> to vector<4x18xf32>
    %186 = vector.extract_strided_slice %185 {offsets = [0, 0], sizes = [4, 16], strides = [1, 1]} : vector<4x18xf32> to vector<4x16xf32>
    %c24_213 = arith.constant 24 : index
    %c112_214 = arith.constant 112 : index
    %187 = vector.load %arg5[%c24_213, %c112_214] : memref<36x256xf32, #tpu.memory_space<vmem>>, vector<4x16xf32>
    tpu.vector_store %arg5[%c24_213, %c112_214], %186 {strides = array<i32>} : memref<36x256xf32, #tpu.memory_space<vmem>>, vector<4x16xf32>,
    %188 = vector.extract_strided_slice %185 {offsets = [0, 1], sizes = [4, 16], strides = [1, 1]} : vector<4x18xf32> to vector<4x16xf32>
    %c28_215 = arith.constant 28 : index
    %c112_216 = arith.constant 112 : index
    %189 = vector.load %arg5[%c28_215, %c112_216] : memref<36x256xf32, #tpu.memory_space<vmem>>, vector<4x16xf32>
    tpu.vector_store %arg5[%c28_215, %c112_216], %188 {strides = array<i32>} : memref<36x256xf32, #tpu.memory_space<vmem>>, vector<4x16xf32>,
    %190 = vector.extract_strided_slice %185 {offsets = [0, 2], sizes = [4, 16], strides = [1, 1]} : vector<4x18xf32> to vector<4x16xf32>
    %c32_217 = arith.constant 32 : index
    %c112_218 = arith.constant 112 : index
    %191 = vector.load %arg5[%c32_217, %c112_218] : memref<36x256xf32, #tpu.memory_space<vmem>>, vector<4x16xf32>
    tpu.vector_store %arg5[%c32_217, %c112_218], %190 {strides = array<i32>} : memref<36x256xf32, #tpu.memory_space<vmem>>, vector<4x16xf32>,
    %c0_219 = arith.constant 0 : index
    %c0_220 = arith.constant 0 : index
    %c8_221 = arith.constant 8 : index
    %c0_222 = arith.constant 0 : index
    %192 = vector.load %arg1[%c0_219, %c0_220, %c8_221, %c0_222] : memref<1x4x18x18xf32, #tpu.memory_space<vmem>>, vector<1x4x1x18xf32>
    %193 = vector.shape_cast %192 : vector<1x4x1x18xf32> to vector<4x18xf32>
    %194 = vector.extract_strided_slice %193 {offsets = [0, 0], sizes = [4, 16], strides = [1, 1]} : vector<4x18xf32> to vector<4x16xf32>
    %c0_223 = arith.constant 0 : index
    %c128 = arith.constant 128 : index
    %195 = vector.load %arg5[%c0_223, %c128] : memref<36x256xf32, #tpu.memory_space<vmem>>, vector<4x16xf32>
    tpu.vector_store %arg5[%c0_223, %c128], %194 {strides = array<i32>} : memref<36x256xf32, #tpu.memory_space<vmem>>, vector<4x16xf32>,
    %196 = vector.extract_strided_slice %193 {offsets = [0, 1], sizes = [4, 16], strides = [1, 1]} : vector<4x18xf32> to vector<4x16xf32>
    %c4_224 = arith.constant 4 : index
    %c128_225 = arith.constant 128 : index
    %197 = vector.load %arg5[%c4_224, %c128_225] : memref<36x256xf32, #tpu.memory_space<vmem>>, vector<4x16xf32>
    tpu.vector_store %arg5[%c4_224, %c128_225], %196 {strides = array<i32>} : memref<36x256xf32, #tpu.memory_space<vmem>>, vector<4x16xf32>,
    %198 = vector.extract_strided_slice %193 {offsets = [0, 2], sizes = [4, 16], strides = [1, 1]} : vector<4x18xf32> to vector<4x16xf32>
    %c8_226 = arith.constant 8 : index
    %c128_227 = arith.constant 128 : index
    %199 = vector.load %arg5[%c8_226, %c128_227] : memref<36x256xf32, #tpu.memory_space<vmem>>, vector<4x16xf32>
    tpu.vector_store %arg5[%c8_226, %c128_227], %198 {strides = array<i32>} : memref<36x256xf32, #tpu.memory_space<vmem>>, vector<4x16xf32>,
    %c0_228 = arith.constant 0 : index
    %c0_229 = arith.constant 0 : index
    %c9_230 = arith.constant 9 : index
    %c0_231 = arith.constant 0 : index
    %200 = vector.load %arg1[%c0_228, %c0_229, %c9_230, %c0_231] : memref<1x4x18x18xf32, #tpu.memory_space<vmem>>, vector<1x4x1x18xf32>
    %201 = vector.shape_cast %200 : vector<1x4x1x18xf32> to vector<4x18xf32>
    %202 = vector.extract_strided_slice %201 {offsets = [0, 0], sizes = [4, 16], strides = [1, 1]} : vector<4x18xf32> to vector<4x16xf32>
    %c12_232 = arith.constant 12 : index
    %c128_233 = arith.constant 128 : index
    %203 = vector.load %arg5[%c12_232, %c128_233] : memref<36x256xf32, #tpu.memory_space<vmem>>, vector<4x16xf32>
    tpu.vector_store %arg5[%c12_232, %c128_233], %202 {strides = array<i32>} : memref<36x256xf32, #tpu.memory_space<vmem>>, vector<4x16xf32>,
    %204 = vector.extract_strided_slice %201 {offsets = [0, 1], sizes = [4, 16], strides = [1, 1]} : vector<4x18xf32> to vector<4x16xf32>
    %c16_234 = arith.constant 16 : index
    %c128_235 = arith.constant 128 : index
    %205 = vector.load %arg5[%c16_234, %c128_235] : memref<36x256xf32, #tpu.memory_space<vmem>>, vector<4x16xf32>
    tpu.vector_store %arg5[%c16_234, %c128_235], %204 {strides = array<i32>} : memref<36x256xf32, #tpu.memory_space<vmem>>, vector<4x16xf32>,
    %206 = vector.extract_strided_slice %201 {offsets = [0, 2], sizes = [4, 16], strides = [1, 1]} : vector<4x18xf32> to vector<4x16xf32>
    %c20_236 = arith.constant 20 : index
    %c128_237 = arith.constant 128 : index
    %207 = vector.load %arg5[%c20_236, %c128_237] : memref<36x256xf32, #tpu.memory_space<vmem>>, vector<4x16xf32>
    tpu.vector_store %arg5[%c20_236, %c128_237], %206 {strides = array<i32>} : memref<36x256xf32, #tpu.memory_space<vmem>>, vector<4x16xf32>,
    %c0_238 = arith.constant 0 : index
    %c0_239 = arith.constant 0 : index
    %c10 = arith.constant 10 : index
    %c0_240 = arith.constant 0 : index
    %208 = vector.load %arg1[%c0_238, %c0_239, %c10, %c0_240] : memref<1x4x18x18xf32, #tpu.memory_space<vmem>>, vector<1x4x1x18xf32>
    %209 = vector.shape_cast %208 : vector<1x4x1x18xf32> to vector<4x18xf32>
    %210 = vector.extract_strided_slice %209 {offsets = [0, 0], sizes = [4, 16], strides = [1, 1]} : vector<4x18xf32> to vector<4x16xf32>
    %c24_241 = arith.constant 24 : index
    %c128_242 = arith.constant 128 : index
    %211 = vector.load %arg5[%c24_241, %c128_242] : memref<36x256xf32, #tpu.memory_space<vmem>>, vector<4x16xf32>
    tpu.vector_store %arg5[%c24_241, %c128_242], %210 {strides = array<i32>} : memref<36x256xf32, #tpu.memory_space<vmem>>, vector<4x16xf32>,
    %212 = vector.extract_strided_slice %209 {offsets = [0, 1], sizes = [4, 16], strides = [1, 1]} : vector<4x18xf32> to vector<4x16xf32>
    %c28_243 = arith.constant 28 : index
    %c128_244 = arith.constant 128 : index
    %213 = vector.load %arg5[%c28_243, %c128_244] : memref<36x256xf32, #tpu.memory_space<vmem>>, vector<4x16xf32>
    tpu.vector_store %arg5[%c28_243, %c128_244], %212 {strides = array<i32>} : memref<36x256xf32, #tpu.memory_space<vmem>>, vector<4x16xf32>,
    %214 = vector.extract_strided_slice %209 {offsets = [0, 2], sizes = [4, 16], strides = [1, 1]} : vector<4x18xf32> to vector<4x16xf32>
    %c32_245 = arith.constant 32 : index
    %c128_246 = arith.constant 128 : index
    %215 = vector.load %arg5[%c32_245, %c128_246] : memref<36x256xf32, #tpu.memory_space<vmem>>, vector<4x16xf32>
    tpu.vector_store %arg5[%c32_245, %c128_246], %214 {strides = array<i32>} : memref<36x256xf32, #tpu.memory_space<vmem>>, vector<4x16xf32>,
    %c0_247 = arith.constant 0 : index
    %c0_248 = arith.constant 0 : index
    %c9_249 = arith.constant 9 : index
    %c0_250 = arith.constant 0 : index
    %216 = vector.load %arg1[%c0_247, %c0_248, %c9_249, %c0_250] : memref<1x4x18x18xf32, #tpu.memory_space<vmem>>, vector<1x4x1x18xf32>
    %217 = vector.shape_cast %216 : vector<1x4x1x18xf32> to vector<4x18xf32>
    %218 = vector.extract_strided_slice %217 {offsets = [0, 0], sizes = [4, 16], strides = [1, 1]} : vector<4x18xf32> to vector<4x16xf32>
    %c0_251 = arith.constant 0 : index
    %c144 = arith.constant 144 : index
    %219 = vector.load %arg5[%c0_251, %c144] : memref<36x256xf32, #tpu.memory_space<vmem>>, vector<4x16xf32>
    tpu.vector_store %arg5[%c0_251, %c144], %218 {strides = array<i32>} : memref<36x256xf32, #tpu.memory_space<vmem>>, vector<4x16xf32>,
    %220 = vector.extract_strided_slice %217 {offsets = [0, 1], sizes = [4, 16], strides = [1, 1]} : vector<4x18xf32> to vector<4x16xf32>
    %c4_252 = arith.constant 4 : index
    %c144_253 = arith.constant 144 : index
    %221 = vector.load %arg5[%c4_252, %c144_253] : memref<36x256xf32, #tpu.memory_space<vmem>>, vector<4x16xf32>
    tpu.vector_store %arg5[%c4_252, %c144_253], %220 {strides = array<i32>} : memref<36x256xf32, #tpu.memory_space<vmem>>, vector<4x16xf32>,
    %222 = vector.extract_strided_slice %217 {offsets = [0, 2], sizes = [4, 16], strides = [1, 1]} : vector<4x18xf32> to vector<4x16xf32>
    %c8_254 = arith.constant 8 : index
    %c144_255 = arith.constant 144 : index
    %223 = vector.load %arg5[%c8_254, %c144_255] : memref<36x256xf32, #tpu.memory_space<vmem>>, vector<4x16xf32>
    tpu.vector_store %arg5[%c8_254, %c144_255], %222 {strides = array<i32>} : memref<36x256xf32, #tpu.memory_space<vmem>>, vector<4x16xf32>,
    %c0_256 = arith.constant 0 : index
    %c0_257 = arith.constant 0 : index
    %c10_258 = arith.constant 10 : index
    %c0_259 = arith.constant 0 : index
    %224 = vector.load %arg1[%c0_256, %c0_257, %c10_258, %c0_259] : memref<1x4x18x18xf32, #tpu.memory_space<vmem>>, vector<1x4x1x18xf32>
    %225 = vector.shape_cast %224 : vector<1x4x1x18xf32> to vector<4x18xf32>
    %226 = vector.extract_strided_slice %225 {offsets = [0, 0], sizes = [4, 16], strides = [1, 1]} : vector<4x18xf32> to vector<4x16xf32>
    %c12_260 = arith.constant 12 : index
    %c144_261 = arith.constant 144 : index
    %227 = vector.load %arg5[%c12_260, %c144_261] : memref<36x256xf32, #tpu.memory_space<vmem>>, vector<4x16xf32>
    tpu.vector_store %arg5[%c12_260, %c144_261], %226 {strides = array<i32>} : memref<36x256xf32, #tpu.memory_space<vmem>>, vector<4x16xf32>,
    %228 = vector.extract_strided_slice %225 {offsets = [0, 1], sizes = [4, 16], strides = [1, 1]} : vector<4x18xf32> to vector<4x16xf32>
    %c16_262 = arith.constant 16 : index
    %c144_263 = arith.constant 144 : index
    %229 = vector.load %arg5[%c16_262, %c144_263] : memref<36x256xf32, #tpu.memory_space<vmem>>, vector<4x16xf32>
    tpu.vector_store %arg5[%c16_262, %c144_263], %228 {strides = array<i32>} : memref<36x256xf32, #tpu.memory_space<vmem>>, vector<4x16xf32>,
    %230 = vector.extract_strided_slice %225 {offsets = [0, 2], sizes = [4, 16], strides = [1, 1]} : vector<4x18xf32> to vector<4x16xf32>
    %c20_264 = arith.constant 20 : index
    %c144_265 = arith.constant 144 : index
    %231 = vector.load %arg5[%c20_264, %c144_265] : memref<36x256xf32, #tpu.memory_space<vmem>>, vector<4x16xf32>
    tpu.vector_store %arg5[%c20_264, %c144_265], %230 {strides = array<i32>} : memref<36x256xf32, #tpu.memory_space<vmem>>, vector<4x16xf32>,
    %c0_266 = arith.constant 0 : index
    %c0_267 = arith.constant 0 : index
    %c11 = arith.constant 11 : index
    %c0_268 = arith.constant 0 : index
    %232 = vector.load %arg1[%c0_266, %c0_267, %c11, %c0_268] : memref<1x4x18x18xf32, #tpu.memory_space<vmem>>, vector<1x4x1x18xf32>
    %233 = vector.shape_cast %232 : vector<1x4x1x18xf32> to vector<4x18xf32>
    %234 = vector.extract_strided_slice %233 {offsets = [0, 0], sizes = [4, 16], strides = [1, 1]} : vector<4x18xf32> to vector<4x16xf32>
    %c24_269 = arith.constant 24 : index
    %c144_270 = arith.constant 144 : index
    %235 = vector.load %arg5[%c24_269, %c144_270] : memref<36x256xf32, #tpu.memory_space<vmem>>, vector<4x16xf32>
    tpu.vector_store %arg5[%c24_269, %c144_270], %234 {strides = array<i32>} : memref<36x256xf32, #tpu.memory_space<vmem>>, vector<4x16xf32>,
    %236 = vector.extract_strided_slice %233 {offsets = [0, 1], sizes = [4, 16], strides = [1, 1]} : vector<4x18xf32> to vector<4x16xf32>
    %c28_271 = arith.constant 28 : index
    %c144_272 = arith.constant 144 : index
    %237 = vector.load %arg5[%c28_271, %c144_272] : memref<36x256xf32, #tpu.memory_space<vmem>>, vector<4x16xf32>
    tpu.vector_store %arg5[%c28_271, %c144_272], %236 {strides = array<i32>} : memref<36x256xf32, #tpu.memory_space<vmem>>, vector<4x16xf32>,
    %238 = vector.extract_strided_slice %233 {offsets = [0, 2], sizes = [4, 16], strides = [1, 1]} : vector<4x18xf32> to vector<4x16xf32>
    %c32_273 = arith.constant 32 : index
    %c144_274 = arith.constant 144 : index
    %239 = vector.load %arg5[%c32_273, %c144_274] : memref<36x256xf32, #tpu.memory_space<vmem>>, vector<4x16xf32>
    tpu.vector_store %arg5[%c32_273, %c144_274], %238 {strides = array<i32>} : memref<36x256xf32, #tpu.memory_space<vmem>>, vector<4x16xf32>,
    %c0_275 = arith.constant 0 : index
    %c0_276 = arith.constant 0 : index
    %c10_277 = arith.constant 10 : index
    %c0_278 = arith.constant 0 : index
    %240 = vector.load %arg1[%c0_275, %c0_276, %c10_277, %c0_278] : memref<1x4x18x18xf32, #tpu.memory_space<vmem>>, vector<1x4x1x18xf32>
    %241 = vector.shape_cast %240 : vector<1x4x1x18xf32> to vector<4x18xf32>
    %242 = vector.extract_strided_slice %241 {offsets = [0, 0], sizes = [4, 16], strides = [1, 1]} : vector<4x18xf32> to vector<4x16xf32>
    %c0_279 = arith.constant 0 : index
    %c160 = arith.constant 160 : index
    %243 = vector.load %arg5[%c0_279, %c160] : memref<36x256xf32, #tpu.memory_space<vmem>>, vector<4x16xf32>
    tpu.vector_store %arg5[%c0_279, %c160], %242 {strides = array<i32>} : memref<36x256xf32, #tpu.memory_space<vmem>>, vector<4x16xf32>,
    %244 = vector.extract_strided_slice %241 {offsets = [0, 1], sizes = [4, 16], strides = [1, 1]} : vector<4x18xf32> to vector<4x16xf32>
    %c4_280 = arith.constant 4 : index
    %c160_281 = arith.constant 160 : index
    %245 = vector.load %arg5[%c4_280, %c160_281] : memref<36x256xf32, #tpu.memory_space<vmem>>, vector<4x16xf32>
    tpu.vector_store %arg5[%c4_280, %c160_281], %244 {strides = array<i32>} : memref<36x256xf32, #tpu.memory_space<vmem>>, vector<4x16xf32>,
    %246 = vector.extract_strided_slice %241 {offsets = [0, 2], sizes = [4, 16], strides = [1, 1]} : vector<4x18xf32> to vector<4x16xf32>
    %c8_282 = arith.constant 8 : index
    %c160_283 = arith.constant 160 : index
    %247 = vector.load %arg5[%c8_282, %c160_283] : memref<36x256xf32, #tpu.memory_space<vmem>>, vector<4x16xf32>
    tpu.vector_store %arg5[%c8_282, %c160_283], %246 {strides = array<i32>} : memref<36x256xf32, #tpu.memory_space<vmem>>, vector<4x16xf32>,
    %c0_284 = arith.constant 0 : index
    %c0_285 = arith.constant 0 : index
    %c11_286 = arith.constant 11 : index
    %c0_287 = arith.constant 0 : index
    %248 = vector.load %arg1[%c0_284, %c0_285, %c11_286, %c0_287] : memref<1x4x18x18xf32, #tpu.memory_space<vmem>>, vector<1x4x1x18xf32>
    %249 = vector.shape_cast %248 : vector<1x4x1x18xf32> to vector<4x18xf32>
    %250 = vector.extract_strided_slice %249 {offsets = [0, 0], sizes = [4, 16], strides = [1, 1]} : vector<4x18xf32> to vector<4x16xf32>
    %c12_288 = arith.constant 12 : index
    %c160_289 = arith.constant 160 : index
    %251 = vector.load %arg5[%c12_288, %c160_289] : memref<36x256xf32, #tpu.memory_space<vmem>>, vector<4x16xf32>
    tpu.vector_store %arg5[%c12_288, %c160_289], %250 {strides = array<i32>} : memref<36x256xf32, #tpu.memory_space<vmem>>, vector<4x16xf32>,
    %252 = vector.extract_strided_slice %249 {offsets = [0, 1], sizes = [4, 16], strides = [1, 1]} : vector<4x18xf32> to vector<4x16xf32>
    %c16_290 = arith.constant 16 : index
    %c160_291 = arith.constant 160 : index
    %253 = vector.load %arg5[%c16_290, %c160_291] : memref<36x256xf32, #tpu.memory_space<vmem>>, vector<4x16xf32>
    tpu.vector_store %arg5[%c16_290, %c160_291], %252 {strides = array<i32>} : memref<36x256xf32, #tpu.memory_space<vmem>>, vector<4x16xf32>,
    %254 = vector.extract_strided_slice %249 {offsets = [0, 2], sizes = [4, 16], strides = [1, 1]} : vector<4x18xf32> to vector<4x16xf32>
    %c20_292 = arith.constant 20 : index
    %c160_293 = arith.constant 160 : index
    %255 = vector.load %arg5[%c20_292, %c160_293] : memref<36x256xf32, #tpu.memory_space<vmem>>, vector<4x16xf32>
    tpu.vector_store %arg5[%c20_292, %c160_293], %254 {strides = array<i32>} : memref<36x256xf32, #tpu.memory_space<vmem>>, vector<4x16xf32>,
    %c0_294 = arith.constant 0 : index
    %c0_295 = arith.constant 0 : index
    %c12_296 = arith.constant 12 : index
    %c0_297 = arith.constant 0 : index
    %256 = vector.load %arg1[%c0_294, %c0_295, %c12_296, %c0_297] : memref<1x4x18x18xf32, #tpu.memory_space<vmem>>, vector<1x4x1x18xf32>
    %257 = vector.shape_cast %256 : vector<1x4x1x18xf32> to vector<4x18xf32>
    %258 = vector.extract_strided_slice %257 {offsets = [0, 0], sizes = [4, 16], strides = [1, 1]} : vector<4x18xf32> to vector<4x16xf32>
    %c24_298 = arith.constant 24 : index
    %c160_299 = arith.constant 160 : index
    %259 = vector.load %arg5[%c24_298, %c160_299] : memref<36x256xf32, #tpu.memory_space<vmem>>, vector<4x16xf32>
    tpu.vector_store %arg5[%c24_298, %c160_299], %258 {strides = array<i32>} : memref<36x256xf32, #tpu.memory_space<vmem>>, vector<4x16xf32>,
    %260 = vector.extract_strided_slice %257 {offsets = [0, 1], sizes = [4, 16], strides = [1, 1]} : vector<4x18xf32> to vector<4x16xf32>
    %c28_300 = arith.constant 28 : index
    %c160_301 = arith.constant 160 : index
    %261 = vector.load %arg5[%c28_300, %c160_301] : memref<36x256xf32, #tpu.memory_space<vmem>>, vector<4x16xf32>
    tpu.vector_store %arg5[%c28_300, %c160_301], %260 {strides = array<i32>} : memref<36x256xf32, #tpu.memory_space<vmem>>, vector<4x16xf32>,
    %262 = vector.extract_strided_slice %257 {offsets = [0, 2], sizes = [4, 16], strides = [1, 1]} : vector<4x18xf32> to vector<4x16xf32>
    %c32_302 = arith.constant 32 : index
    %c160_303 = arith.constant 160 : index
    %263 = vector.load %arg5[%c32_302, %c160_303] : memref<36x256xf32, #tpu.memory_space<vmem>>, vector<4x16xf32>
    tpu.vector_store %arg5[%c32_302, %c160_303], %262 {strides = array<i32>} : memref<36x256xf32, #tpu.memory_space<vmem>>, vector<4x16xf32>,
    %c0_304 = arith.constant 0 : index
    %c0_305 = arith.constant 0 : index
    %c11_306 = arith.constant 11 : index
    %c0_307 = arith.constant 0 : index
    %264 = vector.load %arg1[%c0_304, %c0_305, %c11_306, %c0_307] : memref<1x4x18x18xf32, #tpu.memory_space<vmem>>, vector<1x4x1x18xf32>
    %265 = vector.shape_cast %264 : vector<1x4x1x18xf32> to vector<4x18xf32>
    %266 = vector.extract_strided_slice %265 {offsets = [0, 0], sizes = [4, 16], strides = [1, 1]} : vector<4x18xf32> to vector<4x16xf32>
    %c0_308 = arith.constant 0 : index
    %c176 = arith.constant 176 : index
    %267 = vector.load %arg5[%c0_308, %c176] : memref<36x256xf32, #tpu.memory_space<vmem>>, vector<4x16xf32>
    tpu.vector_store %arg5[%c0_308, %c176], %266 {strides = array<i32>} : memref<36x256xf32, #tpu.memory_space<vmem>>, vector<4x16xf32>,
    %268 = vector.extract_strided_slice %265 {offsets = [0, 1], sizes = [4, 16], strides = [1, 1]} : vector<4x18xf32> to vector<4x16xf32>
    %c4_309 = arith.constant 4 : index
    %c176_310 = arith.constant 176 : index
    %269 = vector.load %arg5[%c4_309, %c176_310] : memref<36x256xf32, #tpu.memory_space<vmem>>, vector<4x16xf32>
    tpu.vector_store %arg5[%c4_309, %c176_310], %268 {strides = array<i32>} : memref<36x256xf32, #tpu.memory_space<vmem>>, vector<4x16xf32>,
    %270 = vector.extract_strided_slice %265 {offsets = [0, 2], sizes = [4, 16], strides = [1, 1]} : vector<4x18xf32> to vector<4x16xf32>
    %c8_311 = arith.constant 8 : index
    %c176_312 = arith.constant 176 : index
    %271 = vector.load %arg5[%c8_311, %c176_312] : memref<36x256xf32, #tpu.memory_space<vmem>>, vector<4x16xf32>
    tpu.vector_store %arg5[%c8_311, %c176_312], %270 {strides = array<i32>} : memref<36x256xf32, #tpu.memory_space<vmem>>, vector<4x16xf32>,
    %c0_313 = arith.constant 0 : index
    %c0_314 = arith.constant 0 : index
    %c12_315 = arith.constant 12 : index
    %c0_316 = arith.constant 0 : index
    %272 = vector.load %arg1[%c0_313, %c0_314, %c12_315, %c0_316] : memref<1x4x18x18xf32, #tpu.memory_space<vmem>>, vector<1x4x1x18xf32>
    %273 = vector.shape_cast %272 : vector<1x4x1x18xf32> to vector<4x18xf32>
    %274 = vector.extract_strided_slice %273 {offsets = [0, 0], sizes = [4, 16], strides = [1, 1]} : vector<4x18xf32> to vector<4x16xf32>
    %c12_317 = arith.constant 12 : index
    %c176_318 = arith.constant 176 : index
    %275 = vector.load %arg5[%c12_317, %c176_318] : memref<36x256xf32, #tpu.memory_space<vmem>>, vector<4x16xf32>
    tpu.vector_store %arg5[%c12_317, %c176_318], %274 {strides = array<i32>} : memref<36x256xf32, #tpu.memory_space<vmem>>, vector<4x16xf32>,
    %276 = vector.extract_strided_slice %273 {offsets = [0, 1], sizes = [4, 16], strides = [1, 1]} : vector<4x18xf32> to vector<4x16xf32>
    %c16_319 = arith.constant 16 : index
    %c176_320 = arith.constant 176 : index
    %277 = vector.load %arg5[%c16_319, %c176_320] : memref<36x256xf32, #tpu.memory_space<vmem>>, vector<4x16xf32>
    tpu.vector_store %arg5[%c16_319, %c176_320], %276 {strides = array<i32>} : memref<36x256xf32, #tpu.memory_space<vmem>>, vector<4x16xf32>,
    %278 = vector.extract_strided_slice %273 {offsets = [0, 2], sizes = [4, 16], strides = [1, 1]} : vector<4x18xf32> to vector<4x16xf32>
    %c20_321 = arith.constant 20 : index
    %c176_322 = arith.constant 176 : index
    %279 = vector.load %arg5[%c20_321, %c176_322] : memref<36x256xf32, #tpu.memory_space<vmem>>, vector<4x16xf32>
    tpu.vector_store %arg5[%c20_321, %c176_322], %278 {strides = array<i32>} : memref<36x256xf32, #tpu.memory_space<vmem>>, vector<4x16xf32>,
    %c0_323 = arith.constant 0 : index
    %c0_324 = arith.constant 0 : index
    %c13 = arith.constant 13 : index
    %c0_325 = arith.constant 0 : index
    %280 = vector.load %arg1[%c0_323, %c0_324, %c13, %c0_325] : memref<1x4x18x18xf32, #tpu.memory_space<vmem>>, vector<1x4x1x18xf32>
    %281 = vector.shape_cast %280 : vector<1x4x1x18xf32> to vector<4x18xf32>
    %282 = vector.extract_strided_slice %281 {offsets = [0, 0], sizes = [4, 16], strides = [1, 1]} : vector<4x18xf32> to vector<4x16xf32>
    %c24_326 = arith.constant 24 : index
    %c176_327 = arith.constant 176 : index
    %283 = vector.load %arg5[%c24_326, %c176_327] : memref<36x256xf32, #tpu.memory_space<vmem>>, vector<4x16xf32>
    tpu.vector_store %arg5[%c24_326, %c176_327], %282 {strides = array<i32>} : memref<36x256xf32, #tpu.memory_space<vmem>>, vector<4x16xf32>,
    %284 = vector.extract_strided_slice %281 {offsets = [0, 1], sizes = [4, 16], strides = [1, 1]} : vector<4x18xf32> to vector<4x16xf32>
    %c28_328 = arith.constant 28 : index
    %c176_329 = arith.constant 176 : index
    %285 = vector.load %arg5[%c28_328, %c176_329] : memref<36x256xf32, #tpu.memory_space<vmem>>, vector<4x16xf32>
    tpu.vector_store %arg5[%c28_328, %c176_329], %284 {strides = array<i32>} : memref<36x256xf32, #tpu.memory_space<vmem>>, vector<4x16xf32>,
    %286 = vector.extract_strided_slice %281 {offsets = [0, 2], sizes = [4, 16], strides = [1, 1]} : vector<4x18xf32> to vector<4x16xf32>
    %c32_330 = arith.constant 32 : index
    %c176_331 = arith.constant 176 : index
    %287 = vector.load %arg5[%c32_330, %c176_331] : memref<36x256xf32, #tpu.memory_space<vmem>>, vector<4x16xf32>
    tpu.vector_store %arg5[%c32_330, %c176_331], %286 {strides = array<i32>} : memref<36x256xf32, #tpu.memory_space<vmem>>, vector<4x16xf32>,
    %c0_332 = arith.constant 0 : index
    %c0_333 = arith.constant 0 : index
    %c12_334 = arith.constant 12 : index
    %c0_335 = arith.constant 0 : index
    %288 = vector.load %arg1[%c0_332, %c0_333, %c12_334, %c0_335] : memref<1x4x18x18xf32, #tpu.memory_space<vmem>>, vector<1x4x1x18xf32>
    %289 = vector.shape_cast %288 : vector<1x4x1x18xf32> to vector<4x18xf32>
    %290 = vector.extract_strided_slice %289 {offsets = [0, 0], sizes = [4, 16], strides = [1, 1]} : vector<4x18xf32> to vector<4x16xf32>
    %c0_336 = arith.constant 0 : index
    %c192 = arith.constant 192 : index
    %291 = vector.load %arg5[%c0_336, %c192] : memref<36x256xf32, #tpu.memory_space<vmem>>, vector<4x16xf32>
    tpu.vector_store %arg5[%c0_336, %c192], %290 {strides = array<i32>} : memref<36x256xf32, #tpu.memory_space<vmem>>, vector<4x16xf32>,
    %292 = vector.extract_strided_slice %289 {offsets = [0, 1], sizes = [4, 16], strides = [1, 1]} : vector<4x18xf32> to vector<4x16xf32>
    %c4_337 = arith.constant 4 : index
    %c192_338 = arith.constant 192 : index
    %293 = vector.load %arg5[%c4_337, %c192_338] : memref<36x256xf32, #tpu.memory_space<vmem>>, vector<4x16xf32>
    tpu.vector_store %arg5[%c4_337, %c192_338], %292 {strides = array<i32>} : memref<36x256xf32, #tpu.memory_space<vmem>>, vector<4x16xf32>,
    %294 = vector.extract_strided_slice %289 {offsets = [0, 2], sizes = [4, 16], strides = [1, 1]} : vector<4x18xf32> to vector<4x16xf32>
    %c8_339 = arith.constant 8 : index
    %c192_340 = arith.constant 192 : index
    %295 = vector.load %arg5[%c8_339, %c192_340] : memref<36x256xf32, #tpu.memory_space<vmem>>, vector<4x16xf32>
    tpu.vector_store %arg5[%c8_339, %c192_340], %294 {strides = array<i32>} : memref<36x256xf32, #tpu.memory_space<vmem>>, vector<4x16xf32>,
    %c0_341 = arith.constant 0 : index
    %c0_342 = arith.constant 0 : index
    %c13_343 = arith.constant 13 : index
    %c0_344 = arith.constant 0 : index
    %296 = vector.load %arg1[%c0_341, %c0_342, %c13_343, %c0_344] : memref<1x4x18x18xf32, #tpu.memory_space<vmem>>, vector<1x4x1x18xf32>
    %297 = vector.shape_cast %296 : vector<1x4x1x18xf32> to vector<4x18xf32>
    %298 = vector.extract_strided_slice %297 {offsets = [0, 0], sizes = [4, 16], strides = [1, 1]} : vector<4x18xf32> to vector<4x16xf32>
    %c12_345 = arith.constant 12 : index
    %c192_346 = arith.constant 192 : index
    %299 = vector.load %arg5[%c12_345, %c192_346] : memref<36x256xf32, #tpu.memory_space<vmem>>, vector<4x16xf32>
    tpu.vector_store %arg5[%c12_345, %c192_346], %298 {strides = array<i32>} : memref<36x256xf32, #tpu.memory_space<vmem>>, vector<4x16xf32>,
    %300 = vector.extract_strided_slice %297 {offsets = [0, 1], sizes = [4, 16], strides = [1, 1]} : vector<4x18xf32> to vector<4x16xf32>
    %c16_347 = arith.constant 16 : index
    %c192_348 = arith.constant 192 : index
    %301 = vector.load %arg5[%c16_347, %c192_348] : memref<36x256xf32, #tpu.memory_space<vmem>>, vector<4x16xf32>
    tpu.vector_store %arg5[%c16_347, %c192_348], %300 {strides = array<i32>} : memref<36x256xf32, #tpu.memory_space<vmem>>, vector<4x16xf32>,
    %302 = vector.extract_strided_slice %297 {offsets = [0, 2], sizes = [4, 16], strides = [1, 1]} : vector<4x18xf32> to vector<4x16xf32>
    %c20_349 = arith.constant 20 : index
    %c192_350 = arith.constant 192 : index
    %303 = vector.load %arg5[%c20_349, %c192_350] : memref<36x256xf32, #tpu.memory_space<vmem>>, vector<4x16xf32>
    tpu.vector_store %arg5[%c20_349, %c192_350], %302 {strides = array<i32>} : memref<36x256xf32, #tpu.memory_space<vmem>>, vector<4x16xf32>,
    %c0_351 = arith.constant 0 : index
    %c0_352 = arith.constant 0 : index
    %c14 = arith.constant 14 : index
    %c0_353 = arith.constant 0 : index
    %304 = vector.load %arg1[%c0_351, %c0_352, %c14, %c0_353] : memref<1x4x18x18xf32, #tpu.memory_space<vmem>>, vector<1x4x1x18xf32>
    %305 = vector.shape_cast %304 : vector<1x4x1x18xf32> to vector<4x18xf32>
    %306 = vector.extract_strided_slice %305 {offsets = [0, 0], sizes = [4, 16], strides = [1, 1]} : vector<4x18xf32> to vector<4x16xf32>
    %c24_354 = arith.constant 24 : index
    %c192_355 = arith.constant 192 : index
    %307 = vector.load %arg5[%c24_354, %c192_355] : memref<36x256xf32, #tpu.memory_space<vmem>>, vector<4x16xf32>
    tpu.vector_store %arg5[%c24_354, %c192_355], %306 {strides = array<i32>} : memref<36x256xf32, #tpu.memory_space<vmem>>, vector<4x16xf32>,
    %308 = vector.extract_strided_slice %305 {offsets = [0, 1], sizes = [4, 16], strides = [1, 1]} : vector<4x18xf32> to vector<4x16xf32>
    %c28_356 = arith.constant 28 : index
    %c192_357 = arith.constant 192 : index
    %309 = vector.load %arg5[%c28_356, %c192_357] : memref<36x256xf32, #tpu.memory_space<vmem>>, vector<4x16xf32>
    tpu.vector_store %arg5[%c28_356, %c192_357], %308 {strides = array<i32>} : memref<36x256xf32, #tpu.memory_space<vmem>>, vector<4x16xf32>,
    %310 = vector.extract_strided_slice %305 {offsets = [0, 2], sizes = [4, 16], strides = [1, 1]} : vector<4x18xf32> to vector<4x16xf32>
    %c32_358 = arith.constant 32 : index
    %c192_359 = arith.constant 192 : index
    %311 = vector.load %arg5[%c32_358, %c192_359] : memref<36x256xf32, #tpu.memory_space<vmem>>, vector<4x16xf32>
    tpu.vector_store %arg5[%c32_358, %c192_359], %310 {strides = array<i32>} : memref<36x256xf32, #tpu.memory_space<vmem>>, vector<4x16xf32>,
    %c0_360 = arith.constant 0 : index
    %c0_361 = arith.constant 0 : index
    %c13_362 = arith.constant 13 : index
    %c0_363 = arith.constant 0 : index
    %312 = vector.load %arg1[%c0_360, %c0_361, %c13_362, %c0_363] : memref<1x4x18x18xf32, #tpu.memory_space<vmem>>, vector<1x4x1x18xf32>
    %313 = vector.shape_cast %312 : vector<1x4x1x18xf32> to vector<4x18xf32>
    %314 = vector.extract_strided_slice %313 {offsets = [0, 0], sizes = [4, 16], strides = [1, 1]} : vector<4x18xf32> to vector<4x16xf32>
    %c0_364 = arith.constant 0 : index
    %c208 = arith.constant 208 : index
    %315 = vector.load %arg5[%c0_364, %c208] : memref<36x256xf32, #tpu.memory_space<vmem>>, vector<4x16xf32>
    tpu.vector_store %arg5[%c0_364, %c208], %314 {strides = array<i32>} : memref<36x256xf32, #tpu.memory_space<vmem>>, vector<4x16xf32>,
    %316 = vector.extract_strided_slice %313 {offsets = [0, 1], sizes = [4, 16], strides = [1, 1]} : vector<4x18xf32> to vector<4x16xf32>
    %c4_365 = arith.constant 4 : index
    %c208_366 = arith.constant 208 : index
    %317 = vector.load %arg5[%c4_365, %c208_366] : memref<36x256xf32, #tpu.memory_space<vmem>>, vector<4x16xf32>
    tpu.vector_store %arg5[%c4_365, %c208_366], %316 {strides = array<i32>} : memref<36x256xf32, #tpu.memory_space<vmem>>, vector<4x16xf32>,
    %318 = vector.extract_strided_slice %313 {offsets = [0, 2], sizes = [4, 16], strides = [1, 1]} : vector<4x18xf32> to vector<4x16xf32>
    %c8_367 = arith.constant 8 : index
    %c208_368 = arith.constant 208 : index
    %319 = vector.load %arg5[%c8_367, %c208_368] : memref<36x256xf32, #tpu.memory_space<vmem>>, vector<4x16xf32>
    tpu.vector_store %arg5[%c8_367, %c208_368], %318 {strides = array<i32>} : memref<36x256xf32, #tpu.memory_space<vmem>>, vector<4x16xf32>,
    %c0_369 = arith.constant 0 : index
    %c0_370 = arith.constant 0 : index
    %c14_371 = arith.constant 14 : index
    %c0_372 = arith.constant 0 : index
    %320 = vector.load %arg1[%c0_369, %c0_370, %c14_371, %c0_372] : memref<1x4x18x18xf32, #tpu.memory_space<vmem>>, vector<1x4x1x18xf32>
    %321 = vector.shape_cast %320 : vector<1x4x1x18xf32> to vector<4x18xf32>
    %322 = vector.extract_strided_slice %321 {offsets = [0, 0], sizes = [4, 16], strides = [1, 1]} : vector<4x18xf32> to vector<4x16xf32>
    %c12_373 = arith.constant 12 : index
    %c208_374 = arith.constant 208 : index
    %323 = vector.load %arg5[%c12_373, %c208_374] : memref<36x256xf32, #tpu.memory_space<vmem>>, vector<4x16xf32>
    tpu.vector_store %arg5[%c12_373, %c208_374], %322 {strides = array<i32>} : memref<36x256xf32, #tpu.memory_space<vmem>>, vector<4x16xf32>,
    %324 = vector.extract_strided_slice %321 {offsets = [0, 1], sizes = [4, 16], strides = [1, 1]} : vector<4x18xf32> to vector<4x16xf32>
    %c16_375 = arith.constant 16 : index
    %c208_376 = arith.constant 208 : index
    %325 = vector.load %arg5[%c16_375, %c208_376] : memref<36x256xf32, #tpu.memory_space<vmem>>, vector<4x16xf32>
    tpu.vector_store %arg5[%c16_375, %c208_376], %324 {strides = array<i32>} : memref<36x256xf32, #tpu.memory_space<vmem>>, vector<4x16xf32>,
    %326 = vector.extract_strided_slice %321 {offsets = [0, 2], sizes = [4, 16], strides = [1, 1]} : vector<4x18xf32> to vector<4x16xf32>
    %c20_377 = arith.constant 20 : index
    %c208_378 = arith.constant 208 : index
    %327 = vector.load %arg5[%c20_377, %c208_378] : memref<36x256xf32, #tpu.memory_space<vmem>>, vector<4x16xf32>
    tpu.vector_store %arg5[%c20_377, %c208_378], %326 {strides = array<i32>} : memref<36x256xf32, #tpu.memory_space<vmem>>, vector<4x16xf32>,
    %c0_379 = arith.constant 0 : index
    %c0_380 = arith.constant 0 : index
    %c15 = arith.constant 15 : index
    %c0_381 = arith.constant 0 : index
    %328 = vector.load %arg1[%c0_379, %c0_380, %c15, %c0_381] : memref<1x4x18x18xf32, #tpu.memory_space<vmem>>, vector<1x4x1x18xf32>
    %329 = vector.shape_cast %328 : vector<1x4x1x18xf32> to vector<4x18xf32>
    %330 = vector.extract_strided_slice %329 {offsets = [0, 0], sizes = [4, 16], strides = [1, 1]} : vector<4x18xf32> to vector<4x16xf32>
    %c24_382 = arith.constant 24 : index
    %c208_383 = arith.constant 208 : index
    %331 = vector.load %arg5[%c24_382, %c208_383] : memref<36x256xf32, #tpu.memory_space<vmem>>, vector<4x16xf32>
    tpu.vector_store %arg5[%c24_382, %c208_383], %330 {strides = array<i32>} : memref<36x256xf32, #tpu.memory_space<vmem>>, vector<4x16xf32>,
    %332 = vector.extract_strided_slice %329 {offsets = [0, 1], sizes = [4, 16], strides = [1, 1]} : vector<4x18xf32> to vector<4x16xf32>
    %c28_384 = arith.constant 28 : index
    %c208_385 = arith.constant 208 : index
    %333 = vector.load %arg5[%c28_384, %c208_385] : memref<36x256xf32, #tpu.memory_space<vmem>>, vector<4x16xf32>
    tpu.vector_store %arg5[%c28_384, %c208_385], %332 {strides = array<i32>} : memref<36x256xf32, #tpu.memory_space<vmem>>, vector<4x16xf32>,
    %334 = vector.extract_strided_slice %329 {offsets = [0, 2], sizes = [4, 16], strides = [1, 1]} : vector<4x18xf32> to vector<4x16xf32>
    %c32_386 = arith.constant 32 : index
    %c208_387 = arith.constant 208 : index
    %335 = vector.load %arg5[%c32_386, %c208_387] : memref<36x256xf32, #tpu.memory_space<vmem>>, vector<4x16xf32>
    tpu.vector_store %arg5[%c32_386, %c208_387], %334 {strides = array<i32>} : memref<36x256xf32, #tpu.memory_space<vmem>>, vector<4x16xf32>,
    %c0_388 = arith.constant 0 : index
    %c0_389 = arith.constant 0 : index
    %c14_390 = arith.constant 14 : index
    %c0_391 = arith.constant 0 : index
    %336 = vector.load %arg1[%c0_388, %c0_389, %c14_390, %c0_391] : memref<1x4x18x18xf32, #tpu.memory_space<vmem>>, vector<1x4x1x18xf32>
    %337 = vector.shape_cast %336 : vector<1x4x1x18xf32> to vector<4x18xf32>
    %338 = vector.extract_strided_slice %337 {offsets = [0, 0], sizes = [4, 16], strides = [1, 1]} : vector<4x18xf32> to vector<4x16xf32>
    %c0_392 = arith.constant 0 : index
    %c224 = arith.constant 224 : index
    %339 = vector.load %arg5[%c0_392, %c224] : memref<36x256xf32, #tpu.memory_space<vmem>>, vector<4x16xf32>
    tpu.vector_store %arg5[%c0_392, %c224], %338 {strides = array<i32>} : memref<36x256xf32, #tpu.memory_space<vmem>>, vector<4x16xf32>,
    %340 = vector.extract_strided_slice %337 {offsets = [0, 1], sizes = [4, 16], strides = [1, 1]} : vector<4x18xf32> to vector<4x16xf32>
    %c4_393 = arith.constant 4 : index
    %c224_394 = arith.constant 224 : index
    %341 = vector.load %arg5[%c4_393, %c224_394] : memref<36x256xf32, #tpu.memory_space<vmem>>, vector<4x16xf32>
    tpu.vector_store %arg5[%c4_393, %c224_394], %340 {strides = array<i32>} : memref<36x256xf32, #tpu.memory_space<vmem>>, vector<4x16xf32>,
    %342 = vector.extract_strided_slice %337 {offsets = [0, 2], sizes = [4, 16], strides = [1, 1]} : vector<4x18xf32> to vector<4x16xf32>
    %c8_395 = arith.constant 8 : index
    %c224_396 = arith.constant 224 : index
    %343 = vector.load %arg5[%c8_395, %c224_396] : memref<36x256xf32, #tpu.memory_space<vmem>>, vector<4x16xf32>
    tpu.vector_store %arg5[%c8_395, %c224_396], %342 {strides = array<i32>} : memref<36x256xf32, #tpu.memory_space<vmem>>, vector<4x16xf32>,
    %c0_397 = arith.constant 0 : index
    %c0_398 = arith.constant 0 : index
    %c15_399 = arith.constant 15 : index
    %c0_400 = arith.constant 0 : index
    %344 = vector.load %arg1[%c0_397, %c0_398, %c15_399, %c0_400] : memref<1x4x18x18xf32, #tpu.memory_space<vmem>>, vector<1x4x1x18xf32>
    %345 = vector.shape_cast %344 : vector<1x4x1x18xf32> to vector<4x18xf32>
    %346 = vector.extract_strided_slice %345 {offsets = [0, 0], sizes = [4, 16], strides = [1, 1]} : vector<4x18xf32> to vector<4x16xf32>
    %c12_401 = arith.constant 12 : index
    %c224_402 = arith.constant 224 : index
    %347 = vector.load %arg5[%c12_401, %c224_402] : memref<36x256xf32, #tpu.memory_space<vmem>>, vector<4x16xf32>
    tpu.vector_store %arg5[%c12_401, %c224_402], %346 {strides = array<i32>} : memref<36x256xf32, #tpu.memory_space<vmem>>, vector<4x16xf32>,
    %348 = vector.extract_strided_slice %345 {offsets = [0, 1], sizes = [4, 16], strides = [1, 1]} : vector<4x18xf32> to vector<4x16xf32>
    %c16_403 = arith.constant 16 : index
    %c224_404 = arith.constant 224 : index
    %349 = vector.load %arg5[%c16_403, %c224_404] : memref<36x256xf32, #tpu.memory_space<vmem>>, vector<4x16xf32>
    tpu.vector_store %arg5[%c16_403, %c224_404], %348 {strides = array<i32>} : memref<36x256xf32, #tpu.memory_space<vmem>>, vector<4x16xf32>,
    %350 = vector.extract_strided_slice %345 {offsets = [0, 2], sizes = [4, 16], strides = [1, 1]} : vector<4x18xf32> to vector<4x16xf32>
    %c20_405 = arith.constant 20 : index
    %c224_406 = arith.constant 224 : index
    %351 = vector.load %arg5[%c20_405, %c224_406] : memref<36x256xf32, #tpu.memory_space<vmem>>, vector<4x16xf32>
    tpu.vector_store %arg5[%c20_405, %c224_406], %350 {strides = array<i32>} : memref<36x256xf32, #tpu.memory_space<vmem>>, vector<4x16xf32>,
    %c0_407 = arith.constant 0 : index
    %c0_408 = arith.constant 0 : index
    %c16_409 = arith.constant 16 : index
    %c0_410 = arith.constant 0 : index
    %352 = vector.load %arg1[%c0_407, %c0_408, %c16_409, %c0_410] : memref<1x4x18x18xf32, #tpu.memory_space<vmem>>, vector<1x4x1x18xf32>
    %353 = vector.shape_cast %352 : vector<1x4x1x18xf32> to vector<4x18xf32>
    %354 = vector.extract_strided_slice %353 {offsets = [0, 0], sizes = [4, 16], strides = [1, 1]} : vector<4x18xf32> to vector<4x16xf32>
    %c24_411 = arith.constant 24 : index
    %c224_412 = arith.constant 224 : index
    %355 = vector.load %arg5[%c24_411, %c224_412] : memref<36x256xf32, #tpu.memory_space<vmem>>, vector<4x16xf32>
    tpu.vector_store %arg5[%c24_411, %c224_412], %354 {strides = array<i32>} : memref<36x256xf32, #tpu.memory_space<vmem>>, vector<4x16xf32>,
    %356 = vector.extract_strided_slice %353 {offsets = [0, 1], sizes = [4, 16], strides = [1, 1]} : vector<4x18xf32> to vector<4x16xf32>
    %c28_413 = arith.constant 28 : index
    %c224_414 = arith.constant 224 : index
    %357 = vector.load %arg5[%c28_413, %c224_414] : memref<36x256xf32, #tpu.memory_space<vmem>>, vector<4x16xf32>
    tpu.vector_store %arg5[%c28_413, %c224_414], %356 {strides = array<i32>} : memref<36x256xf32, #tpu.memory_space<vmem>>, vector<4x16xf32>,
    %358 = vector.extract_strided_slice %353 {offsets = [0, 2], sizes = [4, 16], strides = [1, 1]} : vector<4x18xf32> to vector<4x16xf32>
    %c32_415 = arith.constant 32 : index
    %c224_416 = arith.constant 224 : index
    %359 = vector.load %arg5[%c32_415, %c224_416] : memref<36x256xf32, #tpu.memory_space<vmem>>, vector<4x16xf32>
    tpu.vector_store %arg5[%c32_415, %c224_416], %358 {strides = array<i32>} : memref<36x256xf32, #tpu.memory_space<vmem>>, vector<4x16xf32>,
    %c0_417 = arith.constant 0 : index
    %c0_418 = arith.constant 0 : index
    %c15_419 = arith.constant 15 : index
    %c0_420 = arith.constant 0 : index
    %360 = vector.load %arg1[%c0_417, %c0_418, %c15_419, %c0_420] : memref<1x4x18x18xf32, #tpu.memory_space<vmem>>, vector<1x4x1x18xf32>
    %361 = vector.shape_cast %360 : vector<1x4x1x18xf32> to vector<4x18xf32>
    %362 = vector.extract_strided_slice %361 {offsets = [0, 0], sizes = [4, 16], strides = [1, 1]} : vector<4x18xf32> to vector<4x16xf32>
    %c0_421 = arith.constant 0 : index
    %c240 = arith.constant 240 : index
    %363 = vector.load %arg5[%c0_421, %c240] : memref<36x256xf32, #tpu.memory_space<vmem>>, vector<4x16xf32>
    tpu.vector_store %arg5[%c0_421, %c240], %362 {strides = array<i32>} : memref<36x256xf32, #tpu.memory_space<vmem>>, vector<4x16xf32>,
    %364 = vector.extract_strided_slice %361 {offsets = [0, 1], sizes = [4, 16], strides = [1, 1]} : vector<4x18xf32> to vector<4x16xf32>
    %c4_422 = arith.constant 4 : index
    %c240_423 = arith.constant 240 : index
    %365 = vector.load %arg5[%c4_422, %c240_423] : memref<36x256xf32, #tpu.memory_space<vmem>>, vector<4x16xf32>
    tpu.vector_store %arg5[%c4_422, %c240_423], %364 {strides = array<i32>} : memref<36x256xf32, #tpu.memory_space<vmem>>, vector<4x16xf32>,
    %366 = vector.extract_strided_slice %361 {offsets = [0, 2], sizes = [4, 16], strides = [1, 1]} : vector<4x18xf32> to vector<4x16xf32>
    %c8_424 = arith.constant 8 : index
    %c240_425 = arith.constant 240 : index
    %367 = vector.load %arg5[%c8_424, %c240_425] : memref<36x256xf32, #tpu.memory_space<vmem>>, vector<4x16xf32>
    tpu.vector_store %arg5[%c8_424, %c240_425], %366 {strides = array<i32>} : memref<36x256xf32, #tpu.memory_space<vmem>>, vector<4x16xf32>,
    %c0_426 = arith.constant 0 : index
    %c0_427 = arith.constant 0 : index
    %c16_428 = arith.constant 16 : index
    %c0_429 = arith.constant 0 : index
    %368 = vector.load %arg1[%c0_426, %c0_427, %c16_428, %c0_429] : memref<1x4x18x18xf32, #tpu.memory_space<vmem>>, vector<1x4x1x18xf32>
    %369 = vector.shape_cast %368 : vector<1x4x1x18xf32> to vector<4x18xf32>
    %370 = vector.extract_strided_slice %369 {offsets = [0, 0], sizes = [4, 16], strides = [1, 1]} : vector<4x18xf32> to vector<4x16xf32>
    %c12_430 = arith.constant 12 : index
    %c240_431 = arith.constant 240 : index
    %371 = vector.load %arg5[%c12_430, %c240_431] : memref<36x256xf32, #tpu.memory_space<vmem>>, vector<4x16xf32>
    tpu.vector_store %arg5[%c12_430, %c240_431], %370 {strides = array<i32>} : memref<36x256xf32, #tpu.memory_space<vmem>>, vector<4x16xf32>,
    %372 = vector.extract_strided_slice %369 {offsets = [0, 1], sizes = [4, 16], strides = [1, 1]} : vector<4x18xf32> to vector<4x16xf32>
    %c16_432 = arith.constant 16 : index
    %c240_433 = arith.constant 240 : index
    %373 = vector.load %arg5[%c16_432, %c240_433] : memref<36x256xf32, #tpu.memory_space<vmem>>, vector<4x16xf32>
    tpu.vector_store %arg5[%c16_432, %c240_433], %372 {strides = array<i32>} : memref<36x256xf32, #tpu.memory_space<vmem>>, vector<4x16xf32>,
    %374 = vector.extract_strided_slice %369 {offsets = [0, 2], sizes = [4, 16], strides = [1, 1]} : vector<4x18xf32> to vector<4x16xf32>
    %c20_434 = arith.constant 20 : index
    %c240_435 = arith.constant 240 : index
    %375 = vector.load %arg5[%c20_434, %c240_435] : memref<36x256xf32, #tpu.memory_space<vmem>>, vector<4x16xf32>
    tpu.vector_store %arg5[%c20_434, %c240_435], %374 {strides = array<i32>} : memref<36x256xf32, #tpu.memory_space<vmem>>, vector<4x16xf32>,
    %c0_436 = arith.constant 0 : index
    %c0_437 = arith.constant 0 : index
    %c17 = arith.constant 17 : index
    %c0_438 = arith.constant 0 : index
    %376 = vector.load %arg1[%c0_436, %c0_437, %c17, %c0_438] : memref<1x4x18x18xf32, #tpu.memory_space<vmem>>, vector<1x4x1x18xf32>
    %377 = vector.shape_cast %376 : vector<1x4x1x18xf32> to vector<4x18xf32>
    %378 = vector.extract_strided_slice %377 {offsets = [0, 0], sizes = [4, 16], strides = [1, 1]} : vector<4x18xf32> to vector<4x16xf32>
    %c24_439 = arith.constant 24 : index
    %c240_440 = arith.constant 240 : index
    %379 = vector.load %arg5[%c24_439, %c240_440] : memref<36x256xf32, #tpu.memory_space<vmem>>, vector<4x16xf32>
    tpu.vector_store %arg5[%c24_439, %c240_440], %378 {strides = array<i32>} : memref<36x256xf32, #tpu.memory_space<vmem>>, vector<4x16xf32>,
    %380 = vector.extract_strided_slice %377 {offsets = [0, 1], sizes = [4, 16], strides = [1, 1]} : vector<4x18xf32> to vector<4x16xf32>
    %c28_441 = arith.constant 28 : index
    %c240_442 = arith.constant 240 : index
    %381 = vector.load %arg5[%c28_441, %c240_442] : memref<36x256xf32, #tpu.memory_space<vmem>>, vector<4x16xf32>
    tpu.vector_store %arg5[%c28_441, %c240_442], %380 {strides = array<i32>} : memref<36x256xf32, #tpu.memory_space<vmem>>, vector<4x16xf32>,
    %382 = vector.extract_strided_slice %377 {offsets = [0, 2], sizes = [4, 16], strides = [1, 1]} : vector<4x18xf32> to vector<4x16xf32>
    %c32_443 = arith.constant 32 : index
    %c240_444 = arith.constant 240 : index
    %383 = vector.load %arg5[%c32_443, %c240_444] : memref<36x256xf32, #tpu.memory_space<vmem>>, vector<4x16xf32>
    tpu.vector_store %arg5[%c32_443, %c240_444], %382 {strides = array<i32>} : memref<36x256xf32, #tpu.memory_space<vmem>>, vector<4x16xf32>,
    %c0_445 = arith.constant 0 : index
    %c0_446 = arith.constant 0 : index
    %384 = vector.load %arg2[%c0_445, %c0_446] : memref<8x36xf32, #tpu.memory_space<vmem>>, vector<8x36xf32>
    %c0_447 = arith.constant 0 : index
    %c0_448 = arith.constant 0 : index
    %385 = vector.load %arg5[%c0_447, %c0_448] : memref<36x256xf32, #tpu.memory_space<vmem>>, vector<36x256xf32>
    %cst = arith.constant dense<0.000000e+00> : vector<8x256xf32>
    %386 = tpu.matmul %384, %385, %cst {dimension_numbers = #tpu.dot_dimension_numbers<[1], [0], [0], [1], [0, 0, 1, 1], [], []>} : vector<8x36xf32>, vector<36x256xf32>, vector<8x256xf32> -> vector<8x256xf32>
    %c0_449 = arith.constant 0 : index
    %c0_450 = arith.constant 0 : index
    %387 = vector.load %arg3[%c0_449, %c0_450] : memref<8x1xf32, #tpu.memory_space<vmem>>, vector<8x1xf32>
    %388 = vector.broadcast %387 : vector<8x1xf32> to vector<8x256xf32>
    %389 = arith.addf %386, %388 : vector<8x256xf32>
    %c0_451 = arith.constant 0 : index
    %c0_452 = arith.constant 0 : index
    %c0_453 = arith.constant 0 : index
    %390 = vector.load %arg4[%c0_451, %c0_452, %c0_453] : memref<1x8x256xf32, #tpu.memory_space<vmem>>, vector<1x8x256xf32>
    %391 = vector.shape_cast %390 : vector<1x8x256xf32> to vector<8x256xf32>
    %392 = vector.shape_cast %389 : vector<8x256xf32> to vector<1x8x256xf32>
    tpu.vector_store %arg4[%c0_451, %c0_452, %c0_453], %392 {strides = array<i32>} : memref<1x8x256xf32, #tpu.memory_space<vmem>>, vector<1x8x256xf32>,
    return
  }
  func.func @transform_0(%arg0: i32) -> (i32, i32, i32, i32) {
    %c0_i32 = arith.constant 0 : i32
    %c0_i32_0 = arith.constant 0 : i32
    %c0_i32_1 = arith.constant 0 : i32
    %c0_i32_2 = arith.constant 0 : i32
    return %arg0, %c0_i32, %c0_i32_0, %c0_i32_1 : i32, i32, i32, i32
  }
  func.func @transform_1(%arg0: i32) -> (i32, i32) {
    %c0_i32 = arith.constant 0 : i32
    %c0_i32_0 = arith.constant 0 : i32
    %c0_i32_1 = arith.constant 0 : i32
    return %c0_i32, %c0_i32_0 : i32, i32
  }
  func.func @transform_2(%arg0: i32) -> (i32, i32) {
    %c0_i32 = arith.constant 0 : i32
    %c0_i32_0 = arith.constant 0 : i32
    %c0_i32_1 = arith.constant 0 : i32
    return %c0_i32, %c0_i32_0 : i32, i32
  }
  func.func @transform_3(%arg0: i32) -> (i32, i32, i32) {
    %c0_i32 = arith.constant 0 : i32
    %c0_i32_0 = arith.constant 0 : i32
    %c0_i32_1 = arith.constant 0 : i32
    return %arg0, %c0_i32, %c0_i32_0 : i32, i32, i32
  }
}

</mosaic_0001>

<bundles_post_ra>
// kernel: _llconv2d_forward.1
= control target key start
LH: loop header
LB: loop body
LE: loop exit
PB: predicated region body
PF: predicated region fallthrough
CT: control target
= control target key end

     0   :  { %s2043_s12 = smov 0   ;;  %s3260_s0 = inlined_call_operand.vmem [shape: f32[2,4,18,18], index: 0, kind: input, shape index: {}]   ;;  %s3261_s1 = inlined_call_operand.vmem [shape: f32[8,36], index: 1, kind: input, shape index: {}]   ;;  %s3262_s2 = inlined_call_operand.vmem [shape: f32[8,1], index: 2, kind: input, shape index: {}]   ;;  %s3263_s3 = inlined_call_operand.vmem [shape: f32[2,8,256], index: 3, kind: output, shape index: {}]  }
   0x1 LB: > { %s1921_s13 = sadd.s32 4294967295, %s1996_s12   ;;  %p1925_p0 = scmp.ge.s32.totalorder %s1996_s12, 1  ;;  %s1996_s12 = sphi %s2043_s12, %s13_s12  }
   0x2   : > { %p137_p1 = scmp.lt.s32.totalorder %s1996_s12, 3 }
   0x4   : > { %p138_p2 = pnand %p1925_p0, %p137_p1 }
   0x5   : > { %p161_p3 = scmp.lt.s32.totalorder (!%p138_p2), %s1921_s13, 1  ;;  %vm193_vm0 = vcmask (!%p138_p2), 1045509   ;;  %vm196_vm1 = vcmask (!%p138_p2), 1046534   ;;  %vm199_vm2 = vcmask (!%p138_p2), 1047559   ;;  %vm180_vm3 = vcmask (!%p138_p2), 1041409   ;;  %s1998_s18 = smov (!%p138_p2), 127  }
   0x6   : > { %141 = sbr.rel (%p138_p2) target bundleno = 637 (0x27d), region = 32  ;;  %vm183_vm4 = vcmask (!%p138_p2), 1042434   ;;  %vm186_vm5 = vcmask (!%p138_p2), 1043459   ;;  %vm3264_vm6 = vcmask (!%p138_p2), 125952   ;;  %s1999_s19 = smov (!%p138_p2), 126   ;;  %vm204_vm7 = vcmask (!%p138_p2), 130052  }
   0x7   : > { %s2000_s20 = smov (!%p138_p2), 16   ;;  %s2001_s21 = smov (!%p138_p2), 15   ;;  %vm3265_vm8 = vcmask (!%p138_p2), 257152   ;;  %vm301_vm9 = vcmask (!%p138_p2), 261252   ;;  %vm390_vm10 = vcmask (!%p138_p2), 388352   ;;  %vm402_vm11 = vcmask (!%p138_p2), 392452  }
   0x8   : > { %s2002_s22 = smov (!%p138_p2), 14   ;;  %s2003_s23 = smov (!%p138_p2), 32   ;;  %vm491_vm12 = vcmask (!%p138_p2), 519552   ;;  %vm503_vm13 = vcmask (!%p138_p2), 523652   ;;  %vm592_vm14 = vcmask (!%p138_p2), 650752   ;;  %vm604_vm15 = vcmask (!%p138_p2), 654852  }
   0x9   : > { %s2004_s24 = smov (!%p138_p2), 31   ;;  %s2005_s25 = smov (!%p138_p2), 30  }
   0xa   : > { %s2006_s26 = smov (!%p138_p2), 48   ;;  %s2007_s27 = smov (!%p138_p2), 47  }
   0xb   : > { %s2008_s28 = smov (!%p138_p2), 46   ;;  %s2009_s29 = smov (!%p138_p2), 64  }
   0xc   : > { %s2010_s30 = smov (!%p138_p2), 63   ;;  %s2011_s4 = smov (!%p138_p2), 62  }
   0xd   : > { %s3271_s13 = smov (!%p161_p3, %s1921_s13), 1  ;;  %s2012_s5 = smov 80  }
   0xe   : > { %s1943_s14 = smul.u32 96, %s3271_s13  ;;  %s2013_s6 = smov 79  }
   0xf   : > { %s2014_s7 = smov 78   ;;  %s2015_s8 = smov 96  }
  0x10   : > { %s2057_s17 = scalar_lea.vmem %s3260_s0, %s1943_s14  ;;  %s2016_s9 = smov 95  }
  0x11   : > { %v979_v0 = vld [vmem:[%s2057_s17 + $0x8] sm:$0x1]  ;;  %v980_v1 = vld [vmem:[%s2057_s17 + $0x20] sm:$0x1]  ;;  %v981_v2 = vld [vmem:[%s2057_s17 + $0x38] sm:$0x1] }
  0x12   : > { %v982_v3 = vld [vmem:[%s2057_s17 + $0x50] sm:$0x1]  ;;  %v995_v4 = vrot.slane %v979_v0, 4  ;;  %v996_v5 = vrot.slane %v980_v1, 3  ;;  %v998_v6 = vrot.slane %v981_v2, 2  ;;  %v987_v7 = vrot.slane %v980_v1, 7 }
  0x13   : > { %v1000_v8 = vrot.slane %v982_v3, 1  ;;  %v171_v9 = vld [vmem:[%s2057_s17] sm:$0x1]  ;;  %v172_v10 = vld [vmem:[%s2057_s17 + $0x18] sm:$0x1]  ;;  %v989_v11 = vrot.slane %v981_v2, 6 }
  0x14   : > { %v997_v12 = vsel %vm193_vm0, %v996_v5, %v995_v4  ;;  %v173_v13 = vld [vmem:[%s2057_s17 + $0x30] sm:$0x1]  ;;  %v174_v14 = vld [vmem:[%s2057_s17 + $0x48] sm:$0x1]  ;;  %v191_v15 = vrot.slane %v171_v9, 4  ;;  %v192_v16 = vrot.slane %v172_v10, 3  ;;  %v988_v17 = vsel %vm180_vm3, %v987_v7, %v979_v0 }
  0x15   : > { %v999_v18 = vsel %vm196_vm1, %v998_v6, %v997_v12  ;;  %v195_v19 = vrot.slane %v173_v13, 2  ;;  %v198_v20 = vrot.slane %v174_v14, 1  ;;  %v990_v21 = vsel %vm183_vm4, %v989_v11, %v988_v17  ;;  %v1072_v22 = vld [vmem:[%s2057_s17 + $0x9] sm:$0x1]  ;;  %v1073_v23 = vld [vmem:[%s2057_s17 + $0x21] sm:$0x1] }
  0x16   : > { %v1001_v24 = vsel %vm199_vm2, %v1000_v8, %v999_v18  ;;  %v194_v25 = vsel %vm193_vm0, %v192_v16, %v191_v15  ;;  %v991_v26 = vrot.slane %v982_v3, 5  ;;  %v179_v27 = vrot.slane %v172_v10, 7  ;;  %v1074_v28 = vld [vmem:[%s2057_s17 + $0x39] sm:$0x1]  ;;  %v1075_v29 = vld [vmem:[%s2057_s17 + $0x51] sm:$0x1] }
  0x17   : > { %1002 = vrot.lane.b32.xlu0 %v1001_v24, %s1998_s18  ;;  %v197_v30 = vsel %vm196_vm1, %v195_v19, %v194_v25  ;;  %v182_v31 = vrot.slane %v173_v13, 6  ;;  %v185_v32 = vrot.slane %v174_v14, 5  ;;  %v1080_v33 = vrot.slane %v1073_v23, 7  ;;  %v2083_v38 = vld [vmem:[%s2057_s17 + $0xa] sm:$0x1]  ;;  %s2017_s10 = smov 94  }
  0x18   : > { %v200_v34 = vsel %vm199_vm2, %v198_v20, %v197_v30  ;;  %v992_v35 = vsel %vm186_vm5, %v991_v26, %v990_v21  ;;  %v181_v36 = vsel %vm180_vm3, %v179_v27, %v171_v9  ;;  %v1082_v37 = vrot.slane %v1074_v28, 6  ;;  %v2086_v39 = vld [vmem:[%s2057_s17 + $0x22] sm:$0x1]  ;;  %v2093_v44 = vld [vmem:[%s2057_s17 + $0x3a] sm:$0x1]  ;;  %s2018_s11 = smov 112  }
  0x19   : > { %201 = vrot.lane.b32.xlu1 %v200_v34, %s1998_s18  ;;  %994 = vst.msk [vmem:[#allocation2 + $0x8] sm:$0xf] %vm3264_vm6, %v992_v35  ;;  %v184_v40 = vsel %vm183_vm4, %v182_v31, %v181_v36  ;;  %v1081_v41 = vsel %vm180_vm3, %v1080_v33, %v1072_v22  ;;  %v1084_v42 = vrot.slane %v1075_v29, 5  ;;  %v1090_v43 = vrot.slane %v1072_v22, 4  ;;  %v2096_v45 = vld [vmem:[%s2057_s17 + $0x52] sm:$0x1] }
  0x1a   : > { %v187_v46 = vsel %vm186_vm5, %v185_v32, %v184_v40  ;;  %v1083_v47 = vsel %vm183_vm4, %v1082_v37, %v1081_v41  ;;  %v1091_v48 = vrot.slane %v1073_v23, 3  ;;  %v1093_v49 = vrot.slane %v1074_v28, 2  ;;  %v273_v50 = vld [vmem:[%s2057_s17 + $0x19] sm:$0x1]  ;;  %v274_v51 = vld [vmem:[%s2057_s17 + $0x31] sm:$0x1] }
  0x1b   : > { %1006 = vrot.lane.b32.xlu0 %v992_v35, %s1999_s19  ;;  %190 = vst.msk [vmem:[#allocation2] sm:$0xf] %vm3264_vm6, %v187_v46  ;;  %v1095_v52 = vrot.slane %v1075_v29, 1  ;;  %v1113_v53 = vrot.slane %v2083_v38, 4  ;;  %v1114_v54 = vrot.slane %v2086_v39, 3  ;;  %v1085_v56 = vsel %vm186_vm5, %v1084_v42, %v1083_v47  ;;  %s2019_s14 = smov 111  }
  0x1c   : > { %v272_v55 = vld [vmem:[%s2057_s17 + $0x1] sm:$0x1]  ;;  %v1092_v57 = vsel %vm193_vm0, %v1091_v48, %v1090_v43  ;;  %v1116_v58 = vrot.slane %v2093_v44, 2  ;;  %v275_v59 = vld [vmem:[%s2057_s17 + $0x49] sm:$0x1]  ;;  %v280_v60 = vrot.slane %v273_v50, 7 }
  0x1d   : > { %206 = vrot.lane.b32.xlu1 %v187_v46, %s1999_s19  ;;  %v1094_v61 = vsel %vm196_vm1, %v1093_v49, %v1092_v57  ;;  %v1115_v62 = vsel %vm193_vm0, %v1114_v54, %v1113_v53  ;;  %v282_v63 = vrot.slane %v274_v51, 6  ;;  %v2115_v0 = vld [vmem:[%s2057_s17 + $0x2] sm:$0x1]  ;;  %v2118_v1 = vld [vmem:[%s2057_s17 + $0x1a] sm:$0x1]  ;;  %v1118_v3 = vrot.slane %v2096_v45, 1 }
  0x1e   : > { %v1096_v2 = vsel %vm199_vm2, %v1095_v52, %v1094_v61  ;;  %v281_v4 = vsel %vm180_vm3, %v280_v60, %v272_v55  ;;  %v291_v5 = vrot.slane %v272_v55, 4  ;;  %v1117_v6 = vsel %vm196_vm1, %v1116_v58, %v1115_v62  ;;  %v1172_v9 = vld [vmem:[%s2057_s17 + $0x22] sm:$0x1]  ;;  %v2127_v11 = vld [vmem:[%s2057_s17 + $0x32] sm:$0x1]  ;;  %s2020_s15 = smov 110  }
  0x1f   : > { %1086 = vrot.lane.b32.xlu0 %v1085_v56, %s2000_s20  ;;  %v292_v7 = vrot.slane %v273_v50, 3  ;;  %v294_v8 = vrot.slane %v274_v51, 2  ;;  %v284_v10 = vrot.slane %v275_v59, 5  ;;  %v315_v12 = vrot.slane %v2115_v0, 4  ;;  %v1171_v16 = vld [vmem:[%s2057_s17 + $0xa] sm:$0x1] }
  0x20   : > { %v316_v13 = vrot.slane %v2118_v1, 3  ;;  %v283_v14 = vsel %vm183_vm4, %v282_v63, %v281_v4  ;;  %v2136_v17 = vsel %vm199_vm2, %v1118_v3, %v1117_v6  ;;  %v296_v18 = vrot.slane %v275_v59, 1  ;;  %v1173_v19 = vld [vmem:[%s2057_s17 + $0x3a] sm:$0x1]  ;;  %v2142_v22 = vld [vmem:[%s2057_s17 + $0x4a] sm:$0x1] }
  0x21   : > { %1097 = vrot.lane.b32.xlu1 %v1096_v2, %s2001_s21  ;;  %v293_v15 = vsel %vm193_vm0, %v292_v7, %v291_v5  ;;  %v1179_v20 = vrot.slane %v1172_v9, 7  ;;  %v318_v23 = vrot.slane %v2127_v11, 2  ;;  %v285_v24 = vsel %vm186_vm5, %v284_v10, %v283_v14  ;;  %v1174_v26 = vld [vmem:[%s2057_s17 + $0x52] sm:$0x1]  ;;  %v2151_v30 = vld [vmem:[%s2057_s17 + $0xb] sm:$0x1] }
  0x22   : > { %v295_v21 = vsel %vm196_vm1, %v294_v8, %v293_v15  ;;  %v317_v25 = vsel %vm193_vm0, %v316_v13, %v315_v12  ;;  %v1189_v27 = vrot.slane %v1171_v16, 4  ;;  %v1190_v28 = vrot.slane %v1172_v9, 3  ;;  %v2154_v31 = vld [vmem:[%s2057_s17 + $0x23] sm:$0x1]  ;;  %v374_v37 = vld [vmem:[%s2057_s17 + $0x1a] sm:$0x1] }
  0x23   : > { %1101 = vrot.lane.b32.xlu0 %v1085_v56, %s2002_s22  ;;  %v1181_v29 = vrot.slane %v1173_v19, 6  ;;  %v297_v32 = vsel %vm199_vm2, %v296_v18, %v295_v21  ;;  %v320_v33 = vrot.slane %v2142_v22, 1  ;;  %v1180_v34 = vsel %vm180_vm3, %v1179_v20, %v1171_v16  ;;  %v2164_v42 = vld [vmem:[%s2057_s17 + $0x3b] sm:$0x1]  ;;  %v373_v48 = vld [vmem:[%s2057_s17 + $0x2] sm:$0x1] }
  0x24   : > { %v319_v35 = vsel %vm196_vm1, %v318_v23, %v317_v25  ;;  %v1192_v36 = vrot.slane %v1173_v19, 2  ;;  %v1183_v40 = vrot.slane %v1174_v26, 5  ;;  %v1191_v41 = vsel %vm193_vm0, %v1190_v28, %v1189_v27  ;;  %v375_v51 = vld [vmem:[%s2057_s17 + $0x32] sm:$0x1]  ;;  %v2178_v54 = vld [vmem:[%s2057_s17 + $0x53] sm:$0x1] }
  0x25   : > { %1120 = vrot.lane.b32.xlu1 %v2136_v17, %s2000_s20  ;;  %v1212_v43 = vrot.slane %v2151_v30, 4  ;;  %v1213_v46 = vrot.slane %v2154_v31, 3  ;;  %v1182_v47 = vsel %vm183_vm4, %v1181_v29, %v1180_v34  ;;  %v2172_v49 = vsel %vm199_vm2, %v320_v33, %v319_v35  ;;  %v376_v58 = vld [vmem:[%s2057_s17 + $0x4a] sm:$0x1]  ;;  %v2187_v62 = vld [vmem:[%s2057_s17 + $0x3] sm:$0x1] }
  0x26   : > { %v1194_v50 = vrot.slane %v1174_v26, 1  ;;  %v381_v52 = vrot.slane %v374_v37, 7  ;;  %v1193_v53 = vsel %vm196_vm1, %v1192_v36, %v1191_v41  ;;  %v1215_v55 = vrot.slane %v2164_v42, 2  ;;  %v2190_v63 = vld [vmem:[%s2057_s17 + $0x1b] sm:$0x1] }
  0x27   : > { %286 = vrot.lane.b32.xlu0 %v285_v24, %s2000_s20  ;;  %v1184_v56 = vsel %vm186_vm5, %v1183_v40, %v1182_v47  ;;  %v1214_v57 = vsel %vm193_vm0, %v1213_v46, %v1212_v43  ;;  %v392_v59 = vrot.slane %v373_v48, 4  ;;  %v393_v60 = vrot.slane %v374_v37, 3  ;;  %v1271_v7 = vld [vmem:[%s2057_s17 + $0x23] sm:$0x1]  ;;  %v2200_v10 = vld [vmem:[%s2057_s17 + $0x33] sm:$0x1] }
  0x28   : > { %v383_v61 = vrot.slane %v375_v51, 6  ;;  %v1195_v2 = vsel %vm199_vm2, %v1194_v50, %v1193_v53  ;;  %v1217_v3 = vrot.slane %v2178_v54, 1  ;;  %v382_v4 = vsel %vm180_vm3, %v381_v52, %v373_v48  ;;  %v2207_v15 = vld [vmem:[%s2057_s17 + $0x4b] sm:$0x1]  ;;  %v1272_v20 = vld [vmem:[%s2057_s17 + $0x3b] sm:$0x1] }
  0x29   : > { %298 = vrot.lane.b32.xlu1 %v297_v32, %s2001_s21  ;;  %v1216_v5 = vsel %vm196_vm1, %v1215_v55, %v1214_v57  ;;  %v395_v6 = vrot.slane %v375_v51, 2  ;;  %v385_v8 = vrot.slane %v376_v58, 5  ;;  %v394_v9 = vsel %vm193_vm0, %v393_v60, %v392_v59  ;;  %v1270_v16 = vld [vmem:[%s2057_s17 + $0xb] sm:$0x1]  ;;  %v2215_v23 = vld [vmem:[%s2057_s17 + $0x9] sm:$0x1] }
  0x2a   : > { %v416_v12 = vrot.slane %v2187_v62, 4  ;;  %v417_v13 = vrot.slane %v2190_v63, 3  ;;  %v384_v14 = vsel %vm183_vm4, %v383_v61, %v382_v4  ;;  %v2211_v18 = vsel %vm199_vm2, %v1217_v3, %v1216_v5  ;;  %v1273_v26 = vld [vmem:[%s2057_s17 + $0x53] sm:$0x1]  ;;  %v2222_v27 = vld [vmem:[%s2057_s17 + $0xc] sm:$0x1] }
  0x2b   : > { %303 = vrot.lane.b32.xlu0 %v285_v24, %s2002_s22  ;;  %v397_v19 = vrot.slane %v376_v58, 1  ;;  %v1278_v21 = vrot.slane %v1271_v7, 7  ;;  %v396_v24 = vsel %vm196_vm1, %v395_v6, %v394_v9  ;;  %v419_v25 = vrot.slane %v2200_v10, 2  ;;  %v2227_v34 = vld [vmem:[%s2057_s17 + $0x24] sm:$0x1] }
  0x2c   : > { %v386_v28 = vsel %vm186_vm5, %v385_v8, %v384_v14  ;;  %v418_v29 = vsel %vm193_vm0, %v417_v13, %v416_v12  ;;  %v1288_v32 = vrot.slane %v1270_v16, 4  ;;  %v1289_v33 = vrot.slane %v1271_v7, 3  ;;  %v2230_v35 = vld [vmem:[%s2057_s17 + $0x21] sm:$0x1]  ;;  %v2235_v37 = vld [vmem:[%s2057_s17 + $0x39] sm:$0x1] }
  0x2d   : > { %322 = vrot.lane.b32.xlu1 %v2172_v49, %s2000_s20  ;;  %v1280_v36 = vrot.slane %v1272_v20, 6  ;;  %v2238_v40 = vld [vmem:[%s2057_s17 + $0x51] sm:$0x1]  ;;  %v1018_v41 = vrot.slane %v2215_v23, 4  ;;  %v398_v43 = vsel %vm199_vm2, %v397_v19, %v396_v24  ;;  %v421_v46 = vrot.slane %v2207_v15, 1 }
  0x2e   : > { %v1279_v47 = vsel %vm180_vm3, %v1278_v21, %v1270_v16  ;;  %v1282_v48 = vrot.slane %v1273_v26, 5  ;;  %v420_v50 = vsel %vm196_vm1, %v419_v25, %v418_v29  ;;  %v1291_v51 = vrot.slane %v1272_v20, 2  ;;  %v475_v53 = vld [vmem:[%s2057_s17 + $0x1b] sm:$0x1]  ;;  %v2251_v57 = vld [vmem:[%s2057_s17 + $0x3c] sm:$0x1] }
  0x2f   : > { %1185 = vrot.lane.b32.xlu0 %v1184_v56, %s2003_s23  ;;  %v1311_v52 = vrot.slane %v2222_v27, 4  ;;  %v1019_v55 = vrot.slane %v2230_v35, 3  ;;  %v1312_v58 = vrot.slane %v2227_v34, 3  ;;  %v1021_v59 = vrot.slane %v2235_v37, 2  ;;  %v476_v6 = vld [vmem:[%s2057_s17 + $0x33] sm:$0x1] }
  0x30   : > { %v1023_v60 = vrot.slane %v2238_v40, 1  ;;  %v1281_v61 = vsel %vm183_vm4, %v1280_v36, %v1279_v47  ;;  %v2261_v4 = vsel %vm199_vm2, %v421_v46, %v420_v50  ;;  %v1293_v5 = vrot.slane %v1273_v26, 1  ;;  %v2268_v12 = vld [vmem:[%s2057_s17 + $0x54] sm:$0x1]  ;;  %v477_v20 = vld [vmem:[%s2057_s17 + $0x4b] sm:$0x1] }
  0x31   : > { %1196 = vrot.lane.b32.xlu1 %v1195_v2, %s2004_s24  ;;  %v474_v2 = vld [vmem:[%s2057_s17 + $0x3] sm:$0x1]  ;;  %v1020_v3 = vsel %vm193_vm0, %v1019_v55, %v1018_v41  ;;  %v482_v7 = vrot.slane %v475_v53, 7  ;;  %v1314_v13 = vrot.slane %v2251_v57, 2  ;;  %v1283_v16 = vsel %vm186_vm5, %v1282_v48, %v1281_v61  ;;  %v509_v25 = vld [vmem:[%s2057_s17 + $0x4] sm:$0x1] }
  0x32   : > { %v1022_v8 = vsel %vm196_vm1, %v1021_v59, %v1020_v3  ;;  %v1313_v19 = vsel %vm193_vm0, %v1312_v58, %v1311_v52  ;;  %v493_v21 = vrot.slane %v474_v2, 4  ;;  %v494_v24 = vrot.slane %v475_v53, 3  ;;  %v511_v46 = vld [vmem:[%s2057_s17 + $0x34] sm:$0x1]  ;;  %v2292_v52 = vld [vmem:[%s2057_s17 + $0xa] sm:$0x1] }
  0x33   : > { %1200 = vrot.lane.b32.xlu0 %v1184_v56, %s2005_s25  ;;  %v1290_v56 = vsel %vm193_vm0, %v1289_v33, %v1288_v32  ;;  %v2272_v14 = vsel %vm199_vm2, %v1023_v60, %v1022_v8  ;;  %v484_v26 = vrot.slane %v476_v6, 6  ;;  %v1316_v32 = vrot.slane %v2268_v12, 1  ;;  %v2295_v53 = vld [vmem:[%s2057_s17 + $0x1] sm:$0x1]  ;;  %v2300_v58 = vld [vmem:[%s2057_s17 + $0x22] sm:$0x1] }
  0x34   : > { %v1292_v9 = vsel %vm196_vm1, %v1291_v51, %v1290_v56  ;;  %1026 = vst.msk [vmem:[#allocation2 + $0x18] sm:$0xf0] %vm204_vm7, %v2272_v14  ;;  %v483_v33 = vsel %vm180_vm3, %v482_v7, %v474_v2  ;;  %v1315_v36 = vsel %vm196_vm1, %v1314_v13, %v1313_v19  ;;  %v486_v41 = vrot.slane %v477_v20, 5  ;;  %v2303_v59 = vld [vmem:[%s2057_s17 + $0x19] sm:$0x1] }
  0x35   : > { %1219 = vrot.lane.b32.xlu1 %v2211_v18, %s2003_s23  ;;  %v1294_v29 = vsel %vm199_vm2, %v1293_v5, %v1292_v9  ;;  %v517_v47 = vrot.slane %v509_v25, 4  ;;  %v495_v48 = vsel %vm193_vm0, %v494_v24, %v493_v21  ;;  %v1027_v51 = vrot.slane %v2230_v35, 7  ;;  %v2310_v2 = vld [vmem:[%s2057_s17 + $0x31] sm:$0x1]  ;;  %v2313_v3 = vld [vmem:[%s2057_s17 + $0x49] sm:$0x1] }
  0x36   : > { %v485_v55 = vsel %vm183_vm4, %v484_v26, %v483_v33  ;;  %v498_v56 = vrot.slane %v477_v20, 1  ;;  %v218_v60 = vrot.slane %v2295_v53, 4  ;;  %v2307_v61 = vsel %vm199_vm2, %v1316_v32, %v1315_v36  ;;  %v512_v7 = vld [vmem:[%s2057_s17 + $0x4c] sm:$0x1]  ;;  %v1370_v26 = vld [vmem:[%s2057_s17 + $0x24] sm:$0x1] }
  0x37   : > { %387 = vrot.lane.b32.xlu0 %v386_v28, %s2003_s23  ;;  %v520_v35 = vrot.slane %v511_v46, 2  ;;  %v219_v5 = vrot.slane %v2303_v59, 3  ;;  %v1029_v8 = vrot.slane %v2235_v37, 6  ;;  %v221_v9 = vrot.slane %v2310_v2, 2 }
  0x38   : > { %v223_v13 = vrot.slane %v2313_v3, 1  ;;  %v487_v19 = vsel %vm186_vm5, %v486_v41, %v485_v55  ;;  %v1028_v21 = vsel %vm180_vm3, %v1027_v51, %v2215_v23  ;;  %v1057_v37 = vrot.slane %v2292_v52, 4 }
  0x39   : > { %399 = vrot.lane.b32.xlu1 %v398_v43, %s2004_s24  ;;  %v496_v43 = vrot.slane %v476_v6, 2  ;;  %v220_v24 = vsel %vm193_vm0, %v219_v5, %v218_v60  ;;  %v1058_v25 = vrot.slane %v2300_v58, 3  ;;  %v522_v32 = vrot.slane %v512_v7, 1  ;;  %v1403_v5 = vld [vmem:[%s2057_s17 + $0x25] sm:$0x1] }
  0x3a   : > { %v1031_v23 = vrot.slane %v2238_v40, 5  ;;  %v1030_v41 = vsel %vm183_vm4, %v1029_v8, %v1028_v21  ;;  %v1369_v40 = vld [vmem:[%s2057_s17 + $0xc] sm:$0x1]  ;;  %v1388_v55 = vrot.slane %v1370_v26, 3  ;;  %v1372_v7 = vld [vmem:[%s2057_s17 + $0x54] sm:$0x1] }
  0x3b   : > { %404 = vrot.lane.b32.xlu0 %v386_v28, %s2005_s25  ;;  %v510_v28 = vld [vmem:[%s2057_s17 + $0x1c] sm:$0x1]  ;;  %v497_v6 = vsel %vm196_vm1, %v496_v43, %v495_v48  ;;  %v2345_v43 = vld [vmem:[%s2057_s17 + $0x52] sm:$0x1]  ;;  %v1377_v48 = vrot.slane %v1370_v26, 7  ;;  %v1387_v51 = vrot.slane %v1369_v40, 4 }
  0x3c   : > { %v518_v50 = vrot.slane %v510_v28, 3  ;;  %v222_v28 = vsel %vm196_vm1, %v221_v9, %v220_v24  ;;  %v1032_v60 = vsel %vm186_vm5, %v1031_v23, %v1030_v41  ;;  %v1124_v9 = vrot.slane %v2086_v39, 7 }
  0x3d   : > { %423 = vrot.lane.b32.xlu1 %v2261_v4, %s2003_s23  ;;  %v2339_v33 = vsel %vm199_vm2, %v223_v13, %v222_v28  ;;  %v1126_v13 = vrot.slane %v2093_v44, 6  ;;  %v1378_v21 = vsel %vm180_vm3, %v1377_v48, %v1369_v40  ;;  %v1411_v28 = vrot.slane %v1403_v5, 3  ;;  %v2388_v48 = vld [vmem:[%s2057_s17 + $0x2] sm:$0x1] }
  0x3e   : > { %v519_v20 = vsel %vm193_vm0, %v518_v50, %v517_v47  ;;  %226 = vst.msk [vmem:[#allocation2 + $0x10] sm:$0xf0] %vm204_vm7, %v2339_v33  ;;  %v1371_v47 = vld [vmem:[%s2057_s17 + $0x3c] sm:$0x1]  ;;  %v1059_v50 = vsel %vm193_vm0, %v1058_v25, %v1057_v37  ;;  %v1128_v37 = vrot.slane %v2096_v45, 5  ;;  %v1125_v39 = vsel %vm180_vm3, %v1124_v9, %v2083_v38 }
  0x3f   : > { %1284 = vrot.lane.b32.xlu0 %v1283_v16, %s2006_s26  ;;  %v521_v36 = vsel %vm196_vm1, %v520_v35, %v519_v20  ;;  %v1402_v35 = vld [vmem:[%s2057_s17 + $0xd] sm:$0x1]  ;;  %v1379_v8 = vrot.slane %v1371_v47, 6  ;;  %v1390_v24 = vrot.slane %v1371_v47, 2  ;;  %v1404_v25 = vld [vmem:[%s2057_s17 + $0x3d] sm:$0x1] }
  0x40   : > { %v1410_v26 = vrot.slane %v1402_v35, 4  ;;  %v1381_v44 = vrot.slane %v1372_v7, 5  ;;  %v1413_v40 = vrot.slane %v1404_v25, 2  ;;  %v227_v38 = vrot.slane %v2303_v59, 7  ;;  %v576_v35 = vld [vmem:[%s2057_s17 + $0x1c] sm:$0x1] }
  0x41   : > { %1295 = vrot.lane.b32.xlu1 %v1294_v29, %s2007_s27  ;;  %v499_v29 = vsel %vm199_vm2, %v498_v56, %v497_v6  ;;  %v2355_v56 = vsel %vm199_vm2, %v522_v32, %v521_v36  ;;  %v1062_v6 = vrot.slane %v2345_v43, 1  ;;  %v1380_v45 = vsel %vm183_vm4, %v1379_v8, %v1378_v21  ;;  %v575_v9 = vld [vmem:[%s2057_s17 + $0x4] sm:$0x1]  ;;  %v577_v21 = vld [vmem:[%s2057_s17 + $0x34] sm:$0x1] }
  0x42   : > { %v1392_v32 = vrot.slane %v1372_v7, 1  ;;  %v1412_v47 = vsel %vm193_vm0, %v1411_v28, %v1410_v26  ;;  %v229_v59 = vrot.slane %v2310_v2, 6  ;;  %v228_v5 = vsel %vm180_vm3, %v227_v38, %v2295_v53  ;;  %v2419_v25 = vld [vmem:[%s2057_s17 + $0x4a] sm:$0x1] }
  0x43   : > { %1299 = vrot.lane.b32.xlu0 %v1283_v16, %s2008_s28  ;;  %v2330_v16 = vld [vmem:[%s2057_s17 + $0x3a] sm:$0x1]  ;;  %v257_v7 = vrot.slane %v2388_v48, 4  ;;  %v326_v2 = vrot.slane %v2118_v1, 7  ;;  %v583_v53 = vrot.slane %v576_v35, 7  ;;  %v594_v26 = vrot.slane %v575_v9, 4 }
  0x44   : > { %v1060_v46 = vrot.slane %v2330_v16, 2  ;;  %v595_v28 = vrot.slane %v576_v35, 3  ;;  %v1139_v35 = vld [vmem:[%s2057_s17 + $0x23] sm:$0x1] }
  0x45   : > { %1318 = vrot.lane.b32.xlu1 %v2307_v61, %s2006_s26 }
  0x46   : > { %v1061_v20 = vsel %vm196_vm1, %v1060_v46, %v1059_v50  ;;  %v1405_v46 = vld [vmem:[%s2057_s17 + $0x55] sm:$0x1]  ;;  %v2391_v50 = vld [vmem:[%s2057_s17 + $0x1a] sm:$0x1] }
  0x47   : > { %488 = vrot.lane.b32.xlu0 %v487_v19, %s2006_s26  ;;  %v1063_v36 = vsel %vm199_vm2, %v1062_v6, %v1061_v20  ;;  %v2402_v6 = vld [vmem:[%s2057_s17 + $0x32] sm:$0x1]  ;;  %v258_v8 = vrot.slane %v2391_v50, 3  ;;  %v231_v20 = vrot.slane %v2313_v3, 5 }
  0x48   : > { %v260_v1 = vrot.slane %v2402_v6, 2 }
  0x49   : > { %500 = vrot.lane.b32.xlu1 %v499_v29, %s2007_s27  ;;  %v1127_v29 = vsel %vm183_vm4, %v1126_v13, %v1125_v39  ;;  %v328_v13 = vrot.slane %v2127_v11, 6  ;;  %v327_v11 = vsel %vm180_vm3, %v326_v2, %v2115_v0  ;;  %v259_v3 = vsel %vm193_vm0, %v258_v8, %v257_v7  ;;  %v613_v8 = vld [vmem:[%s2057_s17 + $0x4d] sm:$0x1] }
  0x4a   : > { %v2378_v23 = vsel %vm186_vm5, %v1128_v37, %v1127_v29  ;;  %v610_v29 = vld [vmem:[%s2057_s17 + $0x5] sm:$0x1]  ;;  %v1223_v2 = vrot.slane %v2154_v31, 7 }
  0x4b   : > { %505 = vrot.lane.b32.xlu0 %v487_v19, %s2008_s28  ;;  %v1389_v19 = vsel %vm193_vm0, %v1388_v55, %v1387_v51  ;;  %v1382_v51 = vsel %vm186_vm5, %v1381_v44, %v1380_v45  ;;  %v329_v39 = vsel %vm183_vm4, %v328_v13, %v327_v11  ;;  %v585_v44 = vrot.slane %v577_v21, 6  ;;  %v611_v45 = vld [vmem:[%s2057_s17 + $0x1d] sm:$0x1] }
  0x4c   : > { %v1391_v41 = vsel %vm196_vm1, %v1390_v24, %v1389_v19  ;;  %v330_v24 = vrot.slane %v2142_v22, 5  ;;  %v230_v19 = vsel %vm183_vm4, %v229_v59, %v228_v5  ;;  %v578_v22 = vld [vmem:[%s2057_s17 + $0x4c] sm:$0x1]  ;;  %v1225_v13 = vrot.slane %v2164_v42, 6 }
  0x4d   : > { %524 = vrot.lane.b32.xlu1 %v2355_v56, %s2006_s26  ;;  %v1393_v55 = vsel %vm199_vm2, %v1392_v32, %v1391_v41  ;;  %v232_v0 = vsel %vm186_vm5, %v231_v20, %v230_v19  ;;  %v584_v41 = vsel %vm180_vm3, %v583_v53, %v575_v9  ;;  %v587_v38 = vrot.slane %v578_v22, 5  ;;  %v1140_v53 = vld [vmem:[%s2057_s17 + $0x3b] sm:$0x1] }
  0x4e   : > { %v2431_v32 = vsel %vm186_vm5, %v330_v24, %v329_v39  ;;  %v586_v59 = vsel %vm183_vm4, %v585_v44, %v584_v41  ;;  %v599_v5 = vrot.slane %v578_v22, 1  ;;  %v1146_v24 = vrot.slane %v1139_v35, 7  ;;  %v1141_v22 = vld [vmem:[%s2057_s17 + $0x53] sm:$0x1] }
  0x4f   : > { %1033 = vrot.lane.b32.xlu0 %v1032_v60, %s1998_s18  ;;  %v1415_v60 = vrot.slane %v1405_v46, 1  ;;  %v261_v46 = vsel %vm196_vm1, %v260_v1, %v259_v3  ;;  %v588_v20 = vsel %vm186_vm5, %v587_v38, %v586_v59  ;;  %v1227_v19 = vrot.slane %v2178_v54, 5  ;;  %v1469_v54 = vld [vmem:[%s2057_s17 + $0x25] sm:$0x1] }
  0x50   : > { %v1224_v1 = vsel %vm180_vm3, %v1223_v2, %v2151_v30  ;;  %v623_v42 = vrot.slane %v613_v8, 1  ;;  %v1157_v44 = vrot.slane %v1139_v35, 3  ;;  %v1476_v41 = vrot.slane %v1469_v54, 7  ;;  %v2485_v35 = vld [vmem:[%s2057_s17 + $0x26] sm:$0x1] }
  0x51   : > { %1037 = vrot.lane.b32.xlu1 %v2272_v14, %s1999_s19  ;;  %v1414_v14 = vsel %vm196_vm1, %v1413_v40, %v1412_v47  ;;  %v597_v40 = vrot.slane %v577_v21, 2  ;;  %v596_v47 = vsel %vm193_vm0, %v595_v28, %v594_v26  ;;  %v1226_v11 = vsel %vm183_vm4, %v1225_v13, %v1224_v1 }
  0x52   : > { %v2415_v37 = vsel %vm199_vm2, %v1415_v60, %v1414_v14  ;;  %v619_v60 = vrot.slane %v611_v45, 3  ;;  %v1148_v26 = vrot.slane %v1140_v53, 6  ;;  %v2466_v28 = vsel %vm186_vm5, %v1227_v19, %v1226_v11  ;;  %v2518_v11 = vld [vmem:[%s2057_s17 + $0x56] sm:$0x1] }
  0x53   : > { %1064 = vrot.lane.b32.xlu0 %v1063_v36, %s1998_s18  ;;  %v262_v36 = vrot.slane %v2419_v25, 1  ;;  %v598_v7 = vsel %vm196_vm1, %v597_v40, %v596_v47  ;;  %v1159_v40 = vrot.slane %v1140_v53, 2  ;;  %v1471_v47 = vld [vmem:[%s2057_s17 + $0x55] sm:$0x1]  ;;  %v1161_v8 = vrot.slane %v1141_v22, 1 }
  0x54   : > { %v600_v31 = vsel %vm199_vm2, %v599_v5, %v598_v7  ;;  %v429_v5 = vrot.slane %v2200_v10, 6  ;;  %v431_v2 = vrot.slane %v2207_v15, 5  ;;  %v2501_v53 = vld [vmem:[%s2057_s17 + $0x3e] sm:$0x1]  ;;  %v1510_v15 = vrot.slane %v2485_v35, 3 }
  0x55   : > { %1383 = vrot.lane.b32.xlu1 %v1382_v51, %s2009_s29  ;;  %v263_v14 = vsel %vm199_vm2, %v262_v36, %v261_v46  ;;  %v1470_v36 = vld [vmem:[%s2057_s17 + $0x3d] sm:$0x1]  ;;  %v1491_v1 = vrot.slane %v1471_v47, 1 }
  0x56   : > { %v1478_v59 = vrot.slane %v1470_v36, 6 }
  0x57   : > { %1394 = vrot.lane.b32.xlu0 %v1393_v55, %s2010_s30  ;;  %v618_v55 = vrot.slane %v610_v29, 4  ;;  %v1468_v29 = vld [vmem:[%s2057_s17 + $0xd] sm:$0x1] }
  0x59   : > { %1398 = vrot.lane.b32.xlu1 %v1382_v51, %s2011_s4  ;;  %v612_v51 = vld [vmem:[%s2057_s17 + $0x35] sm:$0x1]  ;;  %v620_v21 = vsel %vm193_vm0, %v619_v60, %v618_v55  ;;  %v1487_v55 = vrot.slane %v1469_v54, 3  ;;  %v2480_v60 = vld [vmem:[%s2057_s17 + $0xe] sm:$0x1] }
  0x5a   : > { %v621_v9 = vrot.slane %v612_v51, 2  ;;  %v1486_v51 = vrot.slane %v1468_v29, 4  ;;  %v342_v54 = vld [vmem:[%s2057_s17 + $0x33] sm:$0x1] }
  0x5b   : > { %1417 = vrot.lane.b32.xlu0 %v2415_v37, %s2009_s29 }
  0x5c   : > { %v622_v3 = vsel %vm196_vm1, %v621_v9, %v620_v21  ;;  %v1477_v9 = vsel %vm180_vm3, %v1476_v41, %v1468_v29  ;;  %v1489_v21 = vrot.slane %v1470_v36, 2  ;;  %v1488_v10 = vsel %vm193_vm0, %v1487_v55, %v1486_v51  ;;  %v343_v36 = vld [vmem:[%s2057_s17 + $0x4b] sm:$0x1]  ;;  %v678_v55 = vld [vmem:[%s2057_s17 + $0x35] sm:$0x1] }
  0x5d   : > { %233 = vrot.lane.b32.xlu1 %v232_v0, %s1998_s18  ;;  %v2472_v45 = vsel %vm199_vm2, %v623_v42, %v622_v3  ;;  %v1150_v0 = vrot.slane %v1141_v22, 5  ;;  %v1479_v19 = vsel %vm183_vm4, %v1478_v59, %v1477_v9  ;;  %v350_v41 = vrot.slane %v342_v54, 6 }
  0x5e   : > { %v1490_v42 = vsel %vm196_vm1, %v1489_v21, %v1488_v10  ;;  %v686_v21 = vrot.slane %v678_v55, 6  ;;  %v2549_v10 = vld [vmem:[%s2057_s17 + $0x1e] sm:$0x1] }
  0x5f   : > { %237 = vrot.lane.b32.xlu0 %v2339_v33, %s1999_s19  ;;  %v1138_v33 = vld [vmem:[%s2057_s17 + $0xb] sm:$0x1] }
  0x60   : > { %v1147_v39 = vsel %vm180_vm3, %v1146_v24, %v1138_v33  ;;  %v1156_v30 = vrot.slane %v1138_v33, 4  ;;  %v1509_v24 = vrot.slane %v2480_v60, 4 }
  0x61   : > { %264 = vrot.lane.b32.xlu1 %v263_v14, %s1998_s18  ;;  %v1149_v46 = vsel %vm183_vm4, %v1148_v26, %v1147_v39  ;;  %v427_v14 = vrot.slane %v2190_v63, 7  ;;  %v340_v26 = vld [vmem:[%s2057_s17 + $0x3] sm:$0x1] }
  0x62   : > { %v1158_v38 = vsel %vm193_vm0, %v1157_v44, %v1156_v30  ;;  %v2490_v7 = vsel %vm186_vm5, %v1150_v0, %v1149_v46  ;;  %v1511_v22 = vsel %vm193_vm0, %v1510_v15, %v1509_v24  ;;  %v1492_v30 = vsel %vm199_vm2, %v1491_v1, %v1490_v42  ;;  %v677_v0 = vld [vmem:[%s2057_s17 + $0x1d] sm:$0x1]  ;;  %v2560_v42 = vld [vmem:[%s2057_s17 + $0x36] sm:$0x1] }
  0x63   : > { %589 = vrot.lane.b32.xlu0 %v588_v20, %s2009_s29  ;;  %v1160_v13 = vsel %vm196_vm1, %v1159_v40, %v1158_v38  ;;  %v428_v63 = vsel %vm180_vm3, %v427_v14, %v2187_v62  ;;  %v1514_v44 = vrot.slane %v2518_v11, 1  ;;  %v358_v46 = vrot.slane %v340_v26, 4 }
  0x64   : > { %v1162_v62 = vsel %vm199_vm2, %v1161_v8, %v1160_v13  ;;  %v684_v59 = vrot.slane %v677_v0, 7  ;;  %v352_v14 = vrot.slane %v343_v36, 5  ;;  %v363_v24 = vrot.slane %v343_v36, 1 }
  0x65   : > { %601 = vrot.lane.b32.xlu1 %v600_v31, %s2010_s30  ;;  %v341_v31 = vld [vmem:[%s2057_s17 + $0x1b] sm:$0x1] }
  0x66   : > { %v348_v39 = vrot.slane %v341_v31, 7  ;;  %v359_v40 = vrot.slane %v341_v31, 3 }
  0x67   : > { %606 = vrot.lane.b32.xlu0 %v588_v20, %s2011_s4  ;;  %v1480_v20 = vrot.slane %v1471_v47, 5  ;;  %v676_v47 = vld [vmem:[%s2057_s17 + $0x5] sm:$0x1] }
  0x68   : > { %v349_v38 = vsel %vm180_vm3, %v348_v39, %v340_v26  ;;  %v360_v9 = vsel %vm193_vm0, %v359_v40, %v358_v46  ;;  %v695_v13 = vrot.slane %v676_v47, 4  ;;  %v685_v15 = vsel %vm180_vm3, %v684_v59, %v676_v47  ;;  %v2572_v39 = vld [vmem:[%s2057_s17 + $0x4e] sm:$0x1]  ;;  %v1239_v46 = vld [vmem:[%s2057_s17 + $0x3c] sm:$0x1] }
  0x69   : > { %625 = vrot.lane.b32.xlu1 %v2472_v45, %s2009_s29  ;;  %v1481_v3 = vsel %vm186_vm5, %v1480_v20, %v1479_v19  ;;  %v351_v8 = vsel %vm183_vm4, %v350_v41, %v349_v38  ;;  %v696_v20 = vrot.slane %v677_v0, 3  ;;  %v1237_v0 = vld [vmem:[%s2057_s17 + $0xc] sm:$0x1]  ;;  %v724_v41 = vrot.slane %v2572_v39, 1  ;;  %v1568_v47 = vld [vmem:[%s2057_s17 + $0x26] sm:$0x1] }
  0x6a   : > { %v1255_v59 = vrot.slane %v1237_v0, 4 }
  0x6b   : > { %1130 = vrot.lane.b32.xlu0 %v2378_v23, %s2001_s21  ;;  %v430_v23 = vsel %vm183_vm4, %v429_v5, %v428_v63  ;;  %v361_v5 = vrot.slane %v342_v54, 2  ;;  %v2546_v63 = vld [vmem:[%s2057_s17 + $0x6] sm:$0x1]  ;;  %v697_v31 = vsel %vm193_vm0, %v696_v20, %v695_v13  ;;  %v1575_v20 = vrot.slane %v1568_v47, 7 }
  0x6c   : > { %v2510_v33 = vsel %vm186_vm5, %v431_v2, %v430_v23  ;;  %v679_v2 = vld [vmem:[%s2057_s17 + $0x4d] sm:$0x1]  ;;  %v2555_v23 = vsel %vm186_vm5, %v352_v14, %v351_v8  ;;  %v1567_v8 = vld [vmem:[%s2057_s17 + $0xe] sm:$0x1] }
  0x6d   : > { %1134 = vrot.lane.b32.xlu1 %v2136_v17, %s2002_s22  ;;  %v1512_v17 = vrot.slane %v2501_v53, 2  ;;  %v362_v19 = vsel %vm196_vm1, %v361_v5, %v360_v9  ;;  %v688_v1 = vrot.slane %v679_v2, 5  ;;  %v700_v26 = vrot.slane %v679_v2, 1  ;;  %v1569_v9 = vld [vmem:[%s2057_s17 + $0x3e] sm:$0x1] }
  0x6e   : > { %v1247_v5 = vrot.slane %v1239_v46, 6 }
  0x6f   : > { %1152 = vrot.lane.b32.xlu0 %v2490_v7, %s2000_s20  ;;  %v1513_v29 = vsel %vm196_vm1, %v1512_v17, %v1511_v22  ;;  %v719_v17 = vrot.slane %v2546_v63, 4  ;;  %v364_v22 = vsel %vm199_vm2, %v363_v24, %v362_v19  ;;  %v2598_v24 = vld [vmem:[%s2057_s17 + $0x27] sm:$0x1] }
  0x70   : > { %v2536_v51 = vsel %vm199_vm2, %v1514_v44, %v1513_v29  ;;  %v1238_v44 = vld [vmem:[%s2057_s17 + $0x24] sm:$0x1] }
  0x71   : > { %1163 = vrot.lane.b32.xlu1 %v1162_v62, %s2001_s21  ;;  %v698_v62 = vrot.slane %v678_v55, 2  ;;  %v1245_v40 = vrot.slane %v1238_v44, 7  ;;  %v1240_v55 = vld [vmem:[%s2057_s17 + $0x54] sm:$0x1]  ;;  %v1256_v14 = vrot.slane %v1238_v44, 3 }
  0x72   : > { %v1249_v19 = vrot.slane %v1240_v55, 5  ;;  %v1260_v44 = vrot.slane %v1240_v55, 1  ;;  %v2626_v55 = vld [vmem:[%s2057_s17 + $0x57] sm:$0x1] }
  0x73   : > { %1482 = vrot.lane.b32.xlu0 %v1481_v3, %s2012_s5  ;;  %v699_v54 = vsel %vm196_vm1, %v698_v62, %v697_v31  ;;  %v1246_v13 = vsel %vm180_vm3, %v1245_v40, %v1237_v0  ;;  %v1257_v62 = vsel %vm193_vm0, %v1256_v14, %v1255_v59  ;;  %v1585_v31 = vrot.slane %v1567_v8, 4  ;;  %v442_v14 = vld [vmem:[%s2057_s17 + $0x1c] sm:$0x1] }
  0x74   : > { %v701_v36 = vsel %vm199_vm2, %v700_v26, %v699_v54  ;;  %v2607_v26 = vld [vmem:[%s2057_s17 + $0x3f] sm:$0x1] }
  0x75   : > { %1493 = vrot.lane.b32.xlu1 %v1492_v30, %s2013_s6  ;;  %v722_v30 = vrot.slane %v2560_v42, 2 }
  0x77   : > { %1497 = vrot.lane.b32.xlu0 %v1481_v3, %s2014_s7  ;;  %v720_v3 = vrot.slane %v2549_v10, 3 }
  0x79   : > { %1516 = vrot.lane.b32.xlu1 %v2536_v51, %s2012_s5 }
  0x7b   : > { %332 = vrot.lane.b32.xlu0 %v2431_v32, %s2001_s21  ;;  %v687_v32 = vsel %vm183_vm4, %v686_v21, %v685_v15  ;;  %v2595_v21 = vld [vmem:[%s2057_s17 + $0xf] sm:$0x1]  ;;  %v1258_v15 = vrot.slane %v1239_v46, 2 }
  0x7c   : > { %v689_v29 = vsel %vm186_vm5, %v688_v1, %v687_v32  ;;  %v1570_v1 = vld [vmem:[%s2057_s17 + $0x56] sm:$0x1]  ;;  %v1248_v32 = vsel %vm183_vm4, %v1247_v5, %v1246_v13  ;;  %v1608_v54 = vrot.slane %v2595_v21, 4  ;;  %v1049_v13 = vrot.slane %v2300_v58, 7 }
  0x7d   : > { %336 = vrot.lane.b32.xlu1 %v2172_v49, %s2002_s22  ;;  %v721_v49 = vsel %vm193_vm0, %v720_v3, %v719_v17  ;;  %v1586_v17 = vrot.slane %v1568_v47, 3  ;;  %v1259_v0 = vsel %vm196_vm1, %v1258_v15, %v1257_v62  ;;  %v1579_v46 = vrot.slane %v1570_v1, 5 }
  0x7e   : > { %v723_v38 = vsel %vm196_vm1, %v722_v30, %v721_v49  ;;  %v1609_v30 = vrot.slane %v2598_v24, 3  ;;  %v1261_v5 = vsel %vm199_vm2, %v1260_v44, %v1259_v0  ;;  %v1613_v62 = vrot.slane %v2626_v55, 1 }
  0x7f   : > { %354 = vrot.lane.b32.xlu0 %v2555_v23, %s2000_s20  ;;  %v2591_v2 = vsel %vm199_vm2, %v724_v41, %v723_v38  ;;  %v2618_v41 = vsel %vm186_vm5, %v1249_v19, %v1248_v32  ;;  %v1587_v40 = vsel %vm193_vm0, %v1586_v17, %v1585_v31  ;;  %v1611_v38 = vrot.slane %v2607_v26, 2  ;;  %v2644_v17 = vld [vmem:[%s2057_s17 + $0x4c] sm:$0x1]  ;;  %s1934_s20 = sshll.u32 %s3271_s13, 4 }
  0x80   : > { %v1610_v59 = vsel %vm193_vm0, %v1609_v30, %v1608_v54  ;;  %v449_v31 = vrot.slane %v442_v14, 7  ;;  %v460_v32 = vrot.slane %v442_v14, 3  ;;  %v1522_v54 = vrot.slane %v2501_v53, 6  ;;  %v778_v53 = vld [vmem:[%s2057_s17 + $0x1e] sm:$0x1] }
  0x81   : > { %365 = vrot.lane.b32.xlu1 %v364_v22, %s2001_s21  ;;  %v1577_v22 = vrot.slane %v1569_v9, 6  ;;  %v1612_v19 = vsel %vm196_vm1, %v1611_v38, %v1610_v59  ;;  %v1051_v30 = vrot.slane %v2330_v16, 6  ;;  %v1053_v44 = vrot.slane %v2345_v43, 5  ;;  %v779_v14 = vld [vmem:[%s2057_s17 + $0x36] sm:$0x1] }
  0x82   : > { %v249_v0 = vrot.slane %v2391_v50, 7  ;;  %v2662_v43 = vsel %vm199_vm2, %v1613_v62, %v1612_v19  ;;  %v1050_v19 = vsel %vm180_vm3, %v1049_v13, %v2292_v52  ;;  %v730_v62 = vrot.slane %v2549_v10, 7 }
  0x83   : > { %690 = vrot.lane.b32.xlu0 %v689_v29, %s2012_s5  ;;  %v464_v10 = vrot.slane %v2644_v17, 1 }
  0x85   : > { %702 = vrot.lane.b32.xlu1 %v701_v36, %s2013_s6  ;;  %v1588_v36 = vrot.slane %v1569_v9, 2  ;;  %v441_v9 = vld [vmem:[%s2057_s17 + $0x4] sm:$0x1] }
  0x87   : > { %707 = vrot.lane.b32.xlu0 %v689_v29, %s2014_s7  ;;  %v1576_v29 = vsel %vm180_vm3, %v1575_v20, %v1567_v8  ;;  %v1590_v8 = vrot.slane %v1570_v1, 1  ;;  %v443_v1 = vld [vmem:[%s2057_s17 + $0x34] sm:$0x1] }
  0x88   : > { %v462_v59 = vrot.slane %v443_v1, 2 }
  0x89   : > { %726 = vrot.lane.b32.xlu1 %v2591_v2, %s2012_s5  ;;  %v1003_v3 = vpop.permute.xlu0 %1002 }
  0x8a   : > { %1005 = vst.msk [vmem:[#allocation2 + $0x8] sm:$0xf0] %vm204_vm7, %v1003_v3  ;;  %v459_v3 = vrot.slane %v441_v9, 4 }
  0x8b   : > { %v202_v49 = vpop.permute.xlu1 %201  ;;  %1229 = vrot.lane.b32.xlu0 %v2466_v28, %s2004_s24  ;;  %v1578_v28 = vsel %vm183_vm4, %v1577_v22, %v1576_v29  ;;  %v1520_v22 = vrot.slane %v2485_v35, 7  ;;  %v777_v35 = vld [vmem:[%s2057_s17 + $0x6] sm:$0x1] }
  0x8c   : > { %205 = vst.msk [vmem:[#allocation2] sm:$0xf0] %vm204_vm7, %v202_v49  ;;  %v1580_v15 = vsel %vm186_vm5, %v1579_v46, %v1578_v28  ;;  %v1524_v49 = vrot.slane %v2518_v11, 5  ;;  %v451_v11 = vrot.slane %v443_v1, 6  ;;  %v450_v28 = vsel %vm180_vm3, %v449_v31, %v441_v9  ;;  %v2682_v1 = vld [vmem:[%s2057_s17 + $0x1f] sm:$0x1] }
  0x8d   : > { %1233 = vrot.lane.b32.xlu1 %v2211_v18, %s2005_s25  ;;  %v1007_v47 = vpop.permute.xlu0 %1006  ;;  %v1589_v18 = vsel %vm196_vm1, %v1588_v36, %v1587_v40  ;;  %v251_v36 = vrot.slane %v2402_v6, 6  ;;  %v1521_v16 = vsel %vm180_vm3, %v1520_v22, %v2480_v60  ;;  %v453_v40 = vrot.slane %v2644_v17, 5 }
  0x8e   : > { %1009 = vst.msk [vmem:[#allocation2 + $0x18] sm:$0xf] %vm3264_vm6, %v1007_v47  ;;  %v1591_v29 = vsel %vm199_vm2, %v1590_v8, %v1589_v18  ;;  %v1523_v38 = vsel %vm183_vm4, %v1522_v54, %v1521_v16  ;;  %v461_v60 = vsel %vm193_vm0, %v460_v32, %v459_v3  ;;  %v785_v8 = vrot.slane %v778_v53, 7  ;;  %v2675_v18 = vld [vmem:[%s2057_s17 + $0x7] sm:$0x1] }
  0x8f   : > { %v207_v20 = vpop.permute.xlu1 %206  ;;  %1251 = vrot.lane.b32.xlu0 %v2618_v41, %s2003_s23  ;;  %v797_v9 = vrot.slane %v778_v53, 3  ;;  %v1052_v31 = vsel %vm183_vm4, %v1051_v30, %v1050_v19  ;;  %v732_v3 = vrot.slane %v2560_v42, 6  ;;  %v734_v32 = vrot.slane %v2572_v39, 5  ;;  %v780_v39 = vld [vmem:[%s2057_s17 + $0x4e] sm:$0x1] }
  0x90   : > { %209 = vst.msk [vmem:[#allocation2 + $0x10] sm:$0xf] %vm3264_vm6, %v207_v20  ;;  %v796_v20 = vrot.slane %v777_v35, 4  ;;  %v452_v52 = vsel %vm183_vm4, %v451_v11, %v450_v28  ;;  %v2691_v13 = vsel %vm186_vm5, %v1053_v44, %v1052_v31  ;;  %v463_v42 = vsel %vm196_vm1, %v462_v59, %v461_v60  ;;  %v2752_v31 = vld [vmem:[%s2057_s17 + $0x3d] sm:$0x1] }
  0x91   : > { %1262 = vrot.lane.b32.xlu1 %v1261_v5, %s2004_s24  ;;  %v1087_v58 = vpop.permute.xlu0 %1086  ;;  %v2671_v5 = vsel %vm186_vm5, %v1524_v49, %v1523_v38  ;;  %v787_v54 = vrot.slane %v779_v14, 6  ;;  %v799_v30 = vrot.slane %v779_v14, 2  ;;  %1056 = vst.msk [vmem:[#allocation2 + $0x38] sm:$0xf] %vm3264_vm6, %v2691_v13  ;;  %v786_v44 = vsel %vm180_vm3, %v785_v8, %v777_v35 }
  0x92   : > { %1089 = vst.msk [vmem:[#allocation2 + $0x8] sm:$0xf] %vm3265_vm8, %v1087_v58  ;;  %v821_v49 = vrot.slane %v2682_v1, 3  ;;  %v253_v53 = vrot.slane %v2419_v25, 5  ;;  %v2716_v11 = vsel %vm186_vm5, %v453_v40, %v452_v52  ;;  %v798_v35 = vsel %vm193_vm0, %v797_v9, %v796_v20  ;;  %v2732_v20 = vld [vmem:[%s2057_s17 + $0x25] sm:$0x1] }
  0x93   : > { %v1098_v46 = vpop.permute.xlu1 %1097  ;;  %1581 = vrot.lane.b32.xlu0 %v1580_v15, %s2015_s8  ;;  %v789_v38 = vrot.slane %v780_v39, 5  ;;  %v1619_v28 = vrot.slane %v2598_v24, 7  ;;  %v1621_v25 = vrot.slane %v2607_v26, 6  ;;  %v1623_v60 = vrot.slane %v2626_v55, 5 }
  0x94   : > { %1100 = vst.msk [vmem:[#allocation2 + $0x8] sm:$0xf0] %vm301_vm9, %v1098_v46  ;;  %v465_v40 = vsel %vm199_vm2, %v464_v10, %v463_v42  ;;  %v788_v59 = vsel %vm183_vm4, %v787_v54, %v786_v44  ;;  %v801_v14 = vrot.slane %v780_v39, 1  ;;  %v800_v24 = vsel %vm196_vm1, %v799_v30, %v798_v35 }
  0x95   : > { %1592 = vrot.lane.b32.xlu1 %v1591_v29, %s2016_s9  ;;  %v1102_v47 = vpop.permute.xlu0 %1101  ;;  %v820_v29 = vrot.slane %v2675_v18, 4  ;;  %v1620_v55 = vsel %vm180_vm3, %v1619_v28, %v2595_v21  ;;  %v250_v9 = vsel %vm180_vm3, %v249_v0, %v2388_v48  ;;  %v1336_v21 = vld [vmem:[%s2057_s17 + $0xd] sm:$0x1]  ;;  %v1324_v10 = vrot.slane %v2251_v57, 6 }
  0x96   : > { %1104 = vst.msk [vmem:[#allocation2 + $0x18] sm:$0xf] %vm3265_vm8, %v1102_v47  ;;  %v2721_v47 = vld [vmem:[%s2057_s17 + $0x4f] sm:$0x1]  ;;  %v252_v52 = vsel %vm183_vm4, %v251_v36, %v250_v9  ;;  %v802_v50 = vsel %vm199_vm2, %v801_v14, %v800_v24  ;;  %v2772_v36 = vld [vmem:[%s2057_s17 + $0x55] sm:$0x1] }
  0x97   : > { %v1121_v58 = vpop.permute.xlu1 %1120  ;;  %1596 = vrot.lane.b32.xlu0 %v1580_v15, %s2017_s10  ;;  %v731_v15 = vsel %vm180_vm3, %v730_v62, %v2546_v63  ;;  %v2705_v63 = vld [vmem:[%s2057_s17 + $0x37] sm:$0x1]  ;;  %v822_v26 = vsel %vm193_vm0, %v821_v49, %v820_v29  ;;  %v825_v62 = vrot.slane %v2721_v47, 1  ;;  %v835_v57 = vrot.slane %v2721_v47, 5  ;;  %v2788_v29 = vld [vmem:[%s2057_s17 + $0x3f] sm:$0x1] }
  0x98   : > { %1123 = vst.msk [vmem:[#allocation2 + $0x18] sm:$0xf0] %vm301_vm9, %v1121_v58  ;;  %v733_v17 = vsel %vm183_vm4, %v732_v3, %v731_v15  ;;  %v823_v8 = vrot.slane %v2705_v63, 2  ;;  %v1622_v58 = vsel %vm183_vm4, %v1621_v25, %v1620_v55  ;;  %v1344_v3 = vrot.slane %v2732_v20, 7  ;;  %v2802_v47 = vld [vmem:[%s2057_s17 + $0x40] sm:$0x1] }
  0x99   : > { %1615 = vrot.lane.b32.xlu1 %v2662_v43, %s2015_s8  ;;  %v287_v22 = vpop.permute.xlu0 %286  ;;  %v2710_v46 = vsel %vm186_vm5, %v734_v32, %v733_v17  ;;  %v2756_v32 = vsel %vm186_vm5, %v1623_v60, %v1622_v58  ;;  %v2766_v15 = vsel %vm186_vm5, %v253_v53, %v252_v52  ;;  %v833_v42 = vrot.slane %v2705_v63, 6  ;;  %v1667_v17 = vld [vmem:[%s2057_s17 + $0x27] sm:$0x1]  ;;  %v1666_v63 = vld [vmem:[%s2057_s17 + $0xf] sm:$0x1] }
  0x9a   : > { %290 = vst.msk [vmem:[#allocation2] sm:$0xf] %vm3265_vm8, %v287_v22  ;;  %v824_v0 = vsel %vm196_vm1, %v823_v8, %v822_v26  ;;  %v831_v22 = vrot.slane %v2682_v1, 7  ;;  %v1346_v54 = vrot.slane %v2752_v31, 6  ;;  %v1355_v30 = vrot.slane %v2732_v20, 3 }
  0x9b   : > { %v299_v16 = vpop.permute.xlu1 %298  ;;  %433 = vrot.lane.b32.xlu0 %v2510_v33, %s2004_s24  ;;  %256 = vst.msk [vmem:[#allocation2 + $0x30] sm:$0xf] %vm3264_vm6, %v2766_v15  ;;  %v1326_v44 = vrot.slane %v2268_v12, 5  ;;  %v1345_v1 = vsel %vm180_vm3, %v1344_v3, %v1336_v21  ;;  %v1348_v12 = vrot.slane %v2772_v36, 5  ;;  %v1674_v25 = vrot.slane %v1667_v17, 7 }
  0x9c   : > { %302 = vst.msk [vmem:[#allocation2] sm:$0xf0] %vm301_vm9, %v299_v16  ;;  %v832_v49 = vsel %vm180_vm3, %v831_v22, %v2675_v18  ;;  %v2794_v16 = vsel %vm199_vm2, %v825_v62, %v824_v0  ;;  %v1357_v18 = vrot.slane %v2752_v31, 2  ;;  %v2808_v60 = vld [vmem:[%s2057_s17 + $0x58] sm:$0x1]  ;;  %v1347_v14 = vsel %vm183_vm4, %v1346_v54, %v1345_v1 }
  0x9d   : > { %437 = vrot.lane.b32.xlu1 %v2261_v4, %s2005_s25  ;;  %v304_v33 = vpop.permute.xlu0 %303  ;;  %v1322_v4 = vrot.slane %v2227_v34, 7  ;;  %v790_v34 = vsel %vm186_vm5, %v789_v38, %v788_v59  ;;  %v2799_v38 = vld [vmem:[%s2057_s17 + $0x28] sm:$0x1]  ;;  %v834_v28 = vsel %vm183_vm4, %v833_v42, %v832_v49  ;;  %v1699_v20 = vld [vmem:[%s2057_s17 + $0x10] sm:$0x1]  ;;  %v1720_v24 = vrot.slane %v2802_v47, 6 }
  0x9e   : > { %306 = vst.msk [vmem:[#allocation2 + $0x10] sm:$0xf] %vm3265_vm8, %v304_v33  ;;  %v2811_v33 = vsel %vm186_vm5, %v835_v57, %v834_v28  ;;  %v1722_v26 = vrot.slane %v2808_v60, 5  ;;  %v1669_v55 = vld [vmem:[%s2057_s17 + $0x57] sm:$0x1]  ;;  %v1685_v62 = vrot.slane %v1667_v17, 3  ;;  %v2831_v3 = vsel %vm186_vm5, %v1348_v12, %v1347_v14 }
  0x9f   : > { %v323_v19 = vpop.permute.xlu1 %322  ;;  %455 = vrot.lane.b32.xlu0 %v2716_v11, %s2003_s23  ;;  %v1323_v6 = vsel %vm180_vm3, %v1322_v4, %v2222_v27  ;;  %v1354_v27 = vrot.slane %v1336_v21, 4  ;;  %v1676_v21 = vrot.slane %v2788_v29, 6  ;;  %v2839_v0 = vld [vmem:[%s2057_s17 + $0x38] sm:$0x1]  ;;  %v1687_v22 = vrot.slane %v2788_v29, 2  ;;  %s170_s23 = scalar_lea.vmem %s3263_s3, %s1934_s20 }
  0xa0   : > { %325 = vst.msk [vmem:[#allocation2 + $0x10] sm:$0xf0] %vm301_vm9, %v323_v19  ;;  %v1325_v35 = vsel %vm183_vm4, %v1324_v10, %v1323_v6  ;;  %v1684_v19 = vrot.slane %v1666_v63, 4  ;;  %v1707_v42 = vrot.slane %v1699_v20, 4  ;;  %v2847_v57 = vld [vmem:[%s2057_s17 + $0x50] sm:$0x1] }
  0xa1   : > { %466 = vrot.lane.b32.xlu1 %v465_v40, %s2004_s24  ;;  %v1186_v48 = vpop.permute.xlu0 %1185  ;;  %v1718_v40 = vrot.slane %v2799_v38, 7  ;;  %v1356_v8 = vsel %vm193_vm0, %v1355_v30, %v1354_v27  ;;  %v1327_v4 = vsel %vm186_vm5, %v1326_v44, %v1325_v35  ;;  %v1708_v27 = vrot.slane %v2799_v38, 3  ;;  %v2854_v30 = vld [vmem:[%s2057_s17 + $0x8] sm:$0x1]  ;;  %v1978_v29 = vld [vmem:[%s2057_s17 + $0x1c] sm:$0x1] }
  0xa2   : > { %1188 = vst.msk [vmem:[#allocation2 + $0x8] sm:$0xf] %vm390_vm10, %v1186_v48  ;;  %v1358_v52 = vsel %vm196_vm1, %v1357_v18, %v1356_v8  ;;  %v1675_v48 = vsel %vm180_vm3, %v1674_v25, %v1666_v63  ;;  %v1686_v54 = vsel %vm193_vm0, %v1685_v62, %v1684_v19  ;;  %v934_v17 = vrot.slane %v2839_v0, 6  ;;  %v543_v38 = vld [vmem:[%s2057_s17 + $0x1d] sm:$0x1] }
  0xa3   : > { %v1197_v39 = vpop.permute.xlu1 %1196  ;;  %791 = vrot.lane.b32.xlu0 %v790_v34, %s2015_s8  ;;  %v1719_v58 = vsel %vm180_vm3, %v1718_v40, %v1699_v20  ;;  %v936_v44 = vrot.slane %v2847_v57, 5  ;;  %v1677_v63 = vsel %vm183_vm4, %v1676_v21, %v1675_v48  ;;  %v528_v49 = vrot.slane %v1978_v29, 7  ;;  %v1979_v8 = vld [vmem:[%s2057_s17 + $0x34] sm:$0x1]  ;;  %v1981_v21 = vld [vmem:[%s2057_s17 + $0x4c] sm:$0x1] }
  0xa4   : > { %1199 = vst.msk [vmem:[#allocation2 + $0x8] sm:$0xf0] %vm402_vm11, %v1197_v39  ;;  %v1721_v31 = vsel %vm183_vm4, %v1720_v24, %v1719_v58  ;;  %v1689_v12 = vrot.slane %v1669_v55, 1  ;;  %v1710_v25 = vrot.slane %v2802_v47, 2  ;;  %v1709_v14 = vsel %vm193_vm0, %v1708_v27, %v1707_v42 }
  0xa5   : > { %803 = vrot.lane.b32.xlu1 %v802_v50, %s2016_s9  ;;  %v1201_v53 = vpop.permute.xlu0 %1200  ;;  %v2836_v50 = vld [vmem:[%s2057_s17 + $0x20] sm:$0x1]  ;;  %v2842_v10 = vsel %vm186_vm5, %v1722_v26, %v1721_v31  ;;  %v530_v20 = vrot.slane %v1979_v8, 6  ;;  %v1980_v26 = vld [vmem:[%s2057_s17 + $0x4] sm:$0x1]  ;;  %v550_v19 = vrot.slane %v543_v38, 7 }
  0xa6   : > { %1203 = vst.msk [vmem:[#allocation2 + $0x18] sm:$0xf] %vm390_vm10, %v1201_v53  ;;  %v932_v39 = vrot.slane %v2836_v50, 7  ;;  %v529_v47 = vsel %vm180_vm3, %v528_v49, %v1980_v26  ;;  %v1712_v58 = vrot.slane %v2808_v60, 1  ;;  %v532_v31 = vrot.slane %v1981_v21, 5 }
  0xa7   : > { %v1220_v59 = vpop.permute.xlu1 %1219  ;;  %808 = vrot.lane.b32.xlu0 %v790_v34, %s2017_s10  ;;  %v1359_v34 = vrot.slane %v2772_v36, 1  ;;  %v1678_v36 = vrot.slane %v1669_v55, 5  ;;  %v544_v55 = vld [vmem:[%s2057_s17 + $0x35] sm:$0x1]  ;;  %v531_v48 = vsel %vm183_vm4, %v530_v20, %v529_v47  ;;  %v561_v42 = vrot.slane %v543_v38, 3 }
  0xa8   : > { %1222 = vst.msk [vmem:[#allocation2 + $0x18] sm:$0xf0] %vm402_vm11, %v1220_v59  ;;  %v933_v53 = vsel %vm180_vm3, %v932_v39, %v2854_v30  ;;  %v563_v49 = vrot.slane %v544_v55, 2 }
  0xa9   : > { %827 = vrot.lane.b32.xlu1 %v2794_v16, %s2015_s8  ;;  %v388_v9 = vpop.permute.xlu0 %387  ;;  %v1360_v35 = vsel %vm199_vm2, %v1359_v34, %v1358_v52  ;;  %v935_v28 = vsel %vm183_vm4, %v934_v17, %v933_v53  ;;  %v1679_v59 = vsel %vm186_vm5, %v1678_v36, %v1677_v63  ;;  %v1711_v34 = vsel %vm196_vm1, %v1710_v25, %v1709_v14  ;;  %v879_v52 = vld [vmem:[%s2057_s17 + $0x1f] sm:$0x1]  ;;  %v880_v17 = vld [vmem:[%s2057_s17 + $0x37] sm:$0x1] }
  0xaa   : > { %391 = vst.msk [vmem:[#allocation2] sm:$0xf] %vm390_vm10, %v388_v9  ;;  %v2873_v40 = vsel %vm186_vm5, %v936_v44, %v935_v28  ;;  %v552_v36 = vrot.slane %v544_v55, 6  ;;  %v2899_v27 = vsel %vm199_vm2, %v1712_v58, %v1711_v34  ;;  %v886_v44 = vrot.slane %v879_v52, 7  ;;  %v1982_v34 = vld [vmem:[%s2057_s17 + $0x25] sm:$0x1] }
  0xab   : > { %v400_v6 = vpop.permute.xlu1 %399  ;;  %1328 = vrot.lane.b32.xlu0 %v1327_v4, %s2007_s27  ;;  %v542_v4 = vld [vmem:[%s2057_s17 + $0x5] sm:$0x1]  ;;  %v533_v63 = vsel %vm186_vm5, %v532_v31, %v531_v48  ;;  %v898_v38 = vrot.slane %v879_v52, 3  ;;  %v922_v55 = vrot.slane %v2836_v50, 3  ;;  %v1421_v21 = vrot.slane %v1982_v34, 7 }
  0xac   : > { %403 = vst.msk [vmem:[#allocation2] sm:$0xf0] %vm402_vm11, %v400_v6  ;;  %v545_v6 = vld [vmem:[%s2057_s17 + $0x4d] sm:$0x1]  ;;  %v551_v39 = vsel %vm180_vm3, %v550_v19, %v542_v4 }
  0xad   : > { %1332 = vrot.lane.b32.xlu1 %v2307_v61, %s2008_s28  ;;  %v405_v1 = vpop.permute.xlu0 %404  ;;  %v1688_v61 = vsel %vm196_vm1, %v1687_v22, %v1686_v54  ;;  %v560_v22 = vrot.slane %v542_v4, 4  ;;  %v878_v54 = vld [vmem:[%s2057_s17 + $0x7] sm:$0x1]  ;;  %v554_v29 = vrot.slane %v545_v6, 5  ;;  %v553_v53 = vsel %vm183_vm4, %v552_v36, %v551_v39  ;;  %v1983_v36 = vld [vmem:[%s2057_s17 + $0x3d] sm:$0x1] }
  0xae   : > { %407 = vst.msk [vmem:[#allocation2 + $0x10] sm:$0xf] %vm390_vm10, %v405_v1  ;;  %v1690_v62 = vsel %vm199_vm2, %v1689_v12, %v1688_v61  ;;  %v897_v12 = vrot.slane %v878_v54, 4  ;;  %v888_v61 = vrot.slane %v880_v17, 6  ;;  %v565_v25 = vrot.slane %v545_v6, 1 }
  0xaf   : > { %v424_v18 = vpop.permute.xlu1 %423  ;;  %1350 = vrot.lane.b32.xlu0 %v2831_v3, %s2006_s26  ;;  %v2914_v8 = vsel %vm186_vm5, %v554_v29, %v553_v53  ;;  %v921_v4 = vrot.slane %v2854_v30, 4  ;;  %v1436_v30 = vld [vmem:[%s2057_s17 + $0x26] sm:$0x1]  ;;  %v1984_v39 = vld [vmem:[%s2057_s17 + $0xd] sm:$0x1] }
  0xb0   : > { %426 = vst.msk [vmem:[#allocation2 + $0x10] sm:$0xf0] %vm402_vm11, %v424_v18  ;;  %v881_v18 = vld [vmem:[%s2057_s17 + $0x4f] sm:$0x1]  ;;  %v899_v47 = vsel %vm193_vm0, %v898_v38, %v897_v12  ;;  %v1985_v29 = vld [vmem:[%s2057_s17 + $0x55] sm:$0x1] }
  0xb1   : > { %1361 = vrot.lane.b32.xlu1 %v1360_v35, %s2007_s27  ;;  %v1285_v24 = vpop.permute.xlu0 %1284  ;;  %v562_v35 = vsel %vm193_vm0, %v561_v42, %v560_v22  ;;  %v890_v26 = vrot.slane %v881_v18, 5  ;;  %v923_v48 = vsel %vm193_vm0, %v922_v55, %v921_v4  ;;  %v1423_v22 = vrot.slane %v1983_v36, 6  ;;  %v1435_v42 = vld [vmem:[%s2057_s17 + $0xe] sm:$0x1]  ;;  %v1438_v38 = vld [vmem:[%s2057_s17 + $0x56] sm:$0x1] }
  0xb2   : > { %1287 = vst.msk [vmem:[#allocation2 + $0x8] sm:$0xf] %vm491_vm12, %v1285_v24  ;;  %v564_v20 = vsel %vm196_vm1, %v563_v49, %v562_v35  ;;  %v900_v24 = vrot.slane %v880_v17, 2  ;;  %v1437_v17 = vld [vmem:[%s2057_s17 + $0x3e] sm:$0x1]  ;;  %v1425_v49 = vrot.slane %v1985_v29, 5 }
  0xb3   : > { %v1296_v9 = vpop.permute.xlu1 %1295  ;;  %1680 = vrot.lane.b32.xlu0 %v1679_v59, %s2018_s11  ;;  %v566_v58 = vsel %vm199_vm2, %v565_v25, %v564_v20  ;;  %v1453_v53 = vrot.slane %v1435_v42, 4  ;;  %v1454_v35 = vrot.slane %v1436_v30, 3  ;;  %v1986_v25 = vld [vmem:[%s2057_s17 + $0x1d] sm:$0x1]  ;;  %v1456_v20 = vrot.slane %v1437_v17, 2 }
  0xb4   : > { %1298 = vst.msk [vmem:[#allocation2 + $0x8] sm:$0xf0] %vm503_vm13, %v1296_v9  ;;  %v902_v9 = vrot.slane %v881_v18, 1  ;;  %v901_v50 = vsel %vm196_vm1, %v900_v24, %v899_v47  ;;  %v644_v24 = vld [vmem:[%s2057_s17 + $0x1e] sm:$0x1]  ;;  %v1447_v47 = vrot.slane %v1438_v38, 5 }
  0xb5   : > { %1691 = vrot.lane.b32.xlu1 %v1690_v62, %s2019_s14  ;;  %v1300_v60 = vpop.permute.xlu0 %1299  ;;  %v1455_v4 = vsel %vm193_vm0, %v1454_v35, %v1453_v53  ;;  %v1458_v34 = vrot.slane %v1438_v38, 1  ;;  %v1535_v29 = vld [vmem:[%s2057_s17 + $0x27] sm:$0x1] }
  0xb6   : > { %1302 = vst.msk [vmem:[#allocation2 + $0x18] sm:$0xf] %vm491_vm12, %v1300_v60  ;;  %v903_v60 = vsel %vm199_vm2, %v902_v9, %v901_v50  ;;  %v643_v9 = vld [vmem:[%s2057_s17 + $0x6] sm:$0x1]  ;;  %v645_v50 = vld [vmem:[%s2057_s17 + $0x36] sm:$0x1] }
  0xb7   : > { %v1319_v1 = vpop.permute.xlu1 %1318  ;;  %1695 = vrot.lane.b32.xlu0 %v1679_v59, %s2020_s15  ;;  %v887_v59 = vsel %vm180_vm3, %v886_v44, %v878_v54  ;;  %v1422_v54 = vsel %vm180_vm3, %v1421_v21, %v1984_v39  ;;  %v1443_v44 = vrot.slane %v1436_v30, 7  ;;  %v1988_v21 = vld [vmem:[%s2057_s17 + $0x5] sm:$0x1]  ;;  %v646_v39 = vld [vmem:[%s2057_s17 + $0x4e] sm:$0x1] }
  0xb8   : > { %1321 = vst.msk [vmem:[#allocation2 + $0x18] sm:$0xf0] %vm503_vm13, %v1319_v1  ;;  %v889_v62 = vsel %vm183_vm4, %v888_v61, %v887_v59  ;;  %v1424_v12 = vsel %vm183_vm4, %v1423_v22, %v1422_v54  ;;  %v629_v59 = vrot.slane %v1986_v25, 7  ;;  %v661_v22 = vrot.slane %v643_v9, 4 }
  0xb9   : > { %1714 = vrot.lane.b32.xlu1 %v2899_v27, %s2018_s11  ;;  %v489_v28 = vpop.permute.xlu0 %488  ;;  %v891_v52 = vsel %vm186_vm5, %v890_v26, %v889_v62  ;;  %v1444_v61 = vsel %vm180_vm3, %v1443_v44, %v1435_v42  ;;  %v1426_v26 = vsel %vm186_vm5, %v1425_v49, %v1424_v12  ;;  %v1987_v62 = vld [vmem:[%s2057_s17 + $0x35] sm:$0x1]  ;;  %v662_v42 = vrot.slane %v644_v24, 3  ;;  %v1534_v12 = vld [vmem:[%s2057_s17 + $0xf] sm:$0x1] }
  0xba   : > { %492 = vst.msk [vmem:[#allocation2] sm:$0xf] %vm491_vm12, %v489_v28  ;;  %v1445_v28 = vrot.slane %v1437_v17, 6  ;;  %v653_v54 = vrot.slane %v645_v50, 6  ;;  %v655_v49 = vrot.slane %v646_v39, 5  ;;  %v666_v38 = vrot.slane %v646_v39, 1 }
  0xbb   : > { %v501_v14 = vpop.permute.xlu1 %500  ;;  %534 = vrot.lane.b32.xlu0 %v533_v63, %s2007_s27  ;;  %v663_v53 = vsel %vm193_vm0, %v662_v42, %v661_v22  ;;  %v747_v39 = vld [vmem:[%s2057_s17 + $0x4f] sm:$0x1] }
  0xbc   : > { %504 = vst.msk [vmem:[#allocation2] sm:$0xf0] %vm503_vm13, %v501_v14 }
  0xbd   : > { %538 = vrot.lane.b32.xlu1 %v2355_v56, %s2008_s28  ;;  %v506_v19 = vpop.permute.xlu0 %505  ;;  %v924_v56 = vrot.slane %v2839_v0, 2  ;;  %v926_v0 = vrot.slane %v2847_v57, 1 }
  0xbe   : > { %508 = vst.msk [vmem:[#allocation2 + $0x10] sm:$0xf] %vm491_vm12, %v506_v19  ;;  %v1446_v19 = vsel %vm183_vm4, %v1445_v28, %v1444_v61  ;;  %v1536_v28 = vld [vmem:[%s2057_s17 + $0x3f] sm:$0x1]  ;;  %v1542_v61 = vrot.slane %v1535_v29, 7 }
  0xbf   : > { %v525_v31 = vpop.permute.xlu1 %524  ;;  %556 = vrot.lane.b32.xlu0 %v2914_v8, %s2006_s26  ;;  %v925_v63 = vsel %vm196_vm1, %v924_v56, %v923_v48  ;;  %v651_v56 = vrot.slane %v644_v24, 7  ;;  %v2975_v48 = vsel %vm186_vm5, %v1447_v47, %v1446_v19  ;;  %v1553_v24 = vrot.slane %v1535_v29, 3  ;;  %v1537_v47 = vld [vmem:[%s2057_s17 + $0x57] sm:$0x1] }
  0xc0   : > { %527 = vst.msk [vmem:[#allocation2 + $0x10] sm:$0xf0] %vm503_vm13, %v525_v31  ;;  %v2953_v18 = vsel %vm199_vm2, %v926_v0, %v925_v63  ;;  %v630_v31 = vsel %vm180_vm3, %v629_v59, %v1988_v21  ;;  %v664_v63 = vrot.slane %v645_v50, 2  ;;  %v1543_v19 = vsel %vm180_vm3, %v1542_v61, %v1534_v12  ;;  %v744_v50 = vld [vmem:[%s2057_s17 + $0x7] sm:$0x1] }
  0xc1   : > { %567 = vrot.lane.b32.xlu1 %v566_v58, %s2007_s27  ;;  %v1034_v6 = vpop.permute.xlu0 %1033  ;;  %v631_v58 = vrot.slane %v1987_v62, 6  ;;  %v652_v44 = vsel %vm180_vm3, %v651_v56, %v643_v9  ;;  %v745_v9 = vld [vmem:[%s2057_s17 + $0x1f] sm:$0x1]  ;;  %v1557_v56 = vrot.slane %v1537_v47, 1  ;;  %v762_v42 = vrot.slane %v744_v50, 4 }
  0xc2   : > { %1036 = vst.msk [vmem:[#allocation2 + $0x28] sm:$0xf] %vm3264_vm6, %v1034_v6  ;;  %v1989_v6 = vld [vmem:[%s2057_s17 + $0x4d] sm:$0x1]  ;;  %v665_v59 = vsel %vm196_vm1, %v664_v63, %v663_v53  ;;  %v756_v63 = vrot.slane %v747_v39, 5  ;;  %v767_v53 = vrot.slane %v747_v39, 1 }
  0xc3   : > { %v1038_v1 = vpop.permute.xlu1 %1037  ;;  %892 = vrot.lane.b32.xlu0 %v891_v52, %s2018_s11  ;;  %v633_v36 = vrot.slane %v1989_v6, 5  ;;  %v632_v0 = vsel %vm183_vm4, %v631_v58, %v630_v31  ;;  %v1555_v58 = vrot.slane %v1536_v28, 2 }
  0xc4   : > { %1040 = vst.msk [vmem:[#allocation2 + $0x28] sm:$0xf0] %vm204_vm7, %v1038_v1 }
  0xc5   : > { %904 = vrot.lane.b32.xlu1 %v903_v60, %s2019_s14  ;;  %v1065_v57 = vpop.permute.xlu0 %1064 }
  0xc6   : > { %1067 = vst.msk [vmem:[#allocation2 + $0x38] sm:$0xf0] %vm204_vm7, %v1065_v57  ;;  %v654_v57 = vsel %vm183_vm4, %v653_v54, %v652_v44 }
  0xc7   : > { %v1384_v14 = vpop.permute.xlu1 %1383  ;;  %909 = vrot.lane.b32.xlu0 %v891_v52, %s2020_s15  ;;  %v1457_v52 = vsel %vm196_vm1, %v1456_v20, %v1455_v4  ;;  %v1552_v20 = vrot.slane %v1534_v12, 4  ;;  %v1544_v4 = vrot.slane %v1536_v28, 6 }
  0xc8   : > { %1386 = vst.msk [vmem:[#allocation2 + $0x8] sm:$0xf] %vm592_vm14, %v1384_v14  ;;  %v1459_v17 = vsel %vm199_vm2, %v1458_v34, %v1457_v52  ;;  %v3000_v14 = vsel %vm186_vm5, %v655_v49, %v654_v57  ;;  %v752_v52 = vrot.slane %v745_v9, 7  ;;  %v1634_v49 = vld [vmem:[%s2057_s17 + $0x28] sm:$0x1] }
  0xc9   : > { %928 = vrot.lane.b32.xlu1 %v2953_v18, %s2018_s11  ;;  %v1395_v55 = vpop.permute.xlu0 %1394  ;;  %v1554_v34 = vsel %vm193_vm0, %v1553_v24, %v1552_v20  ;;  %v1545_v31 = vsel %vm183_vm4, %v1544_v4, %v1543_v19  ;;  %v1641_v28 = vrot.slane %v1634_v49, 7  ;;  %v1652_v20 = vrot.slane %v1634_v49, 3 }
  0xca   : > { %1397 = vst.msk [vmem:[#allocation2 + $0x8] sm:$0xf0] %vm604_vm15, %v1395_v55  ;;  %v667_v55 = vsel %vm199_vm2, %v666_v38, %v665_v59  ;;  %v1635_v38 = vld [vmem:[%s2057_s17 + $0x40] sm:$0x1] }
  0xcb   : > { %v1399_v30 = vpop.permute.xlu1 %1398  ;;  %1427 = vrot.lane.b32.xlu0 %v1426_v26, %s2010_s30 }
  0xcc   : > { %1401 = vst.msk [vmem:[#allocation2 + $0x18] sm:$0xf] %vm592_vm14, %v1399_v30  ;;  %v746_v30 = vld [vmem:[%s2057_s17 + $0x37] sm:$0x1] }
  0xcd   : > { %1431 = vrot.lane.b32.xlu1 %v2415_v37, %s2011_s4  ;;  %v1418_v60 = vpop.permute.xlu0 %1417  ;;  %v634_v37 = vsel %vm186_vm5, %v633_v36, %v632_v0  ;;  %v1556_v36 = vsel %vm196_vm1, %v1555_v58, %v1554_v34  ;;  %v754_v54 = vrot.slane %v746_v30, 6 }
  0xce   : > { %1420 = vst.msk [vmem:[#allocation2 + $0x18] sm:$0xf0] %vm604_vm15, %v1418_v60  ;;  %v763_v60 = vrot.slane %v745_v9, 3 }
  0xcf   : > { %v234_v1 = vpop.permute.xlu1 %233  ;;  %1449 = vrot.lane.b32.xlu0 %v2975_v48, %s2009_s29 }
  0xd0   : > { %236 = vst.msk [vmem:[#allocation2 + $0x20] sm:$0xf] %vm3264_vm6, %v234_v1  ;;  %v765_v1 = vrot.slane %v746_v30, 2  ;;  %vm705_vm6 = vcmask 786052  }
  0xd1   : > { %1460 = vrot.lane.b32.xlu1 %v1459_v17, %s2010_s30  ;;  %v238_v35 = vpop.permute.xlu0 %237  ;;  %v753_v17 = vsel %vm180_vm3, %v752_v52, %v744_v50  ;;  %v845_v50 = vld [vmem:[%s2057_s17 + $0x8] sm:$0x1] }
  0xd2   : > { %240 = vst.msk [vmem:[#allocation2 + $0x20] sm:$0xf0] %vm204_vm7, %v238_v35 }
  0xd3   : > { %v265_v25 = vpop.permute.xlu1 %264  ;;  %635 = vrot.lane.b32.xlu0 %v634_v37, %s2010_s30  ;;  %v755_v37 = vsel %vm183_vm4, %v754_v54, %v753_v17 }
  0xd4   : > { %267 = vst.msk [vmem:[#allocation2 + $0x30] sm:$0xf0] %vm204_vm7, %v265_v25  ;;  %vm693_vm7 = vcmask 781952   ;;  %v3044_v12 = vsel %vm186_vm5, %v756_v63, %v755_v37  ;;  %v1633_v25 = vld [vmem:[%s2057_s17 + $0x10] sm:$0x1] }
  0xd5   : > { %639 = vrot.lane.b32.xlu1 %v2472_v45, %s2011_s4  ;;  %v590_v26 = vpop.permute.xlu0 %589  ;;  %v1546_v45 = vrot.slane %v1537_v47, 5  ;;  %v1651_v59 = vrot.slane %v1633_v25, 4  ;;  %v1643_v47 = vrot.slane %v1635_v38, 6  ;;  %v1733_v63 = vld [vmem:[%s2057_s17 + $0x29] sm:$0x1] }
  0xd6   : > { %593 = vst.msk [vmem:[#allocation2] sm:$0xf] %vm592_vm14, %v590_v26  ;;  %v1636_v26 = vld [vmem:[%s2057_s17 + $0x58] sm:$0x1] }
  0xd7   : > { %v602_v62 = vpop.permute.xlu1 %601  ;;  %657 = vrot.lane.b32.xlu0 %v3000_v14, %s2009_s29  ;;  %v3023_v22 = vsel %vm186_vm5, %v1546_v45, %v1545_v31  ;;  %v1645_v19 = vrot.slane %v1636_v26, 5  ;;  %v846_v45 = vld [vmem:[%s2057_s17 + $0x20] sm:$0x1]  ;;  %v1656_v34 = vrot.slane %v1636_v26, 1 }
  0xd8   : > { %605 = vst.msk [vmem:[#allocation2] sm:$0xf0] %vm604_vm15, %v602_v62  ;;  %v1653_v62 = vsel %vm193_vm0, %v1652_v20, %v1651_v59  ;;  %v853_v30 = vrot.slane %v846_v45, 7 }
  0xd9   : > { %668 = vrot.lane.b32.xlu1 %v667_v55, %s2010_s30  ;;  %v607_v21 = vpop.permute.xlu0 %606  ;;  %v1654_v55 = vrot.slane %v1635_v38, 2 }
  0xda   : > { %609 = vst.msk [vmem:[#allocation2 + $0x10] sm:$0xf] %vm592_vm14, %v607_v21  ;;  %v854_v39 = vsel %vm180_vm3, %v853_v30, %v845_v50 }
  0xdb   : > { %v626_v6 = vpop.permute.xlu1 %625  ;;  %1526 = vrot.lane.b32.xlu0 %v2671_v5, %s2013_s6  ;;  %v1558_v5 = vsel %vm199_vm2, %v1557_v56, %v1556_v36  ;;  %v1655_v31 = vsel %vm196_vm1, %v1654_v55, %v1653_v62  ;;  %v864_v36 = vrot.slane %v846_v45, 3 }
  0xdc   : > { %628 = vst.msk [vmem:[#allocation2 + $0x10] sm:$0xf0] %vm604_vm15, %v626_v6  ;;  %v863_v6 = vrot.slane %v845_v50, 4 }
  0xdd   : > { %1530 = vrot.lane.b32.xlu1 %v2536_v51, %s2014_s7  ;;  %v1131_v0 = vpop.permute.xlu0 %1130  ;;  %v764_v51 = vsel %vm193_vm0, %v763_v60, %v762_v42  ;;  %v848_v60 = vld [vmem:[%s2057_s17 + $0x50] sm:$0x1] }
  0xde   : > { %1133 = vst.msk [vmem:[#allocation2 + $0x28] sm:$0xf] %vm3265_vm8, %v1131_v0  ;;  %v766_v57 = vsel %vm196_vm1, %v765_v1, %v764_v51  ;;  %v865_v17 = vsel %vm193_vm0, %v864_v36, %v863_v6  ;;  %v868_v51 = vrot.slane %v848_v60, 1 }
  0xdf   : > { %v1135_v44 = vpop.permute.xlu1 %1134  ;;  %1548 = vrot.lane.b32.xlu0 %v3023_v22, %s2012_s5 }
  0xe0   : > { %1137 = vst.msk [vmem:[#allocation2 + $0x28] sm:$0xf0] %vm301_vm9, %v1135_v44 }
  0xe1   : > { %1559 = vrot.lane.b32.xlu1 %v1558_v5, %s2013_s6  ;;  %v1153_v29 = vpop.permute.xlu0 %1152  ;;  %v857_v5 = vrot.slane %v848_v60, 5 }
  0xe2   : > { %1155 = vst.msk [vmem:[#allocation2 + $0x38] sm:$0xf] %vm3265_vm8, %v1153_v29 }
  0xe3   : > { %v1164_v35 = vpop.permute.xlu1 %1163  ;;  %736 = vrot.lane.b32.xlu0 %v2710_v46, %s2013_s6  ;;  %v768_v46 = vsel %vm199_vm2, %v767_v53, %v766_v57  ;;  %v1740_v53 = vrot.slane %v1733_v63, 7  ;;  %v1732_v57 = vld [vmem:[%s2057_s17 + $0x11] sm:$0x1] }
  0xe4   : > { %1166 = vst.msk [vmem:[#allocation2 + $0x38] sm:$0xf0] %vm301_vm9, %v1164_v35 }
  0xe5   : > { %740 = vrot.lane.b32.xlu1 %v2591_v2, %s2014_s7  ;;  %v1483_v61 = vpop.permute.xlu0 %1482  ;;  %v1642_v2 = vsel %vm180_vm3, %v1641_v28, %v1633_v25  ;;  %v1750_v28 = vrot.slane %v1732_v57, 4  ;;  %v1735_v25 = vld [vmem:[%s2057_s17 + $0x59] sm:$0x1]  ;;  %v1741_v59 = vsel %vm180_vm3, %v1740_v53, %v1732_v57 }
  0xe6   : > { %1485 = vst.msk [vmem:[#allocation2 + $0x8] sm:$0xf] %vm693_vm7, %v1483_v61  ;;  %v1644_v9 = vsel %vm183_vm4, %v1643_v47, %v1642_v2  ;;  %v1755_v55 = vrot.slane %v1735_v25, 1 }
  0xe7   : > { %v1494_v24 = vpop.permute.xlu1 %1493  ;;  %758 = vrot.lane.b32.xlu0 %v3044_v12, %s2012_s5  ;;  %v3071_v56 = vsel %vm186_vm5, %v1645_v19, %v1644_v9 }
  0xe8   : > { %1496 = vst.msk [vmem:[#allocation2 + $0x8] sm:$0xf0] %vm705_vm6, %v1494_v24  ;;  %v1744_v24 = vrot.slane %v1735_v25, 5 }
  0xe9   : > { %769 = vrot.lane.b32.xlu1 %v768_v46, %s2013_s6  ;;  %v1498_v4 = vpop.permute.xlu0 %1497 }
  0xea   : > { %1500 = vst.msk [vmem:[#allocation2 + $0x18] sm:$0xf] %vm693_vm7, %v1498_v4  ;;  %v947_v4 = vld [vmem:[%s2057_s17 + $0x21] sm:$0x1] }
  0xeb   : > { %v1517_v58 = vpop.permute.xlu1 %1516  ;;  %1068 = vrot.lane.b32.xlu0 %v2691_v13, %s1999_s19  ;;  %v847_v13 = vld [vmem:[%s2057_s17 + $0x38] sm:$0x1]  ;;  %v954_v45 = vrot.slane %v947_v4, 7 }
  0xec   : > { %1519 = vst.msk [vmem:[#allocation2 + $0x18] sm:$0xf0] %vm705_vm6, %v1517_v58  ;;  %v855_v0 = vrot.slane %v847_v13, 6  ;;  %v946_v58 = vld [vmem:[%s2057_s17 + $0x9] sm:$0x1] }
  0xed   : > { %1625 = vrot.lane.b32.xlu1 %v2756_v32, %s2016_s9  ;;  %v333_v21 = vpop.permute.xlu0 %332  ;;  %v1657_v32 = vsel %vm199_vm2, %v1656_v34, %v1655_v31  ;;  %v965_v31 = vrot.slane %v947_v4, 3 }
  0xee   : > { %335 = vst.msk [vmem:[#allocation2 + $0x20] sm:$0xf] %vm3265_vm8, %v333_v21  ;;  %v856_v1 = vsel %vm183_vm4, %v855_v0, %v854_v39  ;;  %v964_v21 = vrot.slane %v946_v58, 4 }
  0xef   : > { %v337_v52 = vpop.permute.xlu1 %336  ;;  %1629 = vrot.lane.b32.xlu0 %v2662_v43, %s2017_s10  ;;  %v866_v43 = vrot.slane %v847_v13, 2  ;;  %v3096_v49 = vsel %vm186_vm5, %v857_v5, %v856_v1  ;;  %v949_v13 = vld [vmem:[%s2057_s17 + $0x51] sm:$0x1] }
  0xf0   : > { %339 = vst.msk [vmem:[#allocation2 + $0x20] sm:$0xf0] %vm301_vm9, %v337_v52  ;;  %v955_v52 = vsel %vm180_vm3, %v954_v45, %v946_v58  ;;  %v958_v6 = vrot.slane %v949_v13, 5  ;;  %v966_v36 = vsel %vm193_vm0, %v965_v31, %v964_v21  ;;  %v969_v0 = vrot.slane %v949_v13, 1 }
  0xf1   : > { %1647 = vrot.lane.b32.xlu1 %v3071_v56, %s2015_s8  ;;  %v355_v42 = vpop.permute.xlu0 %354  ;;  %v867_v37 = vsel %vm196_vm1, %v866_v43, %v865_v17 }
  0xf2   : > { %357 = vst.msk [vmem:[#allocation2 + $0x30] sm:$0xf] %vm3265_vm8, %v355_v42  ;;  %v869_v38 = vsel %vm199_vm2, %v868_v51, %v867_v37  ;;  %vm806_vm8 = vcmask 917252  }
  0xf3   : > { %v366_v54 = vpop.permute.xlu1 %365  ;;  %1658 = vrot.lane.b32.xlu0 %v1657_v32, %s2016_s9 }
  0xf4   : > { %368 = vst.msk [vmem:[#allocation2 + $0x30] sm:$0xf0] %vm301_vm9, %v366_v54  ;;  %vm794_vm9 = vcmask 913152  }
  0xf5   : > { %268 = vrot.lane.b32.xlu1 %v2766_v15, %s1999_s19  ;;  %v691_v44 = vpop.permute.xlu0 %690  ;;  %v1734_v15 = vld [vmem:[%s2057_s17 + $0x41] sm:$0x1] }
  0xf6   : > { %694 = vst.msk [vmem:[#allocation2] sm:$0xf] %vm693_vm7, %v691_v44  ;;  %v1742_v46 = vrot.slane %v1734_v15, 6  ;;  %v1753_v20 = vrot.slane %v1734_v15, 2 }
  0xf7   : > { %v703_v29 = vpop.permute.xlu1 %702  ;;  %837 = vrot.lane.b32.xlu0 %v2811_v33, %s2016_s9  ;;  %v1751_v33 = vrot.slane %v1733_v63, 3 }
  0xf8   : > { %706 = vst.msk [vmem:[#allocation2] sm:$0xf0] %vm705_vm6, %v703_v29  ;;  %v1743_v2 = vsel %vm183_vm4, %v1742_v46, %v1741_v59 }
  0xf9   : > { %841 = vrot.lane.b32.xlu1 %v2794_v16, %s2017_s10  ;;  %v708_v35 = vpop.permute.xlu0 %707  ;;  %v1752_v26 = vsel %vm193_vm0, %v1751_v33, %v1750_v28  ;;  %v3123_v9 = vsel %vm186_vm5, %v1744_v24, %v1743_v2  ;;  %vm895_vm0 = vcmask 1044352  }
  0xfa   : > { %710 = vst.msk [vmem:[#allocation2 + $0x10] sm:$0xf] %vm693_vm7, %v708_v35  ;;  %v1754_v62 = vsel %vm196_vm1, %v1753_v20, %v1752_v26 }
  0xfb   : > { %v727_v61 = vpop.permute.xlu1 %726  ;;  %859 = vrot.lane.b32.xlu0 %v3096_v49, %s2015_s8 }
  0xfc   : > { %729 = vst.msk [vmem:[#allocation2 + $0x10] sm:$0xf0] %vm705_vm6, %v727_v61 }
  0xfd   : > { %870 = vrot.lane.b32.xlu1 %v869_v38, %s2016_s9  ;;  %v1230_v16 = vpop.permute.xlu0 %1229 }
  0xfe   : > { %1232 = vst.msk [vmem:[#allocation2 + $0x28] sm:$0xf] %vm390_vm10, %v1230_v16 }
  0xff   : > { %v1234_v47 = vpop.permute.xlu1 %1233  ;;  %1167 = vrot.lane.b32.xlu0 %v2490_v7, %s2002_s22  ;;  %v948_v7 = vld [vmem:[%s2057_s17 + $0x39] sm:$0x1] }
 0x100   : > { %1236 = vst.msk [vmem:[#allocation2 + $0x28] sm:$0xf0] %vm402_vm11, %v1234_v47  ;;  %v956_v30 = vrot.slane %v948_v7, 6 }
 0x101   : > { %1724 = vrot.lane.b32.xlu1 %v2842_v10, %s2019_s14  ;;  %v1252_v19 = vpop.permute.xlu0 %1251  ;;  %v1756_v10 = vsel %vm199_vm2, %v1755_v55, %v1754_v62 }
 0x102   : > { %1254 = vst.msk [vmem:[#allocation2 + $0x38] sm:$0xf] %vm390_vm10, %v1252_v19  ;;  %v957_v60 = vsel %vm183_vm4, %v956_v30, %v955_v52  ;;  %vm3268_vm4 = vcmask 257152  }
 0x103   : > { %v1263_v34 = vpop.permute.xlu1 %1262  ;;  %1728 = vrot.lane.b32.xlu0 %v2899_v27, %s2020_s15  ;;  %v967_v27 = vrot.slane %v948_v7, 2  ;;  %v959_v43 = vsel %vm186_vm5, %v958_v6, %v957_v60  ;;  %vm3269_vm5 = vmmov %vm3268_vm4 }
 0x104   : > { %1265 = vst.msk [vmem:[#allocation2 + $0x38] sm:$0xf0] %vm402_vm11, %v1263_v34 }
 0x105   : > { %1746 = vrot.lane.b32.xlu1 %v3123_v9, %s2018_s11  ;;  %v1582_v50 = vpop.permute.xlu0 %1581  ;;  %v968_v54 = vsel %vm196_vm1, %v967_v27, %v966_v36  ;;  %vm907_vm1 = vcmask 1048452  }
 0x106   : > { %1584 = vst.msk [vmem:[#allocation2 + $0x8] sm:$0xf] %vm794_vm9, %v1582_v50  ;;  %v970_v5 = vsel %vm199_vm2, %v969_v0, %v968_v54  ;;  %vm3266_vm2 = vcmask 125952  }
 0x107   : > { %v1593_v32 = vpop.permute.xlu1 %1592  ;;  %1757 = vrot.lane.b32.xlu0 %v1756_v10, %s2019_s14  ;;  %vm3267_vm3 = vmmov %vm3266_vm2 }
 0x108   : > { %1595 = vst.msk [vmem:[#allocation2 + $0x8] sm:$0xf0] %vm806_vm8, %v1593_v32 }
 0x109   : > { %369 = vrot.lane.b32.xlu1 %v2555_v23, %s2002_s22  ;;  %v1597_v42 = vpop.permute.xlu0 %1596 }
 0x10a   : > { %1599 = vst.msk [vmem:[#allocation2 + $0x18] sm:$0xf] %vm794_vm9, %v1597_v42 }
 0x10b   : > { %v1616_v39 = vpop.permute.xlu1 %1615  ;;  %938 = vrot.lane.b32.xlu0 %v2873_v40, %s2019_s14 }
 0x10c   : > { %1618 = vst.msk [vmem:[#allocation2 + $0x18] sm:$0xf0] %vm806_vm8, %v1616_v39 }
 0x10d   : > { %942 = vrot.lane.b32.xlu1 %v2953_v18, %s2020_s15  ;;  %v434_v23 = vpop.permute.xlu0 %433 }
 0x10e   : > { %436 = vst.msk [vmem:[#allocation2 + $0x20] sm:$0xf] %vm390_vm10, %v434_v23 }
 0x10f   : > { %v438_v17 = vpop.permute.xlu1 %437  ;;  %960 = vrot.lane.b32.xlu0 %v959_v43, %s2018_s11 }
 0x110   : > { %440 = vst.msk [vmem:[#allocation2 + $0x20] sm:$0xf0] %vm402_vm11, %v438_v17 }
 0x111   : > { %971 = vrot.lane.b32.xlu1 %v970_v5, %s2019_s14  ;;  %v456_v40 = vpop.permute.xlu0 %455 }
 0x112   : > { %458 = vst.msk [vmem:[#allocation2 + $0x30] sm:$0xf] %vm390_vm10, %v456_v40 }
 0x113   : > { %v467_v44 = vpop.permute.xlu1 %466  ;;  %1266 = vrot.lane.b32.xlu0 %v2618_v41, %s2005_s25 }
 0x114   : > { %469 = vst.msk [vmem:[#allocation2 + $0x30] sm:$0xf0] %vm402_vm11, %v467_v44 }
 0x115   : > { %470 = vrot.lane.b32.xlu1 %v2716_v11, %s2005_s25  ;;  %v792_v18 = vpop.permute.xlu0 %791 }
 0x116   : > { %795 = vst.msk [vmem:[#allocation2] sm:$0xf] %vm794_vm9, %v792_v18 }
 0x117   : > { %v804_v1 = vpop.permute.xlu1 %803  ;;  %1365 = vrot.lane.b32.xlu0 %v2831_v3, %s2008_s28 }
 0x118   : > { %807 = vst.msk [vmem:[#allocation2] sm:$0xf0] %vm806_vm8, %v804_v1 }
 0x119   : > { %571 = vrot.lane.b32.xlu1 %v2914_v8, %s2008_s28  ;;  %v809_v63 = vpop.permute.xlu0 %808 }
 0x11a   : > { %811 = vst.msk [vmem:[#allocation2 + $0x10] sm:$0xf] %vm794_vm9, %v809_v63 }
 0x11b   : > { %v828_v41 = vpop.permute.xlu1 %827  ;;  %1464 = vrot.lane.b32.xlu0 %v2975_v48, %s2011_s4 }
 0x11c   : > { %830 = vst.msk [vmem:[#allocation2 + $0x10] sm:$0xf0] %vm806_vm8, %v828_v41 }
 0x11d   : > { %672 = vrot.lane.b32.xlu1 %v3000_v14, %s2011_s4  ;;  %v1329_v11 = vpop.permute.xlu0 %1328 }
 0x11e   : > { %1331 = vst.msk [vmem:[#allocation2 + $0x28] sm:$0xf] %vm491_vm12, %v1329_v11 }
 0x11f   : > { %v1333_v3 = vpop.permute.xlu1 %1332  ;;  %1563 = vrot.lane.b32.xlu0 %v3023_v22, %s2014_s7  ;;  %v2021_v22 = vmov 0.0  }
 0x120   : > { %1335 = vst.msk [vmem:[#allocation2 + $0x28] sm:$0xf0] %vm503_vm13, %v1333_v3  ;;  %1857 = vmatprep.mubr.f32.mxu0 %v2021_v22 }
 0x121   : > { %773 = vrot.lane.b32.xlu1 %v3044_v12, %s2014_s7  ;;  %v1351_v8 = vpop.permute.xlu0 %1350  ;;  %v2022_v12 = vmov 0  }
 0x122   : > { %1353 = vst.msk [vmem:[#allocation2 + $0x38] sm:$0xf] %vm491_vm12, %v1351_v8  ;;  %1977 = vset.pattern.permute.xlu0 %v2022_v12 }
 0x123   : > { %v1362_v48 = vpop.permute.xlu1 %1361  ;;  %1662 = vrot.lane.b32.xlu0 %v3071_v56, %s2017_s10  ;;  %v1776_v56 = vld [vmem:[%s3262_s2] sm:$0xff] }
 0x124   : > { %1364 = vst.msk [vmem:[#allocation2 + $0x38] sm:$0xf0] %vm503_vm13, %v1362_v48 }
 0x125   : > { %874 = vrot.lane.b32.xlu1 %v3096_v49, %s2017_s10  ;;  %v1681_v14 = vpop.permute.xlu0 %1680 }
 0x126   : > { %1683 = vst.msk [vmem:[#allocation2 + $0x8] sm:$0xf] %vm895_vm0, %v1681_v14 }
 0x127   : > { %v1692_v51 = vpop.permute.xlu1 %1691  ;;  %1761 = vrot.lane.b32.xlu0 %v3123_v9, %s2020_s15 }
 0x128   : > { %1694 = vst.msk [vmem:[#allocation2 + $0x8] sm:$0xf0] %vm907_vm1, %v1692_v51 }
 0x129   : > { %975 = vrot.lane.b32.xlu1 %v959_v43, %s2020_s15  ;;  %v1696_v29 = vpop.permute.xlu0 %1695 }
 0x12a   : > { %1698 = vst.msk [vmem:[#allocation2 + $0x18] sm:$0xf] %vm895_vm0, %v1696_v29 }
 0x12b   : > { %v1715_v37 = vpop.permute.xlu1 %1714  ;;  %1779 = vperm.xlu0 %1977, %v1776_v56  }
 0x12c   : > { %1717 = vst.msk [vmem:[#allocation2 + $0x18] sm:$0xf0] %vm907_vm1, %v1715_v37 }
 0x12d   : > { %v535_v49 = vpop.permute.xlu0 %534 }
 0x12e   : > { %537 = vst.msk [vmem:[#allocation2 + $0x20] sm:$0xf] %vm491_vm12, %v535_v49 }
 0x12f   : > { %v539_v15 = vpop.permute.xlu1 %538  ;;  %v1767_v57 = vld [vmem:[#allocation2 + $0x8] sm:$0xff] }
 0x130   : > { %541 = vst.msk [vmem:[#allocation2 + $0x20] sm:$0xf0] %vm503_vm13, %v539_v15 }
 0x131   : > { %v557_v53 = vpop.permute.xlu0 %556 }
 0x132   : > { %559 = vst.msk [vmem:[#allocation2 + $0x30] sm:$0xf] %vm491_vm12, %v557_v53 }
 0x133   : > { %v568_v35 = vpop.permute.xlu1 %567  ;;  %v1769_v38 = vld [vmem:[#allocation2 + $0x18] sm:$0xff] }
 0x134   : > { %570 = vst.msk [vmem:[#allocation2 + $0x30] sm:$0xf0] %vm503_vm13, %v568_v35  ;;  %v1935_v28 = vpack.c.bf16 %v1769_v38, %v1767_v57  ;;  %v1765_v38 = vld [vmem:[%s3261_s1] sm:$0xff] }
 0x135   : > { %v893_v33 = vpop.permute.xlu0 %892 }
 0x136   : > { %1936 = vmatprep.subr.bf16.mxu0 %v1935_v28  ;;  %896 = vst.msk [vmem:[#allocation2] sm:$0xf] %vm895_vm0, %v893_v33 }
 0x137   : > { %v905_v61 = vpop.permute.xlu1 %904 }
 0x138   : > { %908 = vst.msk [vmem:[#allocation2] sm:$0xf0] %vm907_vm1, %v905_v61 }
 0x139   : > { %v910_v25 = vpop.permute.xlu0 %909 }
 0x13a   : > { %912 = vst.msk [vmem:[#allocation2 + $0x10] sm:$0xf] %vm895_vm0, %v910_v25 }
 0x13b   : > { %v929_v46 = vpop.permute.xlu1 %928 }
 0x13c   : > { %931 = vst.msk [vmem:[#allocation2 + $0x10] sm:$0xf0] %vm907_vm1, %v929_v46 }
 0x13d   : > { %v1428_v59 = vpop.permute.xlu0 %1427 }
 0x13e   : > { %1430 = vst.msk [vmem:[#allocation2 + $0x28] sm:$0xf] %vm592_vm14, %v1428_v59 }
 0x13f   : > { %v1432_v16 = vpop.permute.xlu1 %1431  ;;  %v1766_v26 = vld [vmem:[#allocation2] sm:$0xff] }
 0x140   : > { %1434 = vst.msk [vmem:[#allocation2 + $0x28] sm:$0xf0] %vm604_vm15, %v1432_v16 }
 0x141   : > { %v1450_v20 = vpop.permute.xlu0 %1449 }
 0x142   : > { %1452 = vst.msk [vmem:[#allocation2 + $0x38] sm:$0xf] %vm592_vm14, %v1450_v20 }
 0x143   : > { %v1461_v24 = vpop.permute.xlu1 %1460  ;;  %v1768_v47 = vld [vmem:[#allocation2 + $0x10] sm:$0xff] }
 0x144   : > { %1463 = vst.msk [vmem:[#allocation2 + $0x38] sm:$0xf0] %vm604_vm15, %v1461_v24  ;;  %v1937_v2 = vpack.c.bf16 %v1768_v47, %v1766_v26 }
 0x145   : > { %v636_v4 = vpop.permute.xlu0 %635 }
 0x146   : > { %1938 = vmatpush1.bf16.msra.mxu0 %v1937_v2  ;;  %638 = vst.msk [vmem:[#allocation2 + $0x20] sm:$0xf] %vm592_vm14, %v636_v4 }
 0x147   : > { %v640_v55 = vpop.permute.xlu1 %639 }
 0x148   : > { %642 = vst.msk [vmem:[#allocation2 + $0x20] sm:$0xf0] %vm604_vm15, %v640_v55 }
 0x149   : > { %v658_v19 = vpop.permute.xlu0 %657 }
 0x14a   : > { %660 = vst.msk [vmem:[#allocation2 + $0x30] sm:$0xf] %vm592_vm14, %v658_v19 }
 0x14b   : > { %v669_v62 = vpop.permute.xlu1 %668 }
 0x14c   : > { %671 = vst.msk [vmem:[#allocation2 + $0x30] sm:$0xf0] %vm604_vm15, %v669_v62 }
 0x14d   : > { %v1527_v58 = vpop.permute.xlu0 %1526 }
 0x14e   : > { %1529 = vst.msk [vmem:[#allocation2 + $0x28] sm:$0xf] %vm693_vm7, %v1527_v58 }
 0x14f   : > { %v1531_v9 = vpop.permute.xlu1 %1530 }
 0x150   : > { %1533 = vst.msk [vmem:[#allocation2 + $0x28] sm:$0xf0] %vm705_vm6, %v1531_v9 }
 0x151   : > { %v1549_v7 = vpop.permute.xlu0 %1548 }
 0x152   : > { %1551 = vst.msk [vmem:[#allocation2 + $0x38] sm:$0xf] %vm693_vm7, %v1549_v7 }
 0x153   : > { %v1560_v45 = vpop.permute.xlu1 %1559 }
 0x154   : > { %1562 = vst.msk [vmem:[#allocation2 + $0x38] sm:$0xf0] %vm705_vm6, %v1560_v45 }
 0x155   : > { %v737_v34 = vpop.permute.xlu0 %736 }
 0x156   : > { %739 = vst.msk [vmem:[#allocation2 + $0x20] sm:$0xf] %vm693_vm7, %v737_v34 }
 0x157   : > { %v741_v10 = vpop.permute.xlu1 %740 }
 0x158   : > { %743 = vst.msk [vmem:[#allocation2 + $0x20] sm:$0xf0] %vm705_vm6, %v741_v10 }
 0x159   : > { %v759_v21 = vpop.permute.xlu0 %758 }
 0x15a   : > { %761 = vst.msk [vmem:[#allocation2 + $0x30] sm:$0xf] %vm693_vm7, %v759_v21 }
 0x15b   : > { %v770_v31 = vpop.permute.xlu1 %769 }
 0x15c   : > { %772 = vst.msk [vmem:[#allocation2 + $0x30] sm:$0xf0] %vm705_vm6, %v770_v31  ;;  %vm1786_vm6 = vcmask 1043456  }
 0x15d   : > { %v1069_v50 = vpop.permute.xlu0 %1068 }
 0x15e   : > { %1071 = vst.msk [vmem:[#allocation2 + $0x48] sm:$0xf] %vm3266_vm2, %v1069_v50 }
 0x15f   : > { %v1626_v13 = vpop.permute.xlu1 %1625 }
 0x160   : > { %1628 = vst.msk [vmem:[#allocation2 + $0x28] sm:$0xf] %vm794_vm9, %v1626_v13 }
 0x161   : > { %v1630_v30 = vpop.permute.xlu0 %1629 }
 0x162   : > { %1632 = vst.msk [vmem:[#allocation2 + $0x28] sm:$0xf0] %vm806_vm8, %v1630_v30 }
 0x163   : > { %v1648_v52 = vpop.permute.xlu1 %1647 }
 0x164   : > { %1650 = vst.msk [vmem:[#allocation2 + $0x38] sm:$0xf] %vm794_vm9, %v1648_v52 }
 0x165   : > { %v1659_v32 = vpop.permute.xlu0 %1658 }
 0x166   : > { %1661 = vst.msk [vmem:[#allocation2 + $0x38] sm:$0xf0] %vm806_vm8, %v1659_v32 }
 0x167   : > { %v269_v27 = vpop.permute.xlu1 %268 }
 0x168   : > { %271 = vst.msk [vmem:[#allocation2 + $0x40] sm:$0xf] %vm3267_vm3, %v269_v27 }
 0x169   : > { %v838_v6 = vpop.permute.xlu0 %837 }
 0x16a   : > { %840 = vst.msk [vmem:[#allocation2 + $0x20] sm:$0xf] %vm794_vm9, %v838_v6 }
 0x16b   : > { %v842_v36 = vpop.permute.xlu1 %841 }
 0x16c   : > { %844 = vst.msk [vmem:[#allocation2 + $0x20] sm:$0xf0] %vm806_vm8, %v842_v36 }
 0x16d   : > { %v860_v42 = vpop.permute.xlu0 %859 }
 0x16e   : > { %862 = vst.msk [vmem:[#allocation2 + $0x30] sm:$0xf] %vm794_vm9, %v860_v42 }
 0x16f   : > { %v871_v60 = vpop.permute.xlu1 %870 }
 0x170   : > { %873 = vst.msk [vmem:[#allocation2 + $0x30] sm:$0xf0] %vm806_vm8, %v871_v60  ;;  %vm1782_vm8 = vcmask 293888  }
 0x171   : > { %v1168_v0 = vpop.permute.xlu0 %1167 }
 0x172   : > { %1170 = vst.msk [vmem:[#allocation2 + $0x48] sm:$0xf] %vm3268_vm4, %v1168_v0 }
 0x173   : > { %v1725_v39 = vpop.permute.xlu1 %1724 }
 0x174   : > { %1727 = vst.msk [vmem:[#allocation2 + $0x28] sm:$0xf] %vm895_vm0, %v1725_v39 }
 0x175   : > { %v1729_v54 = vpop.permute.xlu0 %1728 }
 0x176   : > { %1731 = vst.msk [vmem:[#allocation2 + $0x28] sm:$0xf0] %vm907_vm1, %v1729_v54 }
 0x177   : > { %v1747_v43 = vpop.permute.xlu1 %1746 }
 0x178   : > { %1749 = vst.msk [vmem:[#allocation2 + $0x38] sm:$0xf] %vm895_vm0, %v1747_v43 }
 0x179   : > { %v1758_v23 = vpop.permute.xlu0 %1757 }
 0x17a   : > { %1760 = vst.msk [vmem:[#allocation2 + $0x38] sm:$0xf0] %vm907_vm1, %v1758_v23 }
 0x17b   : > { %v370_v5 = vpop.permute.xlu1 %369 }
 0x17c   : > { %372 = vst.msk [vmem:[#allocation2 + $0x40] sm:$0xf] %vm3269_vm5, %v370_v5 }
 0x17d   : > { %v939_v17 = vpop.permute.xlu0 %938  ;;  %v1771_v18 = vld [vmem:[#allocation2 + $0x28] sm:$0xff] }
 0x17e   : > { %941 = vst.msk [vmem:[#allocation2 + $0x20] sm:$0xf] %vm895_vm0, %v939_v17 }
 0x17f   : > { %v943_v40 = vpop.permute.xlu1 %942 }
 0x180   : > { %945 = vst.msk [vmem:[#allocation2 + $0x20] sm:$0xf0] %vm907_vm1, %v943_v40 }
 0x181   : > { %v961_v44 = vpop.permute.xlu0 %960  ;;  %v1773_v1 = vld [vmem:[#allocation2 + $0x38] sm:$0xff] }
 0x182   : > { %963 = vst.msk [vmem:[#allocation2 + $0x30] sm:$0xf] %vm895_vm0, %v961_v44  ;;  %v1939_v63 = vpack.c.bf16 %v1773_v1, %v1771_v18 }
 0x183   : > { %v972_v41 = vpop.permute.xlu1 %971 }
 0x184   : > { %974 = vst.msk [vmem:[#allocation2 + $0x30] sm:$0xf0] %vm907_vm1, %v972_v41  ;;  %1940 = vmatprep.subr.bf16.mxu0 %v1939_v63 }
 0x185   : > { %v1267_v11 = vpop.permute.xlu0 %1266 }
 0x186   : > { %1269 = vst.msk [vmem:[#allocation2 + $0x48] sm:$0xf] %vm390_vm10, %v1267_v11 }
 0x187   : > { %v471_v3 = vpop.permute.xlu1 %470  ;;  %v1770_v14 = vld [vmem:[#allocation2 + $0x20] sm:$0xff] }
 0x188   : > { %473 = vst.msk [vmem:[#allocation2 + $0x40] sm:$0xf] %vm390_vm10, %v471_v3 }
 0x189   : > { %v1366_v8 = vpop.permute.xlu0 %1365 }
 0x18a   : > { %1368 = vst.msk [vmem:[#allocation2 + $0x48] sm:$0xf] %vm491_vm12, %v1366_v8 }
 0x18b   : > { %v572_v48 = vpop.permute.xlu1 %571  ;;  %v1772_v22 = vld [vmem:[#allocation2 + $0x30] sm:$0xff] }
 0x18c   : > { %574 = vst.msk [vmem:[#allocation2 + $0x40] sm:$0xf] %vm491_vm12, %v572_v48  ;;  %v1941_v12 = vpack.c.bf16 %v1772_v22, %v1770_v14 }
 0x18d   : > { %v1465_v51 = vpop.permute.xlu0 %1464 }
 0x18e   : > { %1942 = vmatpush1.bf16.msra.mxu0 %v1941_v12  ;;  %1467 = vst.msk [vmem:[#allocation2 + $0x48] sm:$0xf] %vm592_vm14, %v1465_v51 }
 0x18f   : > { %v673_v56 = vpop.permute.xlu1 %672 }
 0x190   : > { %675 = vst.msk [vmem:[#allocation2 + $0x40] sm:$0xf] %vm592_vm14, %v673_v56 }
 0x191   : > { %v1564_v29 = vpop.permute.xlu0 %1563 }
 0x192   : > { %1566 = vst.msk [vmem:[#allocation2 + $0x48] sm:$0xf] %vm693_vm7, %v1564_v29 }
 0x193   : > { %v774_v37 = vpop.permute.xlu1 %773 }
 0x194   : > { %776 = vst.msk [vmem:[#allocation2 + $0x40] sm:$0xf] %vm693_vm7, %v774_v37 }
 0x195   : > { %v1663_v49 = vpop.permute.xlu0 %1662 }
 0x196   : > { %1665 = vst.msk [vmem:[#allocation2 + $0x48] sm:$0xf] %vm794_vm9, %v1663_v49 }
 0x197   : > { %v875_v15 = vpop.permute.xlu1 %874 }
 0x198   : > { %877 = vst.msk [vmem:[#allocation2 + $0x40] sm:$0xf] %vm794_vm9, %v875_v15 }
 0x199   : > { %v1762_v53 = vpop.permute.xlu0 %1761 }
 0x19a   : > { %1764 = vst.msk [vmem:[#allocation2 + $0x48] sm:$0xf] %vm895_vm0, %v1762_v53 }
 0x19b   : > { %v976_v35 = vpop.permute.xlu1 %975 }
 0x19c   : > { %978 = vst.msk [vmem:[#allocation2 + $0x40] sm:$0xf] %vm895_vm0, %v976_v35 }
 0x1a1   : > { %v1775_v57 = vld [vmem:[#allocation2 + $0x48] sm:$0xf] }
 0x1a2   : > { %1929 = vmatprep.subr.msk.mxu0 %vm1786_vm6, %v1775_v57 }
 0x1a3   : > { %v1774_v28 = vld [vmem:[#allocation2 + $0x40] sm:$0xf] }
 0x1a4   : > { %1930 = vmatpush1.msk.msra.mxu0 %vm1786_vm6, %v1774_v28 }
 0x1a5   : > { %1931 = vmatmul.mubr.msk.f32.vlgmr.msra.gmra.mrb[0].mxu0 %vm1782_vm8, %v1765_v38 }
 0x1aa   : > { %v1780_v33 = vpop.permute.xlu0 %1779 }
 0x278   : > { %v1859_v61 = vpop.f32.mrb[0].mxu0 }
 0x279   : > { %v1860_v25 = vadd.f32 %v1859_v61, %v1780_v33  ;;  %v1861_v46 = vpop.f32.mrb[1].mxu0 }
 0x27a   : > { %v1862_v59 = vadd.f32 %v1861_v46, %v1780_v33 }
 0x27b   : > { %1864 = vst [vmem:[%s170_s23] sm:$0xff] %v1860_v25 }
 0x27c   : > { %1865 = vst [vmem:[%s170_s23 + $0x8] sm:$0xff] %v1862_v59 }
 0x27d PF: > { %s13_s12 = sadd.s32 1, %s1996_s12  }
 0x27e   : > { %p10_p4 = scmp.ge.s32.totalorder %s13_s12, 4  }
 0x280   :  { %12 = sbr.rel (!%p10_p4) target bundleno = 1 (0x1), region = 62 }

</bundles_post_ra>
